<compile_context>
chip_gen: v7x
topology: tpu7x:2x2x1
jax: 0.10.0
libtpu: 0.0.40
codegen_flags: <defaults>
</compile_context>

<pallas_src>
import jax
import jax.numpy as jnp
from jax import lax
from jax.experimental import pallas as pl
from jax.experimental.pallas import tpu as pltpu


# ----------------------------------------------------------------------------
# Fused kernel factory
# ----------------------------------------------------------------------------
def make_fused_kernel(hq: int, wq: int):
    """hq/wq = conv2 output height/width (= conv1 output spatial size // 2)."""

    def kernel(p1_ref, w1_ref, b1_ref, w2a_ref, w2b_ref, b2_ref,
               v25_ref, v23_ref, scr6_ref, scr8_ref):
        # Scratches hold the zero-padded conv1 output, split into the four
        # (row-parity, col-parity) groups so that every stride-2 conv2 window is
        # a unit-stride slice:
        #   scr6[2*gh+gw, q, p, :] = v6 at conv1 output (gh + 2*(q-gh), gw + 2*(p-gw))
        #   scr8[...]              = v8 at the same position
        # Unwritten entries stay zero and act as the conv padding ring.
        scr6_ref[...] = jnp.zeros_like(scr6_ref)
        scr8_ref[...] = jnp.zeros_like(scr8_ref)

        b1 = b1_ref[...]                                        # (1, 32) f32
        # ---- stage 1: conv1 as one bf16 GEMM per parity group + fused elementwise
        for gh in range(2):
            for gw in range(2):
                g = 2 * gh + gw
                v1 = jnp.dot(p1_ref[0, g], w1_ref[...],         # bf16 x bf16 -> f32
                             preferred_element_type=jnp.float32) + b1   # (hq*wq, 32)
                v6 = jnp.maximum(v1 + 1.3, 0.0)                          # relu(v1 + 1.3)
                v8 = jnp.maximum(jnp.maximum(v1 - 2.0, 0.0) - 0.2, 0.0)  # relu(relu(v1-2)-0.2)
                for a in range(hq):
                    rows = slice(a * wq, (a + 1) * wq)
                    scr6_ref[g, gh + a, gw:gw + wq, :] = v6[rows, :]
                    scr8_ref[g, gh + a, gw:gw + wq, :] = v8[rows, :]

        b2 = b2_ref[...]                                        # (1, 32) f32
        # ---- stage 2: conv2 accumulated over the 9 shifted windows, concat-free
        for i in range(hq):                                     # conv2 output row
            acc = jnp.zeros((wq, 32), jnp.float32)
            for kh in range(3):
                for kw in range(3):
                    g = 2 * (1 - (kh & 1)) + (1 - (kw & 1))     # parity group of this window
                    q = kh // 2 + i
                    p0 = kw // 2
                    kk = kh * 3 + kw
                    win6 = scr6_ref[g, q, p0:p0 + wq, :]        # (wq, 32) f32
                    win8 = scr8_ref[g, q, p0:p0 + wq, :]
                    acc = acc + jnp.dot(win6.astype(jnp.bfloat16), w2a_ref[kk],
                                        preferred_element_type=jnp.float32)
                    acc = acc + jnp.dot(win8.astype(jnp.bfloat16), w2b_ref[kk],
                                        preferred_element_type=jnp.float32)
            v10 = acc + b2                                      # == v19
            v21 = jnp.maximum(v10 - 0.3, 0.0)
            v23 = jnp.maximum(v10 + v21, 0.0)
            v23_ref[0, i] = v23                                 # aux output (verification only)
            v25_ref[0, i] = jnp.floor(v23 / 100.0) + 14.0       # floor_divide(v23, 100) + 14

    return kernel


# ----------------------------------------------------------------------------
# Wrapper-side layout plumbing
# ----------------------------------------------------------------------------
def _conv1_patches_grouped(x_nhwc, ksize=3, stride=2, pad=1):
    """im2col patches for conv1, rows ordered by (row-parity, col-parity) group.

    Returns (N, 4, (Ho//2)*(Wo//2), ksize*ksize*C) and (Ho, Wo).
    Group g = 2*gh + gw holds conv1 outputs at (gh + 2a, gw + 2b), row a*(Wo//2)+b.
    """
    n, h, w, c = x_nhwc.shape
    ho = (h + 2 * pad - ksize) // stride + 1
    wo = (w + 2 * pad - ksize) // stride + 1
    assert ho % 2 == 0 and wo % 2 == 0, "fused kernel assumes even conv1 output size"
    hq, wq = ho // 2, wo // 2
    xp = jnp.pad(x_nhwc, ((0, 0), (pad, pad), (pad, pad), (0, 0)))
    groups = []
    for gh in range(2):
        for gw in range(2):
            cols = []
            for kh in range(ksize):
                for kw in range(ksize):
                    r0 = stride * gh + kh
                    c0 = stride * gw + kw
                    cols.append(xp[:,
                                   r0:r0 + 2 * stride * (hq - 1) + 1:2 * stride,
                                   c0:c0 + 2 * stride * (wq - 1) + 1:2 * stride,
                                   :])
            grp = jnp.concatenate(cols, axis=-1)                # (N, hq, wq, k*k*c)
            groups.append(grp.reshape(n, hq * wq, ksize * ksize * c))
    return jnp.stack(groups, axis=1), ho, wo


def _fused_forward(x_nchw, params):
    """Returns (v25, v23) in NCHW via one fused Pallas kernel."""
    n = x_nchw.shape[0]
    x_nhwc = jnp.transpose(x_nchw, (0, 2, 3, 1))

    p1, h1, w1 = _conv1_patches_grouped(x_nhwc)                 # (N, 4, hq*wq, 27)
    hq, wq = h1 // 2, w1 // 2
    k1 = p1.shape[-1]
    k1p = 32                                                    # pad K: 27 -> 32
    p1 = jnp.pad(p1, ((0, 0), (0, 0), (0, 0), (0, k1p - k1))).astype(jnp.bfloat16)

    w1g = jnp.transpose(params["w1"], (2, 3, 1, 0)).reshape(k1, 32)
    w1g = jnp.pad(w1g, ((0, k1p - k1), (0, 0))).astype(jnp.bfloat16)

    def conv2_half(w_half):                                     # (32, 32, 3, 3) -> (9, 32, 32)
        return jnp.transpose(w_half, (2, 3, 1, 0)).reshape(9, 32, 32).astype(jnp.bfloat16)

    w2a = conv2_half(params["w2"][:, :32])                      # acts on v6 (concat channels 0:32)
    w2b = conv2_half(params["w2"][:, 32:])                      # acts on v8 -> concat eliminated
    b1 = params["b1"].reshape(1, 32).astype(jnp.float32)
    b2 = params["b2"].reshape(1, 32).astype(jnp.float32)

    sp = 8 * ((wq + 1 + 7) // 8)                                # sublane-padded scratch width
    out_block = pl.BlockSpec((1, hq, wq, 32), lambda b: (b, 0, 0, 0))

    v25_nhwc, v23_nhwc = pl.pallas_call(
        make_fused_kernel(hq, wq),
        out_shape=(jax.ShapeDtypeStruct((n, hq, wq, 32), jnp.float32),
                   jax.ShapeDtypeStruct((n, hq, wq, 32), jnp.float32)),
        grid_spec=pltpu.PrefetchScalarGridSpec(
            num_scalar_prefetch=0,
            grid=(n,),
            in_specs=[
                pl.BlockSpec((1, 4, hq * wq, k1p), lambda b: (b, 0, 0, 0)),  # patches (tiled on batch)
                pl.BlockSpec((k1p, 32), lambda b: (0, 0)),                   # weights/bias: VMEM-resident
                pl.BlockSpec((1, 32), lambda b: (0, 0)),
                pl.BlockSpec((9, 32, 32), lambda b: (0, 0, 0)),
                pl.BlockSpec((9, 32, 32), lambda b: (0, 0, 0)),
                pl.BlockSpec((1, 32), lambda b: (0, 0)),
            ],
            out_specs=(out_block, out_block),
            scratch_shapes=[pltpu.VMEM((4, hq + 1, sp, 32), jnp.float32),
                            pltpu.VMEM((4, hq + 1, sp, 32), jnp.float32)],
        ),
        compiler_params=pltpu.CompilerParams(
            dimension_semantics=("parallel",)),                 # megacore / v7x dual-TC sharding
    )(p1, w1g, b1, w2a, w2b, b2)

    return (jnp.transpose(v25_nhwc, (0, 3, 1, 2)),
            jnp.transpose(v23_nhwc, (0, 3, 1, 2)))


_fused_forward_jit = jax.jit(_fused_forward)


def model_forward(x_nchw, params):
    n, _, h, w = x_nchw.shape
    # The module's contract is v26 = v25.size(): computable analytically, no kernel needed.
    h1, w1 = (h + 2 - 3) // 2 + 1, (w + 2 - 3) // 2 + 1
    h2, w2 = (h1 + 2 - 3) // 2 + 1, (w1 + 2 - 3) // 2 + 1
    v26 = (n, 32, h2, w2)
    v25, v23 = _fused_forward_jit(x_nchw, params)
    return v25, v23, v26


# ----------------------------------------------------------------------------
# Pure-JAX (f32, lax.conv) reference of the same dataflow, for verification
# ----------------------------------------------------------------------------
def reference_forward(x_nchw, params):
    dn = ("NCHW", "OIHW", "NCHW")

    def conv(x, w, b):
        y = lax.conv_general_dilated(x, w, window_strides=(2, 2),
                                     padding=((1, 1), (1, 1)),
                                     dimension_numbers=dn)
        return y + b[None, :, None, None]

    v1 = conv(x_nchw, params["w1"], params["b1"])
    v6 = jnp.maximum(v1 + 1.3, 0.0)
    v8 = jnp.maximum(jnp.maximum(v1 - 2.0, 0.0) - 0.2, 0.0)
    v9 = jnp.concatenate([v6, v8], axis=1)
    v10 = conv(v9, params["w2"], params["b2"])
    v21 = jnp.maximum(v10 - 0.3, 0.0)
    v23 = jnp.maximum(v10 + v21, 0.0)
    v25 = jnp.floor(v23 / 100.0) + 14.0
    return v25, v23


def init_params(key):
    k1, k2, k3, k4 = jax.random.split(key, 4)
    # conv1: Conv2d(3, 32, 3, stride=2, padding=1)
    w1 = 0.1 * jax.random.normal(k1, (32, 3, 3, 3), jnp.float32)
    b1 = 0.01 * jax.random.normal(k2, (32,), jnp.float32)
    # conv2: widened to 64 input channels (see TODO at top)
    w2 = 0.1 * jax.random.normal(k3, (32, 64, 3, 3), jnp.float32)
    b2 = 0.01 * jax.random.normal(k4, (32,), jnp.float32)
    return {"w1": w1, "b1": b1, "w2": w2, "b2": b2}


if __name__ == "__main__":
    key = jax.random.PRNGKey(0)
    kp, kx = jax.random.split(key)
    params = init_params(kp)

    N, C, H, W = 2, 3, 16, 16
    x1 = jax.random.normal(kx, (N, C, H, W), jnp.float32)

    v25, v23, v26 = model_forward(x1, params)
    jax.block_until_ready(v25)

    # the module's actual return value: the shape of v25 (NCHW)
    assert v26 == (N, 32, 4, 4), v26
    assert v25.shape == v26, v25.shape

    # verify the fused kernel against the lax.conv reference (bf16 MXU tolerance)
    v25_ref, v23_ref = reference_forward(x1, params)
    assert jnp.allclose(v23, v23_ref, atol=0.2, rtol=0.05), \
        float(jnp.max(jnp.abs(v23 - v23_ref)))
    assert jnp.allclose(v25, v25_ref, atol=1e-3), \
        float(jnp.max(jnp.abs(v25 - v25_ref)))

    print("KERNEL_OK")
</pallas_src>

<mosaic_0001>
module attributes {stable_mosaic.version = 11 : i64} {
  func.func @kernel(%arg0: i32, %arg1: memref<1x4x16x32xbf16, #tpu.memory_space<vmem>>, %arg2: memref<32x32xbf16, #tpu.memory_space<vmem>>, %arg3: memref<1x32xf32, #tpu.memory_space<vmem>>, %arg4: memref<9x32x32xbf16, #tpu.memory_space<vmem>>, %arg5: memref<9x32x32xbf16, #tpu.memory_space<vmem>>, %arg6: memref<1x32xf32, #tpu.memory_space<vmem>>, %arg7: memref<1x4x4x32xf32, #tpu.memory_space<vmem>>, %arg8: memref<1x4x4x32xf32, #tpu.memory_space<vmem>>, %arg9: memref<4x5x8x32xf32, #tpu.memory_space<vmem>>, %arg10: memref<4x5x8x32xf32, #tpu.memory_space<vmem>>) attributes {dimension_semantics = [#tpu.dimension_semantics<parallel>], iteration_bounds = array<i64: 2>, scalar_prefetch = 0 : i64, scratch_operands = 2 : i64, tpu.core_type = #tpu.core_type<tc>, window_params = [{transform_indices = @transform_0, window_bounds = array<i64: 1, 4, 16, 32>}, {pipeline_mode = #tpu.pipeline_mode<synchronous>, transform_indices = @transform_1, window_bounds = array<i64: 32, 32>}, {pipeline_mode = #tpu.pipeline_mode<synchronous>, transform_indices = @transform_2, window_bounds = array<i64: 1, 32>}, {pipeline_mode = #tpu.pipeline_mode<synchronous>, transform_indices = @transform_3, window_bounds = array<i64: 9, 32, 32>}, {pipeline_mode = #tpu.pipeline_mode<synchronous>, transform_indices = @transform_4, window_bounds = array<i64: 9, 32, 32>}, {pipeline_mode = #tpu.pipeline_mode<synchronous>, transform_indices = @transform_5, window_bounds = array<i64: 1, 32>}, {transform_indices = @transform_6, window_bounds = array<i64: 1, 4, 4, 32>}, {transform_indices = @transform_7, window_bounds = array<i64: 1, 4, 4, 32>}]} {
    %cst = arith.constant 0.000000e+00 : f32
    %0 = vector.broadcast %cst : f32 to vector<4x5x8x32xf32>
    %c0 = arith.constant 0 : index
    %c0_0 = arith.constant 0 : index
    %c0_1 = arith.constant 0 : index
    %c0_2 = arith.constant 0 : index
    %1 = vector.load %arg9[%c0, %c0_0, %c0_1, %c0_2] : memref<4x5x8x32xf32, #tpu.memory_space<vmem>>, vector<4x5x8x32xf32>
    tpu.vector_store %arg9[%c0, %c0_0, %c0_1, %c0_2], %0 {strides = array<i32>} : memref<4x5x8x32xf32, #tpu.memory_space<vmem>>, vector<4x5x8x32xf32>,
    %cst_3 = arith.constant 0.000000e+00 : f32
    %2 = vector.broadcast %cst_3 : f32 to vector<4x5x8x32xf32>
    %c0_4 = arith.constant 0 : index
    %c0_5 = arith.constant 0 : index
    %c0_6 = arith.constant 0 : index
    %c0_7 = arith.constant 0 : index
    %3 = vector.load %arg10[%c0_4, %c0_5, %c0_6, %c0_7] : memref<4x5x8x32xf32, #tpu.memory_space<vmem>>, vector<4x5x8x32xf32>
    tpu.vector_store %arg10[%c0_4, %c0_5, %c0_6, %c0_7], %2 {strides = array<i32>} : memref<4x5x8x32xf32, #tpu.memory_space<vmem>>, vector<4x5x8x32xf32>,
    %c0_8 = arith.constant 0 : index
    %c0_9 = arith.constant 0 : index
    %4 = vector.load %arg3[%c0_8, %c0_9] : memref<1x32xf32, #tpu.memory_space<vmem>>, vector<1x32xf32>
    %c0_10 = arith.constant 0 : index
    %c0_11 = arith.constant 0 : index
    %c0_12 = arith.constant 0 : index
    %c0_13 = arith.constant 0 : index
    %5 = vector.load %arg1[%c0_10, %c0_11, %c0_12, %c0_13] : memref<1x4x16x32xbf16, #tpu.memory_space<vmem>>, vector<1x1x16x32xbf16>
    %6 = vector.shape_cast %5 : vector<1x1x16x32xbf16> to vector<16x32xbf16>
    %c0_14 = arith.constant 0 : index
    %c0_15 = arith.constant 0 : index
    %7 = vector.load %arg2[%c0_14, %c0_15] : memref<32x32xbf16, #tpu.memory_space<vmem>>, vector<32x32xbf16>
    %cst_16 = arith.constant dense<0.000000e+00> : vector<16x32xf32>
    %8 = tpu.matmul %6, %7, %cst_16 {dimension_numbers = #tpu.dot_dimension_numbers<[1], [0], [0], [1], [0, 0, 1, 1], [], []>} : vector<16x32xbf16>, vector<32x32xbf16>, vector<16x32xf32> -> vector<16x32xf32>
    %9 = vector.broadcast %4 : vector<1x32xf32> to vector<16x32xf32>
    %10 = arith.addf %8, %9 : vector<16x32xf32>
    %cst_17 = arith.constant 1.300000e+00 : f32
    %11 = vector.broadcast %cst_17 : f32 to vector<16x32xf32>
    %12 = arith.addf %10, %11 : vector<16x32xf32>
    %cst_18 = arith.constant 0.000000e+00 : f32
    %13 = vector.broadcast %cst_18 : f32 to vector<16x32xf32>
    %14 = arith.maximumf %12, %13 : vector<16x32xf32>
    %cst_19 = arith.constant 2.000000e+00 : f32
    %15 = vector.broadcast %cst_19 : f32 to vector<16x32xf32>
    %16 = arith.subf %10, %15 : vector<16x32xf32>
    %cst_20 = arith.constant 0.000000e+00 : f32
    %17 = vector.broadcast %cst_20 : f32 to vector<16x32xf32>
    %18 = arith.maximumf %16, %17 : vector<16x32xf32>
    %cst_21 = arith.constant 2.000000e-01 : f32
    %19 = vector.broadcast %cst_21 : f32 to vector<16x32xf32>
    %20 = arith.subf %18, %19 : vector<16x32xf32>
    %cst_22 = arith.constant 0.000000e+00 : f32
    %21 = vector.broadcast %cst_22 : f32 to vector<16x32xf32>
    %22 = arith.maximumf %20, %21 : vector<16x32xf32>
    %23 = vector.extract_strided_slice %14 {offsets = [0, 0], sizes = [4, 32], strides = [1, 1]} : vector<16x32xf32> to vector<4x32xf32>
    %c0_23 = arith.constant 0 : index
    %c0_24 = arith.constant 0 : index
    %c0_25 = arith.constant 0 : index
    %c0_26 = arith.constant 0 : index
    %24 = vector.load %arg9[%c0_23, %c0_24, %c0_25, %c0_26] : memref<4x5x8x32xf32, #tpu.memory_space<vmem>>, vector<1x1x4x32xf32>
    %25 = vector.shape_cast %24 : vector<1x1x4x32xf32> to vector<4x32xf32>
    %26 = vector.shape_cast %23 : vector<4x32xf32> to vector<1x1x4x32xf32>
    tpu.vector_store %arg9[%c0_23, %c0_24, %c0_25, %c0_26], %26 {strides = array<i32>} : memref<4x5x8x32xf32, #tpu.memory_space<vmem>>, vector<1x1x4x32xf32>,
    %27 = vector.extract_strided_slice %22 {offsets = [0, 0], sizes = [4, 32], strides = [1, 1]} : vector<16x32xf32> to vector<4x32xf32>
    %c0_27 = arith.constant 0 : index
    %c0_28 = arith.constant 0 : index
    %c0_29 = arith.constant 0 : index
    %c0_30 = arith.constant 0 : index
    %28 = vector.load %arg10[%c0_27, %c0_28, %c0_29, %c0_30] : memref<4x5x8x32xf32, #tpu.memory_space<vmem>>, vector<1x1x4x32xf32>
    %29 = vector.shape_cast %28 : vector<1x1x4x32xf32> to vector<4x32xf32>
    %30 = vector.shape_cast %27 : vector<4x32xf32> to vector<1x1x4x32xf32>
    tpu.vector_store %arg10[%c0_27, %c0_28, %c0_29, %c0_30], %30 {strides = array<i32>} : memref<4x5x8x32xf32, #tpu.memory_space<vmem>>, vector<1x1x4x32xf32>,
    %31 = vector.extract_strided_slice %14 {offsets = [4, 0], sizes = [4, 32], strides = [1, 1]} : vector<16x32xf32> to vector<4x32xf32>
    %c0_31 = arith.constant 0 : index
    %c1 = arith.constant 1 : index
    %c0_32 = arith.constant 0 : index
    %c0_33 = arith.constant 0 : index
    %32 = vector.load %arg9[%c0_31, %c1, %c0_32, %c0_33] : memref<4x5x8x32xf32, #tpu.memory_space<vmem>>, vector<1x1x4x32xf32>
    %33 = vector.shape_cast %32 : vector<1x1x4x32xf32> to vector<4x32xf32>
    %34 = vector.shape_cast %31 : vector<4x32xf32> to vector<1x1x4x32xf32>
    tpu.vector_store %arg9[%c0_31, %c1, %c0_32, %c0_33], %34 {strides = array<i32>} : memref<4x5x8x32xf32, #tpu.memory_space<vmem>>, vector<1x1x4x32xf32>,
    %35 = vector.extract_strided_slice %22 {offsets = [4, 0], sizes = [4, 32], strides = [1, 1]} : vector<16x32xf32> to vector<4x32xf32>
    %c0_34 = arith.constant 0 : index
    %c1_35 = arith.constant 1 : index
    %c0_36 = arith.constant 0 : index
    %c0_37 = arith.constant 0 : index
    %36 = vector.load %arg10[%c0_34, %c1_35, %c0_36, %c0_37] : memref<4x5x8x32xf32, #tpu.memory_space<vmem>>, vector<1x1x4x32xf32>
    %37 = vector.shape_cast %36 : vector<1x1x4x32xf32> to vector<4x32xf32>
    %38 = vector.shape_cast %35 : vector<4x32xf32> to vector<1x1x4x32xf32>
    tpu.vector_store %arg10[%c0_34, %c1_35, %c0_36, %c0_37], %38 {strides = array<i32>} : memref<4x5x8x32xf32, #tpu.memory_space<vmem>>, vector<1x1x4x32xf32>,
    %39 = vector.extract_strided_slice %14 {offsets = [8, 0], sizes = [4, 32], strides = [1, 1]} : vector<16x32xf32> to vector<4x32xf32>
    %c0_38 = arith.constant 0 : index
    %c2 = arith.constant 2 : index
    %c0_39 = arith.constant 0 : index
    %c0_40 = arith.constant 0 : index
    %40 = vector.load %arg9[%c0_38, %c2, %c0_39, %c0_40] : memref<4x5x8x32xf32, #tpu.memory_space<vmem>>, vector<1x1x4x32xf32>
    %41 = vector.shape_cast %40 : vector<1x1x4x32xf32> to vector<4x32xf32>
    %42 = vector.shape_cast %39 : vector<4x32xf32> to vector<1x1x4x32xf32>
    tpu.vector_store %arg9[%c0_38, %c2, %c0_39, %c0_40], %42 {strides = array<i32>} : memref<4x5x8x32xf32, #tpu.memory_space<vmem>>, vector<1x1x4x32xf32>,
    %43 = vector.extract_strided_slice %22 {offsets = [8, 0], sizes = [4, 32], strides = [1, 1]} : vector<16x32xf32> to vector<4x32xf32>
    %c0_41 = arith.constant 0 : index
    %c2_42 = arith.constant 2 : index
    %c0_43 = arith.constant 0 : index
    %c0_44 = arith.constant 0 : index
    %44 = vector.load %arg10[%c0_41, %c2_42, %c0_43, %c0_44] : memref<4x5x8x32xf32, #tpu.memory_space<vmem>>, vector<1x1x4x32xf32>
    %45 = vector.shape_cast %44 : vector<1x1x4x32xf32> to vector<4x32xf32>
    %46 = vector.shape_cast %43 : vector<4x32xf32> to vector<1x1x4x32xf32>
    tpu.vector_store %arg10[%c0_41, %c2_42, %c0_43, %c0_44], %46 {strides = array<i32>} : memref<4x5x8x32xf32, #tpu.memory_space<vmem>>, vector<1x1x4x32xf32>,
    %47 = vector.extract_strided_slice %14 {offsets = [12, 0], sizes = [4, 32], strides = [1, 1]} : vector<16x32xf32> to vector<4x32xf32>
    %c0_45 = arith.constant 0 : index
    %c3 = arith.constant 3 : index
    %c0_46 = arith.constant 0 : index
    %c0_47 = arith.constant 0 : index
    %48 = vector.load %arg9[%c0_45, %c3, %c0_46, %c0_47] : memref<4x5x8x32xf32, #tpu.memory_space<vmem>>, vector<1x1x4x32xf32>
    %49 = vector.shape_cast %48 : vector<1x1x4x32xf32> to vector<4x32xf32>
    %50 = vector.shape_cast %47 : vector<4x32xf32> to vector<1x1x4x32xf32>
    tpu.vector_store %arg9[%c0_45, %c3, %c0_46, %c0_47], %50 {strides = array<i32>} : memref<4x5x8x32xf32, #tpu.memory_space<vmem>>, vector<1x1x4x32xf32>,
    %51 = vector.extract_strided_slice %22 {offsets = [12, 0], sizes = [4, 32], strides = [1, 1]} : vector<16x32xf32> to vector<4x32xf32>
    %c0_48 = arith.constant 0 : index
    %c3_49 = arith.constant 3 : index
    %c0_50 = arith.constant 0 : index
    %c0_51 = arith.constant 0 : index
    %52 = vector.load %arg10[%c0_48, %c3_49, %c0_50, %c0_51] : memref<4x5x8x32xf32, #tpu.memory_space<vmem>>, vector<1x1x4x32xf32>
    %53 = vector.shape_cast %52 : vector<1x1x4x32xf32> to vector<4x32xf32>
    %54 = vector.shape_cast %51 : vector<4x32xf32> to vector<1x1x4x32xf32>
    tpu.vector_store %arg10[%c0_48, %c3_49, %c0_50, %c0_51], %54 {strides = array<i32>} : memref<4x5x8x32xf32, #tpu.memory_space<vmem>>, vector<1x1x4x32xf32>,
    %c0_52 = arith.constant 0 : index
    %c1_53 = arith.constant 1 : index
    %c0_54 = arith.constant 0 : index
    %c0_55 = arith.constant 0 : index
    %55 = vector.load %arg1[%c0_52, %c1_53, %c0_54, %c0_55] : memref<1x4x16x32xbf16, #tpu.memory_space<vmem>>, vector<1x1x16x32xbf16>
    %56 = vector.shape_cast %55 : vector<1x1x16x32xbf16> to vector<16x32xbf16>
    %c0_56 = arith.constant 0 : index
    %c0_57 = arith.constant 0 : index
    %57 = vector.load %arg2[%c0_56, %c0_57] : memref<32x32xbf16, #tpu.memory_space<vmem>>, vector<32x32xbf16>
    %cst_58 = arith.constant dense<0.000000e+00> : vector<16x32xf32>
    %58 = tpu.matmul %56, %57, %cst_58 {dimension_numbers = #tpu.dot_dimension_numbers<[1], [0], [0], [1], [0, 0, 1, 1], [], []>} : vector<16x32xbf16>, vector<32x32xbf16>, vector<16x32xf32> -> vector<16x32xf32>
    %59 = vector.broadcast %4 : vector<1x32xf32> to vector<16x32xf32>
    %60 = arith.addf %58, %59 : vector<16x32xf32>
    %cst_59 = arith.constant 1.300000e+00 : f32
    %61 = vector.broadcast %cst_59 : f32 to vector<16x32xf32>
    %62 = arith.addf %60, %61 : vector<16x32xf32>
    %cst_60 = arith.constant 0.000000e+00 : f32
    %63 = vector.broadcast %cst_60 : f32 to vector<16x32xf32>
    %64 = arith.maximumf %62, %63 : vector<16x32xf32>
    %cst_61 = arith.constant 2.000000e+00 : f32
    %65 = vector.broadcast %cst_61 : f32 to vector<16x32xf32>
    %66 = arith.subf %60, %65 : vector<16x32xf32>
    %cst_62 = arith.constant 0.000000e+00 : f32
    %67 = vector.broadcast %cst_62 : f32 to vector<16x32xf32>
    %68 = arith.maximumf %66, %67 : vector<16x32xf32>
    %cst_63 = arith.constant 2.000000e-01 : f32
    %69 = vector.broadcast %cst_63 : f32 to vector<16x32xf32>
    %70 = arith.subf %68, %69 : vector<16x32xf32>
    %cst_64 = arith.constant 0.000000e+00 : f32
    %71 = vector.broadcast %cst_64 : f32 to vector<16x32xf32>
    %72 = arith.maximumf %70, %71 : vector<16x32xf32>
    %73 = vector.extract_strided_slice %64 {offsets = [0, 0], sizes = [4, 32], strides = [1, 1]} : vector<16x32xf32> to vector<4x32xf32>
    %c1_65 = arith.constant 1 : index
    %c0_66 = arith.constant 0 : index
    %c1_67 = arith.constant 1 : index
    %c0_68 = arith.constant 0 : index
    %74 = vector.load %arg9[%c1_65, %c0_66, %c1_67, %c0_68] : memref<4x5x8x32xf32, #tpu.memory_space<vmem>>, vector<1x1x4x32xf32>
    %75 = vector.shape_cast %74 : vector<1x1x4x32xf32> to vector<4x32xf32>
    %76 = vector.shape_cast %73 : vector<4x32xf32> to vector<1x1x4x32xf32>
    tpu.vector_store %arg9[%c1_65, %c0_66, %c1_67, %c0_68], %76 {strides = array<i32>} : memref<4x5x8x32xf32, #tpu.memory_space<vmem>>, vector<1x1x4x32xf32>,
    %77 = vector.extract_strided_slice %72 {offsets = [0, 0], sizes = [4, 32], strides = [1, 1]} : vector<16x32xf32> to vector<4x32xf32>
    %c1_69 = arith.constant 1 : index
    %c0_70 = arith.constant 0 : index
    %c1_71 = arith.constant 1 : index
    %c0_72 = arith.constant 0 : index
    %78 = vector.load %arg10[%c1_69, %c0_70, %c1_71, %c0_72] : memref<4x5x8x32xf32, #tpu.memory_space<vmem>>, vector<1x1x4x32xf32>
    %79 = vector.shape_cast %78 : vector<1x1x4x32xf32> to vector<4x32xf32>
    %80 = vector.shape_cast %77 : vector<4x32xf32> to vector<1x1x4x32xf32>
    tpu.vector_store %arg10[%c1_69, %c0_70, %c1_71, %c0_72], %80 {strides = array<i32>} : memref<4x5x8x32xf32, #tpu.memory_space<vmem>>, vector<1x1x4x32xf32>,
    %81 = vector.extract_strided_slice %64 {offsets = [4, 0], sizes = [4, 32], strides = [1, 1]} : vector<16x32xf32> to vector<4x32xf32>
    %c1_73 = arith.constant 1 : index
    %c1_74 = arith.constant 1 : index
    %c1_75 = arith.constant 1 : index
    %c0_76 = arith.constant 0 : index
    %82 = vector.load %arg9[%c1_73, %c1_74, %c1_75, %c0_76] : memref<4x5x8x32xf32, #tpu.memory_space<vmem>>, vector<1x1x4x32xf32>
    %83 = vector.shape_cast %82 : vector<1x1x4x32xf32> to vector<4x32xf32>
    %84 = vector.shape_cast %81 : vector<4x32xf32> to vector<1x1x4x32xf32>
    tpu.vector_store %arg9[%c1_73, %c1_74, %c1_75, %c0_76], %84 {strides = array<i32>} : memref<4x5x8x32xf32, #tpu.memory_space<vmem>>, vector<1x1x4x32xf32>,
    %85 = vector.extract_strided_slice %72 {offsets = [4, 0], sizes = [4, 32], strides = [1, 1]} : vector<16x32xf32> to vector<4x32xf32>
    %c1_77 = arith.constant 1 : index
    %c1_78 = arith.constant 1 : index
    %c1_79 = arith.constant 1 : index
    %c0_80 = arith.constant 0 : index
    %86 = vector.load %arg10[%c1_77, %c1_78, %c1_79, %c0_80] : memref<4x5x8x32xf32, #tpu.memory_space<vmem>>, vector<1x1x4x32xf32>
    %87 = vector.shape_cast %86 : vector<1x1x4x32xf32> to vector<4x32xf32>
    %88 = vector.shape_cast %85 : vector<4x32xf32> to vector<1x1x4x32xf32>
    tpu.vector_store %arg10[%c1_77, %c1_78, %c1_79, %c0_80], %88 {strides = array<i32>} : memref<4x5x8x32xf32, #tpu.memory_space<vmem>>, vector<1x1x4x32xf32>,
    %89 = vector.extract_strided_slice %64 {offsets = [8, 0], sizes = [4, 32], strides = [1, 1]} : vector<16x32xf32> to vector<4x32xf32>
    %c1_81 = arith.constant 1 : index
    %c2_82 = arith.constant 2 : index
    %c1_83 = arith.constant 1 : index
    %c0_84 = arith.constant 0 : index
    %90 = vector.load %arg9[%c1_81, %c2_82, %c1_83, %c0_84] : memref<4x5x8x32xf32, #tpu.memory_space<vmem>>, vector<1x1x4x32xf32>
    %91 = vector.shape_cast %90 : vector<1x1x4x32xf32> to vector<4x32xf32>
    %92 = vector.shape_cast %89 : vector<4x32xf32> to vector<1x1x4x32xf32>
    tpu.vector_store %arg9[%c1_81, %c2_82, %c1_83, %c0_84], %92 {strides = array<i32>} : memref<4x5x8x32xf32, #tpu.memory_space<vmem>>, vector<1x1x4x32xf32>,
    %93 = vector.extract_strided_slice %72 {offsets = [8, 0], sizes = [4, 32], strides = [1, 1]} : vector<16x32xf32> to vector<4x32xf32>
    %c1_85 = arith.constant 1 : index
    %c2_86 = arith.constant 2 : index
    %c1_87 = arith.constant 1 : index
    %c0_88 = arith.constant 0 : index
    %94 = vector.load %arg10[%c1_85, %c2_86, %c1_87, %c0_88] : memref<4x5x8x32xf32, #tpu.memory_space<vmem>>, vector<1x1x4x32xf32>
    %95 = vector.shape_cast %94 : vector<1x1x4x32xf32> to vector<4x32xf32>
    %96 = vector.shape_cast %93 : vector<4x32xf32> to vector<1x1x4x32xf32>
    tpu.vector_store %arg10[%c1_85, %c2_86, %c1_87, %c0_88], %96 {strides = array<i32>} : memref<4x5x8x32xf32, #tpu.memory_space<vmem>>, vector<1x1x4x32xf32>,
    %97 = vector.extract_strided_slice %64 {offsets = [12, 0], sizes = [4, 32], strides = [1, 1]} : vector<16x32xf32> to vector<4x32xf32>
    %c1_89 = arith.constant 1 : index
    %c3_90 = arith.constant 3 : index
    %c1_91 = arith.constant 1 : index
    %c0_92 = arith.constant 0 : index
    %98 = vector.load %arg9[%c1_89, %c3_90, %c1_91, %c0_92] : memref<4x5x8x32xf32, #tpu.memory_space<vmem>>, vector<1x1x4x32xf32>
    %99 = vector.shape_cast %98 : vector<1x1x4x32xf32> to vector<4x32xf32>
    %100 = vector.shape_cast %97 : vector<4x32xf32> to vector<1x1x4x32xf32>
    tpu.vector_store %arg9[%c1_89, %c3_90, %c1_91, %c0_92], %100 {strides = array<i32>} : memref<4x5x8x32xf32, #tpu.memory_space<vmem>>, vector<1x1x4x32xf32>,
    %101 = vector.extract_strided_slice %72 {offsets = [12, 0], sizes = [4, 32], strides = [1, 1]} : vector<16x32xf32> to vector<4x32xf32>
    %c1_93 = arith.constant 1 : index
    %c3_94 = arith.constant 3 : index
    %c1_95 = arith.constant 1 : index
    %c0_96 = arith.constant 0 : index
    %102 = vector.load %arg10[%c1_93, %c3_94, %c1_95, %c0_96] : memref<4x5x8x32xf32, #tpu.memory_space<vmem>>, vector<1x1x4x32xf32>
    %103 = vector.shape_cast %102 : vector<1x1x4x32xf32> to vector<4x32xf32>
    %104 = vector.shape_cast %101 : vector<4x32xf32> to vector<1x1x4x32xf32>
    tpu.vector_store %arg10[%c1_93, %c3_94, %c1_95, %c0_96], %104 {strides = array<i32>} : memref<4x5x8x32xf32, #tpu.memory_space<vmem>>, vector<1x1x4x32xf32>,
    %c0_97 = arith.constant 0 : index
    %c2_98 = arith.constant 2 : index
    %c0_99 = arith.constant 0 : index
    %c0_100 = arith.constant 0 : index
    %105 = vector.load %arg1[%c0_97, %c2_98, %c0_99, %c0_100] : memref<1x4x16x32xbf16, #tpu.memory_space<vmem>>, vector<1x1x16x32xbf16>
    %106 = vector.shape_cast %105 : vector<1x1x16x32xbf16> to vector<16x32xbf16>
    %c0_101 = arith.constant 0 : index
    %c0_102 = arith.constant 0 : index
    %107 = vector.load %arg2[%c0_101, %c0_102] : memref<32x32xbf16, #tpu.memory_space<vmem>>, vector<32x32xbf16>
    %cst_103 = arith.constant dense<0.000000e+00> : vector<16x32xf32>
    %108 = tpu.matmul %106, %107, %cst_103 {dimension_numbers = #tpu.dot_dimension_numbers<[1], [0], [0], [1], [0, 0, 1, 1], [], []>} : vector<16x32xbf16>, vector<32x32xbf16>, vector<16x32xf32> -> vector<16x32xf32>
    %109 = vector.broadcast %4 : vector<1x32xf32> to vector<16x32xf32>
    %110 = arith.addf %108, %109 : vector<16x32xf32>
    %cst_104 = arith.constant 1.300000e+00 : f32
    %111 = vector.broadcast %cst_104 : f32 to vector<16x32xf32>
    %112 = arith.addf %110, %111 : vector<16x32xf32>
    %cst_105 = arith.constant 0.000000e+00 : f32
    %113 = vector.broadcast %cst_105 : f32 to vector<16x32xf32>
    %114 = arith.maximumf %112, %113 : vector<16x32xf32>
    %cst_106 = arith.constant 2.000000e+00 : f32
    %115 = vector.broadcast %cst_106 : f32 to vector<16x32xf32>
    %116 = arith.subf %110, %115 : vector<16x32xf32>
    %cst_107 = arith.constant 0.000000e+00 : f32
    %117 = vector.broadcast %cst_107 : f32 to vector<16x32xf32>
    %118 = arith.maximumf %116, %117 : vector<16x32xf32>
    %cst_108 = arith.constant 2.000000e-01 : f32
    %119 = vector.broadcast %cst_108 : f32 to vector<16x32xf32>
    %120 = arith.subf %118, %119 : vector<16x32xf32>
    %cst_109 = arith.constant 0.000000e+00 : f32
    %121 = vector.broadcast %cst_109 : f32 to vector<16x32xf32>
    %122 = arith.maximumf %120, %121 : vector<16x32xf32>
    %123 = vector.extract_strided_slice %114 {offsets = [0, 0], sizes = [4, 32], strides = [1, 1]} : vector<16x32xf32> to vector<4x32xf32>
    %c2_110 = arith.constant 2 : index
    %c1_111 = arith.constant 1 : index
    %c0_112 = arith.constant 0 : index
    %c0_113 = arith.constant 0 : index
    %124 = vector.load %arg9[%c2_110, %c1_111, %c0_112, %c0_113] : memref<4x5x8x32xf32, #tpu.memory_space<vmem>>, vector<1x1x4x32xf32>
    %125 = vector.shape_cast %124 : vector<1x1x4x32xf32> to vector<4x32xf32>
    %126 = vector.shape_cast %123 : vector<4x32xf32> to vector<1x1x4x32xf32>
    tpu.vector_store %arg9[%c2_110, %c1_111, %c0_112, %c0_113], %126 {strides = array<i32>} : memref<4x5x8x32xf32, #tpu.memory_space<vmem>>, vector<1x1x4x32xf32>,
    %127 = vector.extract_strided_slice %122 {offsets = [0, 0], sizes = [4, 32], strides = [1, 1]} : vector<16x32xf32> to vector<4x32xf32>
    %c2_114 = arith.constant 2 : index
    %c1_115 = arith.constant 1 : index
    %c0_116 = arith.constant 0 : index
    %c0_117 = arith.constant 0 : index
    %128 = vector.load %arg10[%c2_114, %c1_115, %c0_116, %c0_117] : memref<4x5x8x32xf32, #tpu.memory_space<vmem>>, vector<1x1x4x32xf32>
    %129 = vector.shape_cast %128 : vector<1x1x4x32xf32> to vector<4x32xf32>
    %130 = vector.shape_cast %127 : vector<4x32xf32> to vector<1x1x4x32xf32>
    tpu.vector_store %arg10[%c2_114, %c1_115, %c0_116, %c0_117], %130 {strides = array<i32>} : memref<4x5x8x32xf32, #tpu.memory_space<vmem>>, vector<1x1x4x32xf32>,
    %131 = vector.extract_strided_slice %114 {offsets = [4, 0], sizes = [4, 32], strides = [1, 1]} : vector<16x32xf32> to vector<4x32xf32>
    %c2_118 = arith.constant 2 : index
    %c2_119 = arith.constant 2 : index
    %c0_120 = arith.constant 0 : index
    %c0_121 = arith.constant 0 : index
    %132 = vector.load %arg9[%c2_118, %c2_119, %c0_120, %c0_121] : memref<4x5x8x32xf32, #tpu.memory_space<vmem>>, vector<1x1x4x32xf32>
    %133 = vector.shape_cast %132 : vector<1x1x4x32xf32> to vector<4x32xf32>
    %134 = vector.shape_cast %131 : vector<4x32xf32> to vector<1x1x4x32xf32>
    tpu.vector_store %arg9[%c2_118, %c2_119, %c0_120, %c0_121], %134 {strides = array<i32>} : memref<4x5x8x32xf32, #tpu.memory_space<vmem>>, vector<1x1x4x32xf32>,
    %135 = vector.extract_strided_slice %122 {offsets = [4, 0], sizes = [4, 32], strides = [1, 1]} : vector<16x32xf32> to vector<4x32xf32>
    %c2_122 = arith.constant 2 : index
    %c2_123 = arith.constant 2 : index
    %c0_124 = arith.constant 0 : index
    %c0_125 = arith.constant 0 : index
    %136 = vector.load %arg10[%c2_122, %c2_123, %c0_124, %c0_125] : memref<4x5x8x32xf32, #tpu.memory_space<vmem>>, vector<1x1x4x32xf32>
    %137 = vector.shape_cast %136 : vector<1x1x4x32xf32> to vector<4x32xf32>
    %138 = vector.shape_cast %135 : vector<4x32xf32> to vector<1x1x4x32xf32>
    tpu.vector_store %arg10[%c2_122, %c2_123, %c0_124, %c0_125], %138 {strides = array<i32>} : memref<4x5x8x32xf32, #tpu.memory_space<vmem>>, vector<1x1x4x32xf32>,
    %139 = vector.extract_strided_slice %114 {offsets = [8, 0], sizes = [4, 32], strides = [1, 1]} : vector<16x32xf32> to vector<4x32xf32>
    %c2_126 = arith.constant 2 : index
    %c3_127 = arith.constant 3 : index
    %c0_128 = arith.constant 0 : index
    %c0_129 = arith.constant 0 : index
    %140 = vector.load %arg9[%c2_126, %c3_127, %c0_128, %c0_129] : memref<4x5x8x32xf32, #tpu.memory_space<vmem>>, vector<1x1x4x32xf32>
    %141 = vector.shape_cast %140 : vector<1x1x4x32xf32> to vector<4x32xf32>
    %142 = vector.shape_cast %139 : vector<4x32xf32> to vector<1x1x4x32xf32>
    tpu.vector_store %arg9[%c2_126, %c3_127, %c0_128, %c0_129], %142 {strides = array<i32>} : memref<4x5x8x32xf32, #tpu.memory_space<vmem>>, vector<1x1x4x32xf32>,
    %143 = vector.extract_strided_slice %122 {offsets = [8, 0], sizes = [4, 32], strides = [1, 1]} : vector<16x32xf32> to vector<4x32xf32>
    %c2_130 = arith.constant 2 : index
    %c3_131 = arith.constant 3 : index
    %c0_132 = arith.constant 0 : index
    %c0_133 = arith.constant 0 : index
    %144 = vector.load %arg10[%c2_130, %c3_131, %c0_132, %c0_133] : memref<4x5x8x32xf32, #tpu.memory_space<vmem>>, vector<1x1x4x32xf32>
    %145 = vector.shape_cast %144 : vector<1x1x4x32xf32> to vector<4x32xf32>
    %146 = vector.shape_cast %143 : vector<4x32xf32> to vector<1x1x4x32xf32>
    tpu.vector_store %arg10[%c2_130, %c3_131, %c0_132, %c0_133], %146 {strides = array<i32>} : memref<4x5x8x32xf32, #tpu.memory_space<vmem>>, vector<1x1x4x32xf32>,
    %147 = vector.extract_strided_slice %114 {offsets = [12, 0], sizes = [4, 32], strides = [1, 1]} : vector<16x32xf32> to vector<4x32xf32>
    %c2_134 = arith.constant 2 : index
    %c4 = arith.constant 4 : index
    %c0_135 = arith.constant 0 : index
    %c0_136 = arith.constant 0 : index
    %148 = vector.load %arg9[%c2_134, %c4, %c0_135, %c0_136] : memref<4x5x8x32xf32, #tpu.memory_space<vmem>>, vector<1x1x4x32xf32>
    %149 = vector.shape_cast %148 : vector<1x1x4x32xf32> to vector<4x32xf32>
    %150 = vector.shape_cast %147 : vector<4x32xf32> to vector<1x1x4x32xf32>
    tpu.vector_store %arg9[%c2_134, %c4, %c0_135, %c0_136], %150 {strides = array<i32>} : memref<4x5x8x32xf32, #tpu.memory_space<vmem>>, vector<1x1x4x32xf32>,
    %151 = vector.extract_strided_slice %122 {offsets = [12, 0], sizes = [4, 32], strides = [1, 1]} : vector<16x32xf32> to vector<4x32xf32>
    %c2_137 = arith.constant 2 : index
    %c4_138 = arith.constant 4 : index
    %c0_139 = arith.constant 0 : index
    %c0_140 = arith.constant 0 : index
    %152 = vector.load %arg10[%c2_137, %c4_138, %c0_139, %c0_140] : memref<4x5x8x32xf32, #tpu.memory_space<vmem>>, vector<1x1x4x32xf32>
    %153 = vector.shape_cast %152 : vector<1x1x4x32xf32> to vector<4x32xf32>
    %154 = vector.shape_cast %151 : vector<4x32xf32> to vector<1x1x4x32xf32>
    tpu.vector_store %arg10[%c2_137, %c4_138, %c0_139, %c0_140], %154 {strides = array<i32>} : memref<4x5x8x32xf32, #tpu.memory_space<vmem>>, vector<1x1x4x32xf32>,
    %c0_141 = arith.constant 0 : index
    %c3_142 = arith.constant 3 : index
    %c0_143 = arith.constant 0 : index
    %c0_144 = arith.constant 0 : index
    %155 = vector.load %arg1[%c0_141, %c3_142, %c0_143, %c0_144] : memref<1x4x16x32xbf16, #tpu.memory_space<vmem>>, vector<1x1x16x32xbf16>
    %156 = vector.shape_cast %155 : vector<1x1x16x32xbf16> to vector<16x32xbf16>
    %c0_145 = arith.constant 0 : index
    %c0_146 = arith.constant 0 : index
    %157 = vector.load %arg2[%c0_145, %c0_146] : memref<32x32xbf16, #tpu.memory_space<vmem>>, vector<32x32xbf16>
    %cst_147 = arith.constant dense<0.000000e+00> : vector<16x32xf32>
    %158 = tpu.matmul %156, %157, %cst_147 {dimension_numbers = #tpu.dot_dimension_numbers<[1], [0], [0], [1], [0, 0, 1, 1], [], []>} : vector<16x32xbf16>, vector<32x32xbf16>, vector<16x32xf32> -> vector<16x32xf32>
    %159 = vector.broadcast %4 : vector<1x32xf32> to vector<16x32xf32>
    %160 = arith.addf %158, %159 : vector<16x32xf32>
    %cst_148 = arith.constant 1.300000e+00 : f32
    %161 = vector.broadcast %cst_148 : f32 to vector<16x32xf32>
    %162 = arith.addf %160, %161 : vector<16x32xf32>
    %cst_149 = arith.constant 0.000000e+00 : f32
    %163 = vector.broadcast %cst_149 : f32 to vector<16x32xf32>
    %164 = arith.maximumf %162, %163 : vector<16x32xf32>
    %cst_150 = arith.constant 2.000000e+00 : f32
    %165 = vector.broadcast %cst_150 : f32 to vector<16x32xf32>
    %166 = arith.subf %160, %165 : vector<16x32xf32>
    %cst_151 = arith.constant 0.000000e+00 : f32
    %167 = vector.broadcast %cst_151 : f32 to vector<16x32xf32>
    %168 = arith.maximumf %166, %167 : vector<16x32xf32>
    %cst_152 = arith.constant 2.000000e-01 : f32
    %169 = vector.broadcast %cst_152 : f32 to vector<16x32xf32>
    %170 = arith.subf %168, %169 : vector<16x32xf32>
    %cst_153 = arith.constant 0.000000e+00 : f32
    %171 = vector.broadcast %cst_153 : f32 to vector<16x32xf32>
    %172 = arith.maximumf %170, %171 : vector<16x32xf32>
    %173 = vector.extract_strided_slice %164 {offsets = [0, 0], sizes = [4, 32], strides = [1, 1]} : vector<16x32xf32> to vector<4x32xf32>
    %c3_154 = arith.constant 3 : index
    %c1_155 = arith.constant 1 : index
    %c1_156 = arith.constant 1 : index
    %c0_157 = arith.constant 0 : index
    %174 = vector.load %arg9[%c3_154, %c1_155, %c1_156, %c0_157] : memref<4x5x8x32xf32, #tpu.memory_space<vmem>>, vector<1x1x4x32xf32>
    %175 = vector.shape_cast %174 : vector<1x1x4x32xf32> to vector<4x32xf32>
    %176 = vector.shape_cast %173 : vector<4x32xf32> to vector<1x1x4x32xf32>
    tpu.vector_store %arg9[%c3_154, %c1_155, %c1_156, %c0_157], %176 {strides = array<i32>} : memref<4x5x8x32xf32, #tpu.memory_space<vmem>>, vector<1x1x4x32xf32>,
    %177 = vector.extract_strided_slice %172 {offsets = [0, 0], sizes = [4, 32], strides = [1, 1]} : vector<16x32xf32> to vector<4x32xf32>
    %c3_158 = arith.constant 3 : index
    %c1_159 = arith.constant 1 : index
    %c1_160 = arith.constant 1 : index
    %c0_161 = arith.constant 0 : index
    %178 = vector.load %arg10[%c3_158, %c1_159, %c1_160, %c0_161] : memref<4x5x8x32xf32, #tpu.memory_space<vmem>>, vector<1x1x4x32xf32>
    %179 = vector.shape_cast %178 : vector<1x1x4x32xf32> to vector<4x32xf32>
    %180 = vector.shape_cast %177 : vector<4x32xf32> to vector<1x1x4x32xf32>
    tpu.vector_store %arg10[%c3_158, %c1_159, %c1_160, %c0_161], %180 {strides = array<i32>} : memref<4x5x8x32xf32, #tpu.memory_space<vmem>>, vector<1x1x4x32xf32>,
    %181 = vector.extract_strided_slice %164 {offsets = [4, 0], sizes = [4, 32], strides = [1, 1]} : vector<16x32xf32> to vector<4x32xf32>
    %c3_162 = arith.constant 3 : index
    %c2_163 = arith.constant 2 : index
    %c1_164 = arith.constant 1 : index
    %c0_165 = arith.constant 0 : index
    %182 = vector.load %arg9[%c3_162, %c2_163, %c1_164, %c0_165] : memref<4x5x8x32xf32, #tpu.memory_space<vmem>>, vector<1x1x4x32xf32>
    %183 = vector.shape_cast %182 : vector<1x1x4x32xf32> to vector<4x32xf32>
    %184 = vector.shape_cast %181 : vector<4x32xf32> to vector<1x1x4x32xf32>
    tpu.vector_store %arg9[%c3_162, %c2_163, %c1_164, %c0_165], %184 {strides = array<i32>} : memref<4x5x8x32xf32, #tpu.memory_space<vmem>>, vector<1x1x4x32xf32>,
    %185 = vector.extract_strided_slice %172 {offsets = [4, 0], sizes = [4, 32], strides = [1, 1]} : vector<16x32xf32> to vector<4x32xf32>
    %c3_166 = arith.constant 3 : index
    %c2_167 = arith.constant 2 : index
    %c1_168 = arith.constant 1 : index
    %c0_169 = arith.constant 0 : index
    %186 = vector.load %arg10[%c3_166, %c2_167, %c1_168, %c0_169] : memref<4x5x8x32xf32, #tpu.memory_space<vmem>>, vector<1x1x4x32xf32>
    %187 = vector.shape_cast %186 : vector<1x1x4x32xf32> to vector<4x32xf32>
    %188 = vector.shape_cast %185 : vector<4x32xf32> to vector<1x1x4x32xf32>
    tpu.vector_store %arg10[%c3_166, %c2_167, %c1_168, %c0_169], %188 {strides = array<i32>} : memref<4x5x8x32xf32, #tpu.memory_space<vmem>>, vector<1x1x4x32xf32>,
    %189 = vector.extract_strided_slice %164 {offsets = [8, 0], sizes = [4, 32], strides = [1, 1]} : vector<16x32xf32> to vector<4x32xf32>
    %c3_170 = arith.constant 3 : index
    %c3_171 = arith.constant 3 : index
    %c1_172 = arith.constant 1 : index
    %c0_173 = arith.constant 0 : index
    %190 = vector.load %arg9[%c3_170, %c3_171, %c1_172, %c0_173] : memref<4x5x8x32xf32, #tpu.memory_space<vmem>>, vector<1x1x4x32xf32>
    %191 = vector.shape_cast %190 : vector<1x1x4x32xf32> to vector<4x32xf32>
    %192 = vector.shape_cast %189 : vector<4x32xf32> to vector<1x1x4x32xf32>
    tpu.vector_store %arg9[%c3_170, %c3_171, %c1_172, %c0_173], %192 {strides = array<i32>} : memref<4x5x8x32xf32, #tpu.memory_space<vmem>>, vector<1x1x4x32xf32>,
    %193 = vector.extract_strided_slice %172 {offsets = [8, 0], sizes = [4, 32], strides = [1, 1]} : vector<16x32xf32> to vector<4x32xf32>
    %c3_174 = arith.constant 3 : index
    %c3_175 = arith.constant 3 : index
    %c1_176 = arith.constant 1 : index
    %c0_177 = arith.constant 0 : index
    %194 = vector.load %arg10[%c3_174, %c3_175, %c1_176, %c0_177] : memref<4x5x8x32xf32, #tpu.memory_space<vmem>>, vector<1x1x4x32xf32>
    %195 = vector.shape_cast %194 : vector<1x1x4x32xf32> to vector<4x32xf32>
    %196 = vector.shape_cast %193 : vector<4x32xf32> to vector<1x1x4x32xf32>
    tpu.vector_store %arg10[%c3_174, %c3_175, %c1_176, %c0_177], %196 {strides = array<i32>} : memref<4x5x8x32xf32, #tpu.memory_space<vmem>>, vector<1x1x4x32xf32>,
    %197 = vector.extract_strided_slice %164 {offsets = [12, 0], sizes = [4, 32], strides = [1, 1]} : vector<16x32xf32> to vector<4x32xf32>
    %c3_178 = arith.constant 3 : index
    %c4_179 = arith.constant 4 : index
    %c1_180 = arith.constant 1 : index
    %c0_181 = arith.constant 0 : index
    %198 = vector.load %arg9[%c3_178, %c4_179, %c1_180, %c0_181] : memref<4x5x8x32xf32, #tpu.memory_space<vmem>>, vector<1x1x4x32xf32>
    %199 = vector.shape_cast %198 : vector<1x1x4x32xf32> to vector<4x32xf32>
    %200 = vector.shape_cast %197 : vector<4x32xf32> to vector<1x1x4x32xf32>
    tpu.vector_store %arg9[%c3_178, %c4_179, %c1_180, %c0_181], %200 {strides = array<i32>} : memref<4x5x8x32xf32, #tpu.memory_space<vmem>>, vector<1x1x4x32xf32>,
    %201 = vector.extract_strided_slice %172 {offsets = [12, 0], sizes = [4, 32], strides = [1, 1]} : vector<16x32xf32> to vector<4x32xf32>
    %c3_182 = arith.constant 3 : index
    %c4_183 = arith.constant 4 : index
    %c1_184 = arith.constant 1 : index
    %c0_185 = arith.constant 0 : index
    %202 = vector.load %arg10[%c3_182, %c4_183, %c1_184, %c0_185] : memref<4x5x8x32xf32, #tpu.memory_space<vmem>>, vector<1x1x4x32xf32>
    %203 = vector.shape_cast %202 : vector<1x1x4x32xf32> to vector<4x32xf32>
    %204 = vector.shape_cast %201 : vector<4x32xf32> to vector<1x1x4x32xf32>
    tpu.vector_store %arg10[%c3_182, %c4_183, %c1_184, %c0_185], %204 {strides = array<i32>} : memref<4x5x8x32xf32, #tpu.memory_space<vmem>>, vector<1x1x4x32xf32>,
    %c0_186 = arith.constant 0 : index
    %c0_187 = arith.constant 0 : index
    %205 = vector.load %arg6[%c0_186, %c0_187] : memref<1x32xf32, #tpu.memory_space<vmem>>, vector<1x32xf32>
    %cst_188 = arith.constant 0.000000e+00 : f32
    %206 = vector.broadcast %cst_188 : f32 to vector<4x32xf32>
    %c3_189 = arith.constant 3 : index
    %c0_190 = arith.constant 0 : index
    %c0_191 = arith.constant 0 : index
    %c0_192 = arith.constant 0 : index
    %207 = vector.load %arg9[%c3_189, %c0_190, %c0_191, %c0_192] : memref<4x5x8x32xf32, #tpu.memory_space<vmem>>, vector<1x1x4x32xf32>
    %208 = vector.shape_cast %207 : vector<1x1x4x32xf32> to vector<4x32xf32>
    %c3_193 = arith.constant 3 : index
    %c0_194 = arith.constant 0 : index
    %c0_195 = arith.constant 0 : index
    %c0_196 = arith.constant 0 : index
    %209 = vector.load %arg10[%c3_193, %c0_194, %c0_195, %c0_196] : memref<4x5x8x32xf32, #tpu.memory_space<vmem>>, vector<1x1x4x32xf32>
    %210 = vector.shape_cast %209 : vector<1x1x4x32xf32> to vector<4x32xf32>
    %211 = arith.truncf %208 : vector<4x32xf32> to vector<4x32xbf16>
    %c0_197 = arith.constant 0 : index
    %c0_198 = arith.constant 0 : index
    %c0_199 = arith.constant 0 : index
    %212 = vector.load %arg4[%c0_197, %c0_198, %c0_199] : memref<9x32x32xbf16, #tpu.memory_space<vmem>>, vector<1x32x32xbf16>
    %213 = vector.shape_cast %212 : vector<1x32x32xbf16> to vector<32x32xbf16>
    %cst_200 = arith.constant dense<0.000000e+00> : vector<4x32xf32>
    %214 = tpu.matmul %211, %213, %cst_200 {dimension_numbers = #tpu.dot_dimension_numbers<[1], [0], [0], [1], [0, 0, 1, 1], [], []>} : vector<4x32xbf16>, vector<32x32xbf16>, vector<4x32xf32> -> vector<4x32xf32>
    %215 = arith.addf %206, %214 : vector<4x32xf32>
    %216 = arith.truncf %210 : vector<4x32xf32> to vector<4x32xbf16>
    %c0_201 = arith.constant 0 : index
    %c0_202 = arith.constant 0 : index
    %c0_203 = arith.constant 0 : index
    %217 = vector.load %arg5[%c0_201, %c0_202, %c0_203] : memref<9x32x32xbf16, #tpu.memory_space<vmem>>, vector<1x32x32xbf16>
    %218 = vector.shape_cast %217 : vector<1x32x32xbf16> to vector<32x32xbf16>
    %cst_204 = arith.constant dense<0.000000e+00> : vector<4x32xf32>
    %219 = tpu.matmul %216, %218, %cst_204 {dimension_numbers = #tpu.dot_dimension_numbers<[1], [0], [0], [1], [0, 0, 1, 1], [], []>} : vector<4x32xbf16>, vector<32x32xbf16>, vector<4x32xf32> -> vector<4x32xf32>
    %220 = arith.addf %215, %219 : vector<4x32xf32>
    %c2_205 = arith.constant 2 : index
    %c0_206 = arith.constant 0 : index
    %c0_207 = arith.constant 0 : index
    %c0_208 = arith.constant 0 : index
    %221 = vector.load %arg9[%c2_205, %c0_206, %c0_207, %c0_208] : memref<4x5x8x32xf32, #tpu.memory_space<vmem>>, vector<1x1x4x32xf32>
    %222 = vector.shape_cast %221 : vector<1x1x4x32xf32> to vector<4x32xf32>
    %c2_209 = arith.constant 2 : index
    %c0_210 = arith.constant 0 : index
    %c0_211 = arith.constant 0 : index
    %c0_212 = arith.constant 0 : index
    %223 = vector.load %arg10[%c2_209, %c0_210, %c0_211, %c0_212] : memref<4x5x8x32xf32, #tpu.memory_space<vmem>>, vector<1x1x4x32xf32>
    %224 = vector.shape_cast %223 : vector<1x1x4x32xf32> to vector<4x32xf32>
    %225 = arith.truncf %222 : vector<4x32xf32> to vector<4x32xbf16>
    %c1_213 = arith.constant 1 : index
    %c0_214 = arith.constant 0 : index
    %c0_215 = arith.constant 0 : index
    %226 = vector.load %arg4[%c1_213, %c0_214, %c0_215] : memref<9x32x32xbf16, #tpu.memory_space<vmem>>, vector<1x32x32xbf16>
    %227 = vector.shape_cast %226 : vector<1x32x32xbf16> to vector<32x32xbf16>
    %cst_216 = arith.constant dense<0.000000e+00> : vector<4x32xf32>
    %228 = tpu.matmul %225, %227, %cst_216 {dimension_numbers = #tpu.dot_dimension_numbers<[1], [0], [0], [1], [0, 0, 1, 1], [], []>} : vector<4x32xbf16>, vector<32x32xbf16>, vector<4x32xf32> -> vector<4x32xf32>
    %229 = arith.addf %220, %228 : vector<4x32xf32>
    %230 = arith.truncf %224 : vector<4x32xf32> to vector<4x32xbf16>
    %c1_217 = arith.constant 1 : index
    %c0_218 = arith.constant 0 : index
    %c0_219 = arith.constant 0 : index
    %231 = vector.load %arg5[%c1_217, %c0_218, %c0_219] : memref<9x32x32xbf16, #tpu.memory_space<vmem>>, vector<1x32x32xbf16>
    %232 = vector.shape_cast %231 : vector<1x32x32xbf16> to vector<32x32xbf16>
    %cst_220 = arith.constant dense<0.000000e+00> : vector<4x32xf32>
    %233 = tpu.matmul %230, %232, %cst_220 {dimension_numbers = #tpu.dot_dimension_numbers<[1], [0], [0], [1], [0, 0, 1, 1], [], []>} : vector<4x32xbf16>, vector<32x32xbf16>, vector<4x32xf32> -> vector<4x32xf32>
    %234 = arith.addf %229, %233 : vector<4x32xf32>
    %c3_221 = arith.constant 3 : index
    %c0_222 = arith.constant 0 : index
    %c1_223 = arith.constant 1 : index
    %c0_224 = arith.constant 0 : index
    %235 = vector.load %arg9[%c3_221, %c0_222, %c1_223, %c0_224] : memref<4x5x8x32xf32, #tpu.memory_space<vmem>>, vector<1x1x4x32xf32>
    %236 = vector.shape_cast %235 : vector<1x1x4x32xf32> to vector<4x32xf32>
    %c3_225 = arith.constant 3 : index
    %c0_226 = arith.constant 0 : index
    %c1_227 = arith.constant 1 : index
    %c0_228 = arith.constant 0 : index
    %237 = vector.load %arg10[%c3_225, %c0_226, %c1_227, %c0_228] : memref<4x5x8x32xf32, #tpu.memory_space<vmem>>, vector<1x1x4x32xf32>
    %238 = vector.shape_cast %237 : vector<1x1x4x32xf32> to vector<4x32xf32>
    %239 = arith.truncf %236 : vector<4x32xf32> to vector<4x32xbf16>
    %c2_229 = arith.constant 2 : index
    %c0_230 = arith.constant 0 : index
    %c0_231 = arith.constant 0 : index
    %240 = vector.load %arg4[%c2_229, %c0_230, %c0_231] : memref<9x32x32xbf16, #tpu.memory_space<vmem>>, vector<1x32x32xbf16>
    %241 = vector.shape_cast %240 : vector<1x32x32xbf16> to vector<32x32xbf16>
    %cst_232 = arith.constant dense<0.000000e+00> : vector<4x32xf32>
    %242 = tpu.matmul %239, %241, %cst_232 {dimension_numbers = #tpu.dot_dimension_numbers<[1], [0], [0], [1], [0, 0, 1, 1], [], []>} : vector<4x32xbf16>, vector<32x32xbf16>, vector<4x32xf32> -> vector<4x32xf32>
    %243 = arith.addf %234, %242 : vector<4x32xf32>
    %244 = arith.truncf %238 : vector<4x32xf32> to vector<4x32xbf16>
    %c2_233 = arith.constant 2 : index
    %c0_234 = arith.constant 0 : index
    %c0_235 = arith.constant 0 : index
    %245 = vector.load %arg5[%c2_233, %c0_234, %c0_235] : memref<9x32x32xbf16, #tpu.memory_space<vmem>>, vector<1x32x32xbf16>
    %246 = vector.shape_cast %245 : vector<1x32x32xbf16> to vector<32x32xbf16>
    %cst_236 = arith.constant dense<0.000000e+00> : vector<4x32xf32>
    %247 = tpu.matmul %244, %246, %cst_236 {dimension_numbers = #tpu.dot_dimension_numbers<[1], [0], [0], [1], [0, 0, 1, 1], [], []>} : vector<4x32xbf16>, vector<32x32xbf16>, vector<4x32xf32> -> vector<4x32xf32>
    %248 = arith.addf %243, %247 : vector<4x32xf32>
    %c1_237 = arith.constant 1 : index
    %c0_238 = arith.constant 0 : index
    %c0_239 = arith.constant 0 : index
    %c0_240 = arith.constant 0 : index
    %249 = vector.load %arg9[%c1_237, %c0_238, %c0_239, %c0_240] : memref<4x5x8x32xf32, #tpu.memory_space<vmem>>, vector<1x1x4x32xf32>
    %250 = vector.shape_cast %249 : vector<1x1x4x32xf32> to vector<4x32xf32>
    %c1_241 = arith.constant 1 : index
    %c0_242 = arith.constant 0 : index
    %c0_243 = arith.constant 0 : index
    %c0_244 = arith.constant 0 : index
    %251 = vector.load %arg10[%c1_241, %c0_242, %c0_243, %c0_244] : memref<4x5x8x32xf32, #tpu.memory_space<vmem>>, vector<1x1x4x32xf32>
    %252 = vector.shape_cast %251 : vector<1x1x4x32xf32> to vector<4x32xf32>
    %253 = arith.truncf %250 : vector<4x32xf32> to vector<4x32xbf16>
    %c3_245 = arith.constant 3 : index
    %c0_246 = arith.constant 0 : index
    %c0_247 = arith.constant 0 : index
    %254 = vector.load %arg4[%c3_245, %c0_246, %c0_247] : memref<9x32x32xbf16, #tpu.memory_space<vmem>>, vector<1x32x32xbf16>
    %255 = vector.shape_cast %254 : vector<1x32x32xbf16> to vector<32x32xbf16>
    %cst_248 = arith.constant dense<0.000000e+00> : vector<4x32xf32>
    %256 = tpu.matmul %253, %255, %cst_248 {dimension_numbers = #tpu.dot_dimension_numbers<[1], [0], [0], [1], [0, 0, 1, 1], [], []>} : vector<4x32xbf16>, vector<32x32xbf16>, vector<4x32xf32> -> vector<4x32xf32>
    %257 = arith.addf %248, %256 : vector<4x32xf32>
    %258 = arith.truncf %252 : vector<4x32xf32> to vector<4x32xbf16>
    %c3_249 = arith.constant 3 : index
    %c0_250 = arith.constant 0 : index
    %c0_251 = arith.constant 0 : index
    %259 = vector.load %arg5[%c3_249, %c0_250, %c0_251] : memref<9x32x32xbf16, #tpu.memory_space<vmem>>, vector<1x32x32xbf16>
    %260 = vector.shape_cast %259 : vector<1x32x32xbf16> to vector<32x32xbf16>
    %cst_252 = arith.constant dense<0.000000e+00> : vector<4x32xf32>
    %261 = tpu.matmul %258, %260, %cst_252 {dimension_numbers = #tpu.dot_dimension_numbers<[1], [0], [0], [1], [0, 0, 1, 1], [], []>} : vector<4x32xbf16>, vector<32x32xbf16>, vector<4x32xf32> -> vector<4x32xf32>
    %262 = arith.addf %257, %261 : vector<4x32xf32>
    %c0_253 = arith.constant 0 : index
    %c0_254 = arith.constant 0 : index
    %c0_255 = arith.constant 0 : index
    %c0_256 = arith.constant 0 : index
    %263 = vector.load %arg9[%c0_253, %c0_254, %c0_255, %c0_256] : memref<4x5x8x32xf32, #tpu.memory_space<vmem>>, vector<1x1x4x32xf32>
    %264 = vector.shape_cast %263 : vector<1x1x4x32xf32> to vector<4x32xf32>
    %c0_257 = arith.constant 0 : index
    %c0_258 = arith.constant 0 : index
    %c0_259 = arith.constant 0 : index
    %c0_260 = arith.constant 0 : index
    %265 = vector.load %arg10[%c0_257, %c0_258, %c0_259, %c0_260] : memref<4x5x8x32xf32, #tpu.memory_space<vmem>>, vector<1x1x4x32xf32>
    %266 = vector.shape_cast %265 : vector<1x1x4x32xf32> to vector<4x32xf32>
    %267 = arith.truncf %264 : vector<4x32xf32> to vector<4x32xbf16>
    %c4_261 = arith.constant 4 : index
    %c0_262 = arith.constant 0 : index
    %c0_263 = arith.constant 0 : index
    %268 = vector.load %arg4[%c4_261, %c0_262, %c0_263] : memref<9x32x32xbf16, #tpu.memory_space<vmem>>, vector<1x32x32xbf16>
    %269 = vector.shape_cast %268 : vector<1x32x32xbf16> to vector<32x32xbf16>
    %cst_264 = arith.constant dense<0.000000e+00> : vector<4x32xf32>
    %270 = tpu.matmul %267, %269, %cst_264 {dimension_numbers = #tpu.dot_dimension_numbers<[1], [0], [0], [1], [0, 0, 1, 1], [], []>} : vector<4x32xbf16>, vector<32x32xbf16>, vector<4x32xf32> -> vector<4x32xf32>
    %271 = arith.addf %262, %270 : vector<4x32xf32>
    %272 = arith.truncf %266 : vector<4x32xf32> to vector<4x32xbf16>
    %c4_265 = arith.constant 4 : index
    %c0_266 = arith.constant 0 : index
    %c0_267 = arith.constant 0 : index
    %273 = vector.load %arg5[%c4_265, %c0_266, %c0_267] : memref<9x32x32xbf16, #tpu.memory_space<vmem>>, vector<1x32x32xbf16>
    %274 = vector.shape_cast %273 : vector<1x32x32xbf16> to vector<32x32xbf16>
    %cst_268 = arith.constant dense<0.000000e+00> : vector<4x32xf32>
    %275 = tpu.matmul %272, %274, %cst_268 {dimension_numbers = #tpu.dot_dimension_numbers<[1], [0], [0], [1], [0, 0, 1, 1], [], []>} : vector<4x32xbf16>, vector<32x32xbf16>, vector<4x32xf32> -> vector<4x32xf32>
    %276 = arith.addf %271, %275 : vector<4x32xf32>
    %c1_269 = arith.constant 1 : index
    %c0_270 = arith.constant 0 : index
    %c1_271 = arith.constant 1 : index
    %c0_272 = arith.constant 0 : index
    %277 = vector.load %arg9[%c1_269, %c0_270, %c1_271, %c0_272] : memref<4x5x8x32xf32, #tpu.memory_space<vmem>>, vector<1x1x4x32xf32>
    %278 = vector.shape_cast %277 : vector<1x1x4x32xf32> to vector<4x32xf32>
    %c1_273 = arith.constant 1 : index
    %c0_274 = arith.constant 0 : index
    %c1_275 = arith.constant 1 : index
    %c0_276 = arith.constant 0 : index
    %279 = vector.load %arg10[%c1_273, %c0_274, %c1_275, %c0_276] : memref<4x5x8x32xf32, #tpu.memory_space<vmem>>, vector<1x1x4x32xf32>
    %280 = vector.shape_cast %279 : vector<1x1x4x32xf32> to vector<4x32xf32>
    %281 = arith.truncf %278 : vector<4x32xf32> to vector<4x32xbf16>
    %c5 = arith.constant 5 : index
    %c0_277 = arith.constant 0 : index
    %c0_278 = arith.constant 0 : index
    %282 = vector.load %arg4[%c5, %c0_277, %c0_278] : memref<9x32x32xbf16, #tpu.memory_space<vmem>>, vector<1x32x32xbf16>
    %283 = vector.shape_cast %282 : vector<1x32x32xbf16> to vector<32x32xbf16>
    %cst_279 = arith.constant dense<0.000000e+00> : vector<4x32xf32>
    %284 = tpu.matmul %281, %283, %cst_279 {dimension_numbers = #tpu.dot_dimension_numbers<[1], [0], [0], [1], [0, 0, 1, 1], [], []>} : vector<4x32xbf16>, vector<32x32xbf16>, vector<4x32xf32> -> vector<4x32xf32>
    %285 = arith.addf %276, %284 : vector<4x32xf32>
    %286 = arith.truncf %280 : vector<4x32xf32> to vector<4x32xbf16>
    %c5_280 = arith.constant 5 : index
    %c0_281 = arith.constant 0 : index
    %c0_282 = arith.constant 0 : index
    %287 = vector.load %arg5[%c5_280, %c0_281, %c0_282] : memref<9x32x32xbf16, #tpu.memory_space<vmem>>, vector<1x32x32xbf16>
    %288 = vector.shape_cast %287 : vector<1x32x32xbf16> to vector<32x32xbf16>
    %cst_283 = arith.constant dense<0.000000e+00> : vector<4x32xf32>
    %289 = tpu.matmul %286, %288, %cst_283 {dimension_numbers = #tpu.dot_dimension_numbers<[1], [0], [0], [1], [0, 0, 1, 1], [], []>} : vector<4x32xbf16>, vector<32x32xbf16>, vector<4x32xf32> -> vector<4x32xf32>
    %290 = arith.addf %285, %289 : vector<4x32xf32>
    %c3_284 = arith.constant 3 : index
    %c1_285 = arith.constant 1 : index
    %c0_286 = arith.constant 0 : index
    %c0_287 = arith.constant 0 : index
    %291 = vector.load %arg9[%c3_284, %c1_285, %c0_286, %c0_287] : memref<4x5x8x32xf32, #tpu.memory_space<vmem>>, vector<1x1x4x32xf32>
    %292 = vector.shape_cast %291 : vector<1x1x4x32xf32> to vector<4x32xf32>
    %c3_288 = arith.constant 3 : index
    %c1_289 = arith.constant 1 : index
    %c0_290 = arith.constant 0 : index
    %c0_291 = arith.constant 0 : index
    %293 = vector.load %arg10[%c3_288, %c1_289, %c0_290, %c0_291] : memref<4x5x8x32xf32, #tpu.memory_space<vmem>>, vector<1x1x4x32xf32>
    %294 = vector.shape_cast %293 : vector<1x1x4x32xf32> to vector<4x32xf32>
    %295 = arith.truncf %292 : vector<4x32xf32> to vector<4x32xbf16>
    %c6 = arith.constant 6 : index
    %c0_292 = arith.constant 0 : index
    %c0_293 = arith.constant 0 : index
    %296 = vector.load %arg4[%c6, %c0_292, %c0_293] : memref<9x32x32xbf16, #tpu.memory_space<vmem>>, vector<1x32x32xbf16>
    %297 = vector.shape_cast %296 : vector<1x32x32xbf16> to vector<32x32xbf16>
    %cst_294 = arith.constant dense<0.000000e+00> : vector<4x32xf32>
    %298 = tpu.matmul %295, %297, %cst_294 {dimension_numbers = #tpu.dot_dimension_numbers<[1], [0], [0], [1], [0, 0, 1, 1], [], []>} : vector<4x32xbf16>, vector<32x32xbf16>, vector<4x32xf32> -> vector<4x32xf32>
    %299 = arith.addf %290, %298 : vector<4x32xf32>
    %300 = arith.truncf %294 : vector<4x32xf32> to vector<4x32xbf16>
    %c6_295 = arith.constant 6 : index
    %c0_296 = arith.constant 0 : index
    %c0_297 = arith.constant 0 : index
    %301 = vector.load %arg5[%c6_295, %c0_296, %c0_297] : memref<9x32x32xbf16, #tpu.memory_space<vmem>>, vector<1x32x32xbf16>
    %302 = vector.shape_cast %301 : vector<1x32x32xbf16> to vector<32x32xbf16>
    %cst_298 = arith.constant dense<0.000000e+00> : vector<4x32xf32>
    %303 = tpu.matmul %300, %302, %cst_298 {dimension_numbers = #tpu.dot_dimension_numbers<[1], [0], [0], [1], [0, 0, 1, 1], [], []>} : vector<4x32xbf16>, vector<32x32xbf16>, vector<4x32xf32> -> vector<4x32xf32>
    %304 = arith.addf %299, %303 : vector<4x32xf32>
    %c2_299 = arith.constant 2 : index
    %c1_300 = arith.constant 1 : index
    %c0_301 = arith.constant 0 : index
    %c0_302 = arith.constant 0 : index
    %305 = vector.load %arg9[%c2_299, %c1_300, %c0_301, %c0_302] : memref<4x5x8x32xf32, #tpu.memory_space<vmem>>, vector<1x1x4x32xf32>
    %306 = vector.shape_cast %305 : vector<1x1x4x32xf32> to vector<4x32xf32>
    %c2_303 = arith.constant 2 : index
    %c1_304 = arith.constant 1 : index
    %c0_305 = arith.constant 0 : index
    %c0_306 = arith.constant 0 : index
    %307 = vector.load %arg10[%c2_303, %c1_304, %c0_305, %c0_306] : memref<4x5x8x32xf32, #tpu.memory_space<vmem>>, vector<1x1x4x32xf32>
    %308 = vector.shape_cast %307 : vector<1x1x4x32xf32> to vector<4x32xf32>
    %309 = arith.truncf %306 : vector<4x32xf32> to vector<4x32xbf16>
    %c7 = arith.constant 7 : index
    %c0_307 = arith.constant 0 : index
    %c0_308 = arith.constant 0 : index
    %310 = vector.load %arg4[%c7, %c0_307, %c0_308] : memref<9x32x32xbf16, #tpu.memory_space<vmem>>, vector<1x32x32xbf16>
    %311 = vector.shape_cast %310 : vector<1x32x32xbf16> to vector<32x32xbf16>
    %cst_309 = arith.constant dense<0.000000e+00> : vector<4x32xf32>
    %312 = tpu.matmul %309, %311, %cst_309 {dimension_numbers = #tpu.dot_dimension_numbers<[1], [0], [0], [1], [0, 0, 1, 1], [], []>} : vector<4x32xbf16>, vector<32x32xbf16>, vector<4x32xf32> -> vector<4x32xf32>
    %313 = arith.addf %304, %312 : vector<4x32xf32>
    %314 = arith.truncf %308 : vector<4x32xf32> to vector<4x32xbf16>
    %c7_310 = arith.constant 7 : index
    %c0_311 = arith.constant 0 : index
    %c0_312 = arith.constant 0 : index
    %315 = vector.load %arg5[%c7_310, %c0_311, %c0_312] : memref<9x32x32xbf16, #tpu.memory_space<vmem>>, vector<1x32x32xbf16>
    %316 = vector.shape_cast %315 : vector<1x32x32xbf16> to vector<32x32xbf16>
    %cst_313 = arith.constant dense<0.000000e+00> : vector<4x32xf32>
    %317 = tpu.matmul %314, %316, %cst_313 {dimension_numbers = #tpu.dot_dimension_numbers<[1], [0], [0], [1], [0, 0, 1, 1], [], []>} : vector<4x32xbf16>, vector<32x32xbf16>, vector<4x32xf32> -> vector<4x32xf32>
    %318 = arith.addf %313, %317 : vector<4x32xf32>
    %c3_314 = arith.constant 3 : index
    %c1_315 = arith.constant 1 : index
    %c1_316 = arith.constant 1 : index
    %c0_317 = arith.constant 0 : index
    %319 = vector.load %arg9[%c3_314, %c1_315, %c1_316, %c0_317] : memref<4x5x8x32xf32, #tpu.memory_space<vmem>>, vector<1x1x4x32xf32>
    %320 = vector.shape_cast %319 : vector<1x1x4x32xf32> to vector<4x32xf32>
    %c3_318 = arith.constant 3 : index
    %c1_319 = arith.constant 1 : index
    %c1_320 = arith.constant 1 : index
    %c0_321 = arith.constant 0 : index
    %321 = vector.load %arg10[%c3_318, %c1_319, %c1_320, %c0_321] : memref<4x5x8x32xf32, #tpu.memory_space<vmem>>, vector<1x1x4x32xf32>
    %322 = vector.shape_cast %321 : vector<1x1x4x32xf32> to vector<4x32xf32>
    %323 = arith.truncf %320 : vector<4x32xf32> to vector<4x32xbf16>
    %c8 = arith.constant 8 : index
    %c0_322 = arith.constant 0 : index
    %c0_323 = arith.constant 0 : index
    %324 = vector.load %arg4[%c8, %c0_322, %c0_323] : memref<9x32x32xbf16, #tpu.memory_space<vmem>>, vector<1x32x32xbf16>
    %325 = vector.shape_cast %324 : vector<1x32x32xbf16> to vector<32x32xbf16>
    %cst_324 = arith.constant dense<0.000000e+00> : vector<4x32xf32>
    %326 = tpu.matmul %323, %325, %cst_324 {dimension_numbers = #tpu.dot_dimension_numbers<[1], [0], [0], [1], [0, 0, 1, 1], [], []>} : vector<4x32xbf16>, vector<32x32xbf16>, vector<4x32xf32> -> vector<4x32xf32>
    %327 = arith.addf %318, %326 : vector<4x32xf32>
    %328 = arith.truncf %322 : vector<4x32xf32> to vector<4x32xbf16>
    %c8_325 = arith.constant 8 : index
    %c0_326 = arith.constant 0 : index
    %c0_327 = arith.constant 0 : index
    %329 = vector.load %arg5[%c8_325, %c0_326, %c0_327] : memref<9x32x32xbf16, #tpu.memory_space<vmem>>, vector<1x32x32xbf16>
    %330 = vector.shape_cast %329 : vector<1x32x32xbf16> to vector<32x32xbf16>
    %cst_328 = arith.constant dense<0.000000e+00> : vector<4x32xf32>
    %331 = tpu.matmul %328, %330, %cst_328 {dimension_numbers = #tpu.dot_dimension_numbers<[1], [0], [0], [1], [0, 0, 1, 1], [], []>} : vector<4x32xbf16>, vector<32x32xbf16>, vector<4x32xf32> -> vector<4x32xf32>
    %332 = arith.addf %327, %331 : vector<4x32xf32>
    %333 = vector.broadcast %205 : vector<1x32xf32> to vector<4x32xf32>
    %334 = arith.addf %332, %333 : vector<4x32xf32>
    %cst_329 = arith.constant 3.000000e-01 : f32
    %335 = vector.broadcast %cst_329 : f32 to vector<4x32xf32>
    %336 = arith.subf %334, %335 : vector<4x32xf32>
    %cst_330 = arith.constant 0.000000e+00 : f32
    %337 = vector.broadcast %cst_330 : f32 to vector<4x32xf32>
    %338 = arith.maximumf %336, %337 : vector<4x32xf32>
    %339 = arith.addf %334, %338 : vector<4x32xf32>
    %cst_331 = arith.constant 0.000000e+00 : f32
    %340 = vector.broadcast %cst_331 : f32 to vector<4x32xf32>
    %341 = arith.maximumf %339, %340 : vector<4x32xf32>
    %c0_332 = arith.constant 0 : index
    %c0_333 = arith.constant 0 : index
    %c0_334 = arith.constant 0 : index
    %c0_335 = arith.constant 0 : index
    %342 = vector.load %arg8[%c0_332, %c0_333, %c0_334, %c0_335] : memref<1x4x4x32xf32, #tpu.memory_space<vmem>>, vector<1x1x4x32xf32>
    %343 = vector.shape_cast %342 : vector<1x1x4x32xf32> to vector<4x32xf32>
    %344 = vector.shape_cast %341 : vector<4x32xf32> to vector<1x1x4x32xf32>
    tpu.vector_store %arg8[%c0_332, %c0_333, %c0_334, %c0_335], %344 {strides = array<i32>} : memref<1x4x4x32xf32, #tpu.memory_space<vmem>>, vector<1x1x4x32xf32>,
    %cst_336 = arith.constant 1.000000e+02 : f32
    %345 = vector.broadcast %cst_336 : f32 to vector<4x32xf32>
    %346 = arith.divf %341, %345 : vector<4x32xf32>
    %347 = math.floor %346 : vector<4x32xf32>
    %cst_337 = arith.constant 1.400000e+01 : f32
    %348 = vector.broadcast %cst_337 : f32 to vector<4x32xf32>
    %349 = arith.addf %347, %348 : vector<4x32xf32>
    %c0_338 = arith.constant 0 : index
    %c0_339 = arith.constant 0 : index
    %c0_340 = arith.constant 0 : index
    %c0_341 = arith.constant 0 : index
    %350 = vector.load %arg7[%c0_338, %c0_339, %c0_340, %c0_341] : memref<1x4x4x32xf32, #tpu.memory_space<vmem>>, vector<1x1x4x32xf32>
    %351 = vector.shape_cast %350 : vector<1x1x4x32xf32> to vector<4x32xf32>
    %352 = vector.shape_cast %349 : vector<4x32xf32> to vector<1x1x4x32xf32>
    tpu.vector_store %arg7[%c0_338, %c0_339, %c0_340, %c0_341], %352 {strides = array<i32>} : memref<1x4x4x32xf32, #tpu.memory_space<vmem>>, vector<1x1x4x32xf32>,
    %cst_342 = arith.constant 0.000000e+00 : f32
    %353 = vector.broadcast %cst_342 : f32 to vector<4x32xf32>
    %c3_343 = arith.constant 3 : index
    %c1_344 = arith.constant 1 : index
    %c0_345 = arith.constant 0 : index
    %c0_346 = arith.constant 0 : index
    %354 = vector.load %arg9[%c3_343, %c1_344, %c0_345, %c0_346] : memref<4x5x8x32xf32, #tpu.memory_space<vmem>>, vector<1x1x4x32xf32>
    %355 = vector.shape_cast %354 : vector<1x1x4x32xf32> to vector<4x32xf32>
    %c3_347 = arith.constant 3 : index
    %c1_348 = arith.constant 1 : index
    %c0_349 = arith.constant 0 : index
    %c0_350 = arith.constant 0 : index
    %356 = vector.load %arg10[%c3_347, %c1_348, %c0_349, %c0_350] : memref<4x5x8x32xf32, #tpu.memory_space<vmem>>, vector<1x1x4x32xf32>
    %357 = vector.shape_cast %356 : vector<1x1x4x32xf32> to vector<4x32xf32>
    %358 = arith.truncf %355 : vector<4x32xf32> to vector<4x32xbf16>
    %c0_351 = arith.constant 0 : index
    %c0_352 = arith.constant 0 : index
    %c0_353 = arith.constant 0 : index
    %359 = vector.load %arg4[%c0_351, %c0_352, %c0_353] : memref<9x32x32xbf16, #tpu.memory_space<vmem>>, vector<1x32x32xbf16>
    %360 = vector.shape_cast %359 : vector<1x32x32xbf16> to vector<32x32xbf16>
    %cst_354 = arith.constant dense<0.000000e+00> : vector<4x32xf32>
    %361 = tpu.matmul %358, %360, %cst_354 {dimension_numbers = #tpu.dot_dimension_numbers<[1], [0], [0], [1], [0, 0, 1, 1], [], []>} : vector<4x32xbf16>, vector<32x32xbf16>, vector<4x32xf32> -> vector<4x32xf32>
    %362 = arith.addf %353, %361 : vector<4x32xf32>
    %363 = arith.truncf %357 : vector<4x32xf32> to vector<4x32xbf16>
    %c0_355 = arith.constant 0 : index
    %c0_356 = arith.constant 0 : index
    %c0_357 = arith.constant 0 : index
    %364 = vector.load %arg5[%c0_355, %c0_356, %c0_357] : memref<9x32x32xbf16, #tpu.memory_space<vmem>>, vector<1x32x32xbf16>
    %365 = vector.shape_cast %364 : vector<1x32x32xbf16> to vector<32x32xbf16>
    %cst_358 = arith.constant dense<0.000000e+00> : vector<4x32xf32>
    %366 = tpu.matmul %363, %365, %cst_358 {dimension_numbers = #tpu.dot_dimension_numbers<[1], [0], [0], [1], [0, 0, 1, 1], [], []>} : vector<4x32xbf16>, vector<32x32xbf16>, vector<4x32xf32> -> vector<4x32xf32>
    %367 = arith.addf %362, %366 : vector<4x32xf32>
    %c2_359 = arith.constant 2 : index
    %c1_360 = arith.constant 1 : index
    %c0_361 = arith.constant 0 : index
    %c0_362 = arith.constant 0 : index
    %368 = vector.load %arg9[%c2_359, %c1_360, %c0_361, %c0_362] : memref<4x5x8x32xf32, #tpu.memory_space<vmem>>, vector<1x1x4x32xf32>
    %369 = vector.shape_cast %368 : vector<1x1x4x32xf32> to vector<4x32xf32>
    %c2_363 = arith.constant 2 : index
    %c1_364 = arith.constant 1 : index
    %c0_365 = arith.constant 0 : index
    %c0_366 = arith.constant 0 : index
    %370 = vector.load %arg10[%c2_363, %c1_364, %c0_365, %c0_366] : memref<4x5x8x32xf32, #tpu.memory_space<vmem>>, vector<1x1x4x32xf32>
    %371 = vector.shape_cast %370 : vector<1x1x4x32xf32> to vector<4x32xf32>
    %372 = arith.truncf %369 : vector<4x32xf32> to vector<4x32xbf16>
    %c1_367 = arith.constant 1 : index
    %c0_368 = arith.constant 0 : index
    %c0_369 = arith.constant 0 : index
    %373 = vector.load %arg4[%c1_367, %c0_368, %c0_369] : memref<9x32x32xbf16, #tpu.memory_space<vmem>>, vector<1x32x32xbf16>
    %374 = vector.shape_cast %373 : vector<1x32x32xbf16> to vector<32x32xbf16>
    %cst_370 = arith.constant dense<0.000000e+00> : vector<4x32xf32>
    %375 = tpu.matmul %372, %374, %cst_370 {dimension_numbers = #tpu.dot_dimension_numbers<[1], [0], [0], [1], [0, 0, 1, 1], [], []>} : vector<4x32xbf16>, vector<32x32xbf16>, vector<4x32xf32> -> vector<4x32xf32>
    %376 = arith.addf %367, %375 : vector<4x32xf32>
    %377 = arith.truncf %371 : vector<4x32xf32> to vector<4x32xbf16>
    %c1_371 = arith.constant 1 : index
    %c0_372 = arith.constant 0 : index
    %c0_373 = arith.constant 0 : index
    %378 = vector.load %arg5[%c1_371, %c0_372, %c0_373] : memref<9x32x32xbf16, #tpu.memory_space<vmem>>, vector<1x32x32xbf16>
    %379 = vector.shape_cast %378 : vector<1x32x32xbf16> to vector<32x32xbf16>
    %cst_374 = arith.constant dense<0.000000e+00> : vector<4x32xf32>
    %380 = tpu.matmul %377, %379, %cst_374 {dimension_numbers = #tpu.dot_dimension_numbers<[1], [0], [0], [1], [0, 0, 1, 1], [], []>} : vector<4x32xbf16>, vector<32x32xbf16>, vector<4x32xf32> -> vector<4x32xf32>
    %381 = arith.addf %376, %380 : vector<4x32xf32>
    %c3_375 = arith.constant 3 : index
    %c1_376 = arith.constant 1 : index
    %c1_377 = arith.constant 1 : index
    %c0_378 = arith.constant 0 : index
    %382 = vector.load %arg9[%c3_375, %c1_376, %c1_377, %c0_378] : memref<4x5x8x32xf32, #tpu.memory_space<vmem>>, vector<1x1x4x32xf32>
    %383 = vector.shape_cast %382 : vector<1x1x4x32xf32> to vector<4x32xf32>
    %c3_379 = arith.constant 3 : index
    %c1_380 = arith.constant 1 : index
    %c1_381 = arith.constant 1 : index
    %c0_382 = arith.constant 0 : index
    %384 = vector.load %arg10[%c3_379, %c1_380, %c1_381, %c0_382] : memref<4x5x8x32xf32, #tpu.memory_space<vmem>>, vector<1x1x4x32xf32>
    %385 = vector.shape_cast %384 : vector<1x1x4x32xf32> to vector<4x32xf32>
    %386 = arith.truncf %383 : vector<4x32xf32> to vector<4x32xbf16>
    %c2_383 = arith.constant 2 : index
    %c0_384 = arith.constant 0 : index
    %c0_385 = arith.constant 0 : index
    %387 = vector.load %arg4[%c2_383, %c0_384, %c0_385] : memref<9x32x32xbf16, #tpu.memory_space<vmem>>, vector<1x32x32xbf16>
    %388 = vector.shape_cast %387 : vector<1x32x32xbf16> to vector<32x32xbf16>
    %cst_386 = arith.constant dense<0.000000e+00> : vector<4x32xf32>
    %389 = tpu.matmul %386, %388, %cst_386 {dimension_numbers = #tpu.dot_dimension_numbers<[1], [0], [0], [1], [0, 0, 1, 1], [], []>} : vector<4x32xbf16>, vector<32x32xbf16>, vector<4x32xf32> -> vector<4x32xf32>
    %390 = arith.addf %381, %389 : vector<4x32xf32>
    %391 = arith.truncf %385 : vector<4x32xf32> to vector<4x32xbf16>
    %c2_387 = arith.constant 2 : index
    %c0_388 = arith.constant 0 : index
    %c0_389 = arith.constant 0 : index
    %392 = vector.load %arg5[%c2_387, %c0_388, %c0_389] : memref<9x32x32xbf16, #tpu.memory_space<vmem>>, vector<1x32x32xbf16>
    %393 = vector.shape_cast %392 : vector<1x32x32xbf16> to vector<32x32xbf16>
    %cst_390 = arith.constant dense<0.000000e+00> : vector<4x32xf32>
    %394 = tpu.matmul %391, %393, %cst_390 {dimension_numbers = #tpu.dot_dimension_numbers<[1], [0], [0], [1], [0, 0, 1, 1], [], []>} : vector<4x32xbf16>, vector<32x32xbf16>, vector<4x32xf32> -> vector<4x32xf32>
    %395 = arith.addf %390, %394 : vector<4x32xf32>
    %c1_391 = arith.constant 1 : index
    %c1_392 = arith.constant 1 : index
    %c0_393 = arith.constant 0 : index
    %c0_394 = arith.constant 0 : index
    %396 = vector.load %arg9[%c1_391, %c1_392, %c0_393, %c0_394] : memref<4x5x8x32xf32, #tpu.memory_space<vmem>>, vector<1x1x4x32xf32>
    %397 = vector.shape_cast %396 : vector<1x1x4x32xf32> to vector<4x32xf32>
    %c1_395 = arith.constant 1 : index
    %c1_396 = arith.constant 1 : index
    %c0_397 = arith.constant 0 : index
    %c0_398 = arith.constant 0 : index
    %398 = vector.load %arg10[%c1_395, %c1_396, %c0_397, %c0_398] : memref<4x5x8x32xf32, #tpu.memory_space<vmem>>, vector<1x1x4x32xf32>
    %399 = vector.shape_cast %398 : vector<1x1x4x32xf32> to vector<4x32xf32>
    %400 = arith.truncf %397 : vector<4x32xf32> to vector<4x32xbf16>
    %c3_399 = arith.constant 3 : index
    %c0_400 = arith.constant 0 : index
    %c0_401 = arith.constant 0 : index
    %401 = vector.load %arg4[%c3_399, %c0_400, %c0_401] : memref<9x32x32xbf16, #tpu.memory_space<vmem>>, vector<1x32x32xbf16>
    %402 = vector.shape_cast %401 : vector<1x32x32xbf16> to vector<32x32xbf16>
    %cst_402 = arith.constant dense<0.000000e+00> : vector<4x32xf32>
    %403 = tpu.matmul %400, %402, %cst_402 {dimension_numbers = #tpu.dot_dimension_numbers<[1], [0], [0], [1], [0, 0, 1, 1], [], []>} : vector<4x32xbf16>, vector<32x32xbf16>, vector<4x32xf32> -> vector<4x32xf32>
    %404 = arith.addf %395, %403 : vector<4x32xf32>
    %405 = arith.truncf %399 : vector<4x32xf32> to vector<4x32xbf16>
    %c3_403 = arith.constant 3 : index
    %c0_404 = arith.constant 0 : index
    %c0_405 = arith.constant 0 : index
    %406 = vector.load %arg5[%c3_403, %c0_404, %c0_405] : memref<9x32x32xbf16, #tpu.memory_space<vmem>>, vector<1x32x32xbf16>
    %407 = vector.shape_cast %406 : vector<1x32x32xbf16> to vector<32x32xbf16>
    %cst_406 = arith.constant dense<0.000000e+00> : vector<4x32xf32>
    %408 = tpu.matmul %405, %407, %cst_406 {dimension_numbers = #tpu.dot_dimension_numbers<[1], [0], [0], [1], [0, 0, 1, 1], [], []>} : vector<4x32xbf16>, vector<32x32xbf16>, vector<4x32xf32> -> vector<4x32xf32>
    %409 = arith.addf %404, %408 : vector<4x32xf32>
    %c0_407 = arith.constant 0 : index
    %c1_408 = arith.constant 1 : index
    %c0_409 = arith.constant 0 : index
    %c0_410 = arith.constant 0 : index
    %410 = vector.load %arg9[%c0_407, %c1_408, %c0_409, %c0_410] : memref<4x5x8x32xf32, #tpu.memory_space<vmem>>, vector<1x1x4x32xf32>
    %411 = vector.shape_cast %410 : vector<1x1x4x32xf32> to vector<4x32xf32>
    %c0_411 = arith.constant 0 : index
    %c1_412 = arith.constant 1 : index
    %c0_413 = arith.constant 0 : index
    %c0_414 = arith.constant 0 : index
    %412 = vector.load %arg10[%c0_411, %c1_412, %c0_413, %c0_414] : memref<4x5x8x32xf32, #tpu.memory_space<vmem>>, vector<1x1x4x32xf32>
    %413 = vector.shape_cast %412 : vector<1x1x4x32xf32> to vector<4x32xf32>
    %414 = arith.truncf %411 : vector<4x32xf32> to vector<4x32xbf16>
    %c4_415 = arith.constant 4 : index
    %c0_416 = arith.constant 0 : index
    %c0_417 = arith.constant 0 : index
    %415 = vector.load %arg4[%c4_415, %c0_416, %c0_417] : memref<9x32x32xbf16, #tpu.memory_space<vmem>>, vector<1x32x32xbf16>
    %416 = vector.shape_cast %415 : vector<1x32x32xbf16> to vector<32x32xbf16>
    %cst_418 = arith.constant dense<0.000000e+00> : vector<4x32xf32>
    %417 = tpu.matmul %414, %416, %cst_418 {dimension_numbers = #tpu.dot_dimension_numbers<[1], [0], [0], [1], [0, 0, 1, 1], [], []>} : vector<4x32xbf16>, vector<32x32xbf16>, vector<4x32xf32> -> vector<4x32xf32>
    %418 = arith.addf %409, %417 : vector<4x32xf32>
    %419 = arith.truncf %413 : vector<4x32xf32> to vector<4x32xbf16>
    %c4_419 = arith.constant 4 : index
    %c0_420 = arith.constant 0 : index
    %c0_421 = arith.constant 0 : index
    %420 = vector.load %arg5[%c4_419, %c0_420, %c0_421] : memref<9x32x32xbf16, #tpu.memory_space<vmem>>, vector<1x32x32xbf16>
    %421 = vector.shape_cast %420 : vector<1x32x32xbf16> to vector<32x32xbf16>
    %cst_422 = arith.constant dense<0.000000e+00> : vector<4x32xf32>
    %422 = tpu.matmul %419, %421, %cst_422 {dimension_numbers = #tpu.dot_dimension_numbers<[1], [0], [0], [1], [0, 0, 1, 1], [], []>} : vector<4x32xbf16>, vector<32x32xbf16>, vector<4x32xf32> -> vector<4x32xf32>
    %423 = arith.addf %418, %422 : vector<4x32xf32>
    %c1_423 = arith.constant 1 : index
    %c1_424 = arith.constant 1 : index
    %c1_425 = arith.constant 1 : index
    %c0_426 = arith.constant 0 : index
    %424 = vector.load %arg9[%c1_423, %c1_424, %c1_425, %c0_426] : memref<4x5x8x32xf32, #tpu.memory_space<vmem>>, vector<1x1x4x32xf32>
    %425 = vector.shape_cast %424 : vector<1x1x4x32xf32> to vector<4x32xf32>
    %c1_427 = arith.constant 1 : index
    %c1_428 = arith.constant 1 : index
    %c1_429 = arith.constant 1 : index
    %c0_430 = arith.constant 0 : index
    %426 = vector.load %arg10[%c1_427, %c1_428, %c1_429, %c0_430] : memref<4x5x8x32xf32, #tpu.memory_space<vmem>>, vector<1x1x4x32xf32>
    %427 = vector.shape_cast %426 : vector<1x1x4x32xf32> to vector<4x32xf32>
    %428 = arith.truncf %425 : vector<4x32xf32> to vector<4x32xbf16>
    %c5_431 = arith.constant 5 : index
    %c0_432 = arith.constant 0 : index
    %c0_433 = arith.constant 0 : index
    %429 = vector.load %arg4[%c5_431, %c0_432, %c0_433] : memref<9x32x32xbf16, #tpu.memory_space<vmem>>, vector<1x32x32xbf16>
    %430 = vector.shape_cast %429 : vector<1x32x32xbf16> to vector<32x32xbf16>
    %cst_434 = arith.constant dense<0.000000e+00> : vector<4x32xf32>
    %431 = tpu.matmul %428, %430, %cst_434 {dimension_numbers = #tpu.dot_dimension_numbers<[1], [0], [0], [1], [0, 0, 1, 1], [], []>} : vector<4x32xbf16>, vector<32x32xbf16>, vector<4x32xf32> -> vector<4x32xf32>
    %432 = arith.addf %423, %431 : vector<4x32xf32>
    %433 = arith.truncf %427 : vector<4x32xf32> to vector<4x32xbf16>
    %c5_435 = arith.constant 5 : index
    %c0_436 = arith.constant 0 : index
    %c0_437 = arith.constant 0 : index
    %434 = vector.load %arg5[%c5_435, %c0_436, %c0_437] : memref<9x32x32xbf16, #tpu.memory_space<vmem>>, vector<1x32x32xbf16>
    %435 = vector.shape_cast %434 : vector<1x32x32xbf16> to vector<32x32xbf16>
    %cst_438 = arith.constant dense<0.000000e+00> : vector<4x32xf32>
    %436 = tpu.matmul %433, %435, %cst_438 {dimension_numbers = #tpu.dot_dimension_numbers<[1], [0], [0], [1], [0, 0, 1, 1], [], []>} : vector<4x32xbf16>, vector<32x32xbf16>, vector<4x32xf32> -> vector<4x32xf32>
    %437 = arith.addf %432, %436 : vector<4x32xf32>
    %c3_439 = arith.constant 3 : index
    %c2_440 = arith.constant 2 : index
    %c0_441 = arith.constant 0 : index
    %c0_442 = arith.constant 0 : index
    %438 = vector.load %arg9[%c3_439, %c2_440, %c0_441, %c0_442] : memref<4x5x8x32xf32, #tpu.memory_space<vmem>>, vector<1x1x4x32xf32>
    %439 = vector.shape_cast %438 : vector<1x1x4x32xf32> to vector<4x32xf32>
    %c3_443 = arith.constant 3 : index
    %c2_444 = arith.constant 2 : index
    %c0_445 = arith.constant 0 : index
    %c0_446 = arith.constant 0 : index
    %440 = vector.load %arg10[%c3_443, %c2_444, %c0_445, %c0_446] : memref<4x5x8x32xf32, #tpu.memory_space<vmem>>, vector<1x1x4x32xf32>
    %441 = vector.shape_cast %440 : vector<1x1x4x32xf32> to vector<4x32xf32>
    %442 = arith.truncf %439 : vector<4x32xf32> to vector<4x32xbf16>
    %c6_447 = arith.constant 6 : index
    %c0_448 = arith.constant 0 : index
    %c0_449 = arith.constant 0 : index
    %443 = vector.load %arg4[%c6_447, %c0_448, %c0_449] : memref<9x32x32xbf16, #tpu.memory_space<vmem>>, vector<1x32x32xbf16>
    %444 = vector.shape_cast %443 : vector<1x32x32xbf16> to vector<32x32xbf16>
    %cst_450 = arith.constant dense<0.000000e+00> : vector<4x32xf32>
    %445 = tpu.matmul %442, %444, %cst_450 {dimension_numbers = #tpu.dot_dimension_numbers<[1], [0], [0], [1], [0, 0, 1, 1], [], []>} : vector<4x32xbf16>, vector<32x32xbf16>, vector<4x32xf32> -> vector<4x32xf32>
    %446 = arith.addf %437, %445 : vector<4x32xf32>
    %447 = arith.truncf %441 : vector<4x32xf32> to vector<4x32xbf16>
    %c6_451 = arith.constant 6 : index
    %c0_452 = arith.constant 0 : index
    %c0_453 = arith.constant 0 : index
    %448 = vector.load %arg5[%c6_451, %c0_452, %c0_453] : memref<9x32x32xbf16, #tpu.memory_space<vmem>>, vector<1x32x32xbf16>
    %449 = vector.shape_cast %448 : vector<1x32x32xbf16> to vector<32x32xbf16>
    %cst_454 = arith.constant dense<0.000000e+00> : vector<4x32xf32>
    %450 = tpu.matmul %447, %449, %cst_454 {dimension_numbers = #tpu.dot_dimension_numbers<[1], [0], [0], [1], [0, 0, 1, 1], [], []>} : vector<4x32xbf16>, vector<32x32xbf16>, vector<4x32xf32> -> vector<4x32xf32>
    %451 = arith.addf %446, %450 : vector<4x32xf32>
    %c2_455 = arith.constant 2 : index
    %c2_456 = arith.constant 2 : index
    %c0_457 = arith.constant 0 : index
    %c0_458 = arith.constant 0 : index
    %452 = vector.load %arg9[%c2_455, %c2_456, %c0_457, %c0_458] : memref<4x5x8x32xf32, #tpu.memory_space<vmem>>, vector<1x1x4x32xf32>
    %453 = vector.shape_cast %452 : vector<1x1x4x32xf32> to vector<4x32xf32>
    %c2_459 = arith.constant 2 : index
    %c2_460 = arith.constant 2 : index
    %c0_461 = arith.constant 0 : index
    %c0_462 = arith.constant 0 : index
    %454 = vector.load %arg10[%c2_459, %c2_460, %c0_461, %c0_462] : memref<4x5x8x32xf32, #tpu.memory_space<vmem>>, vector<1x1x4x32xf32>
    %455 = vector.shape_cast %454 : vector<1x1x4x32xf32> to vector<4x32xf32>
    %456 = arith.truncf %453 : vector<4x32xf32> to vector<4x32xbf16>
    %c7_463 = arith.constant 7 : index
    %c0_464 = arith.constant 0 : index
    %c0_465 = arith.constant 0 : index
    %457 = vector.load %arg4[%c7_463, %c0_464, %c0_465] : memref<9x32x32xbf16, #tpu.memory_space<vmem>>, vector<1x32x32xbf16>
    %458 = vector.shape_cast %457 : vector<1x32x32xbf16> to vector<32x32xbf16>
    %cst_466 = arith.constant dense<0.000000e+00> : vector<4x32xf32>
    %459 = tpu.matmul %456, %458, %cst_466 {dimension_numbers = #tpu.dot_dimension_numbers<[1], [0], [0], [1], [0, 0, 1, 1], [], []>} : vector<4x32xbf16>, vector<32x32xbf16>, vector<4x32xf32> -> vector<4x32xf32>
    %460 = arith.addf %451, %459 : vector<4x32xf32>
    %461 = arith.truncf %455 : vector<4x32xf32> to vector<4x32xbf16>
    %c7_467 = arith.constant 7 : index
    %c0_468 = arith.constant 0 : index
    %c0_469 = arith.constant 0 : index
    %462 = vector.load %arg5[%c7_467, %c0_468, %c0_469] : memref<9x32x32xbf16, #tpu.memory_space<vmem>>, vector<1x32x32xbf16>
    %463 = vector.shape_cast %462 : vector<1x32x32xbf16> to vector<32x32xbf16>
    %cst_470 = arith.constant dense<0.000000e+00> : vector<4x32xf32>
    %464 = tpu.matmul %461, %463, %cst_470 {dimension_numbers = #tpu.dot_dimension_numbers<[1], [0], [0], [1], [0, 0, 1, 1], [], []>} : vector<4x32xbf16>, vector<32x32xbf16>, vector<4x32xf32> -> vector<4x32xf32>
    %465 = arith.addf %460, %464 : vector<4x32xf32>
    %c3_471 = arith.constant 3 : index
    %c2_472 = arith.constant 2 : index
    %c1_473 = arith.constant 1 : index
    %c0_474 = arith.constant 0 : index
    %466 = vector.load %arg9[%c3_471, %c2_472, %c1_473, %c0_474] : memref<4x5x8x32xf32, #tpu.memory_space<vmem>>, vector<1x1x4x32xf32>
    %467 = vector.shape_cast %466 : vector<1x1x4x32xf32> to vector<4x32xf32>
    %c3_475 = arith.constant 3 : index
    %c2_476 = arith.constant 2 : index
    %c1_477 = arith.constant 1 : index
    %c0_478 = arith.constant 0 : index
    %468 = vector.load %arg10[%c3_475, %c2_476, %c1_477, %c0_478] : memref<4x5x8x32xf32, #tpu.memory_space<vmem>>, vector<1x1x4x32xf32>
    %469 = vector.shape_cast %468 : vector<1x1x4x32xf32> to vector<4x32xf32>
    %470 = arith.truncf %467 : vector<4x32xf32> to vector<4x32xbf16>
    %c8_479 = arith.constant 8 : index
    %c0_480 = arith.constant 0 : index
    %c0_481 = arith.constant 0 : index
    %471 = vector.load %arg4[%c8_479, %c0_480, %c0_481] : memref<9x32x32xbf16, #tpu.memory_space<vmem>>, vector<1x32x32xbf16>
    %472 = vector.shape_cast %471 : vector<1x32x32xbf16> to vector<32x32xbf16>
    %cst_482 = arith.constant dense<0.000000e+00> : vector<4x32xf32>
    %473 = tpu.matmul %470, %472, %cst_482 {dimension_numbers = #tpu.dot_dimension_numbers<[1], [0], [0], [1], [0, 0, 1, 1], [], []>} : vector<4x32xbf16>, vector<32x32xbf16>, vector<4x32xf32> -> vector<4x32xf32>
    %474 = arith.addf %465, %473 : vector<4x32xf32>
    %475 = arith.truncf %469 : vector<4x32xf32> to vector<4x32xbf16>
    %c8_483 = arith.constant 8 : index
    %c0_484 = arith.constant 0 : index
    %c0_485 = arith.constant 0 : index
    %476 = vector.load %arg5[%c8_483, %c0_484, %c0_485] : memref<9x32x32xbf16, #tpu.memory_space<vmem>>, vector<1x32x32xbf16>
    %477 = vector.shape_cast %476 : vector<1x32x32xbf16> to vector<32x32xbf16>
    %cst_486 = arith.constant dense<0.000000e+00> : vector<4x32xf32>
    %478 = tpu.matmul %475, %477, %cst_486 {dimension_numbers = #tpu.dot_dimension_numbers<[1], [0], [0], [1], [0, 0, 1, 1], [], []>} : vector<4x32xbf16>, vector<32x32xbf16>, vector<4x32xf32> -> vector<4x32xf32>
    %479 = arith.addf %474, %478 : vector<4x32xf32>
    %480 = vector.broadcast %205 : vector<1x32xf32> to vector<4x32xf32>
    %481 = arith.addf %479, %480 : vector<4x32xf32>
    %cst_487 = arith.constant 3.000000e-01 : f32
    %482 = vector.broadcast %cst_487 : f32 to vector<4x32xf32>
    %483 = arith.subf %481, %482 : vector<4x32xf32>
    %cst_488 = arith.constant 0.000000e+00 : f32
    %484 = vector.broadcast %cst_488 : f32 to vector<4x32xf32>
    %485 = arith.maximumf %483, %484 : vector<4x32xf32>
    %486 = arith.addf %481, %485 : vector<4x32xf32>
    %cst_489 = arith.constant 0.000000e+00 : f32
    %487 = vector.broadcast %cst_489 : f32 to vector<4x32xf32>
    %488 = arith.maximumf %486, %487 : vector<4x32xf32>
    %c0_490 = arith.constant 0 : index
    %c1_491 = arith.constant 1 : index
    %c0_492 = arith.constant 0 : index
    %c0_493 = arith.constant 0 : index
    %489 = vector.load %arg8[%c0_490, %c1_491, %c0_492, %c0_493] : memref<1x4x4x32xf32, #tpu.memory_space<vmem>>, vector<1x1x4x32xf32>
    %490 = vector.shape_cast %489 : vector<1x1x4x32xf32> to vector<4x32xf32>
    %491 = vector.shape_cast %488 : vector<4x32xf32> to vector<1x1x4x32xf32>
    tpu.vector_store %arg8[%c0_490, %c1_491, %c0_492, %c0_493], %491 {strides = array<i32>} : memref<1x4x4x32xf32, #tpu.memory_space<vmem>>, vector<1x1x4x32xf32>,
    %cst_494 = arith.constant 1.000000e+02 : f32
    %492 = vector.broadcast %cst_494 : f32 to vector<4x32xf32>
    %493 = arith.divf %488, %492 : vector<4x32xf32>
    %494 = math.floor %493 : vector<4x32xf32>
    %cst_495 = arith.constant 1.400000e+01 : f32
    %495 = vector.broadcast %cst_495 : f32 to vector<4x32xf32>
    %496 = arith.addf %494, %495 : vector<4x32xf32>
    %c0_496 = arith.constant 0 : index
    %c1_497 = arith.constant 1 : index
    %c0_498 = arith.constant 0 : index
    %c0_499 = arith.constant 0 : index
    %497 = vector.load %arg7[%c0_496, %c1_497, %c0_498, %c0_499] : memref<1x4x4x32xf32, #tpu.memory_space<vmem>>, vector<1x1x4x32xf32>
    %498 = vector.shape_cast %497 : vector<1x1x4x32xf32> to vector<4x32xf32>
    %499 = vector.shape_cast %496 : vector<4x32xf32> to vector<1x1x4x32xf32>
    tpu.vector_store %arg7[%c0_496, %c1_497, %c0_498, %c0_499], %499 {strides = array<i32>} : memref<1x4x4x32xf32, #tpu.memory_space<vmem>>, vector<1x1x4x32xf32>,
    %cst_500 = arith.constant 0.000000e+00 : f32
    %500 = vector.broadcast %cst_500 : f32 to vector<4x32xf32>
    %c3_501 = arith.constant 3 : index
    %c2_502 = arith.constant 2 : index
    %c0_503 = arith.constant 0 : index
    %c0_504 = arith.constant 0 : index
    %501 = vector.load %arg9[%c3_501, %c2_502, %c0_503, %c0_504] : memref<4x5x8x32xf32, #tpu.memory_space<vmem>>, vector<1x1x4x32xf32>
    %502 = vector.shape_cast %501 : vector<1x1x4x32xf32> to vector<4x32xf32>
    %c3_505 = arith.constant 3 : index
    %c2_506 = arith.constant 2 : index
    %c0_507 = arith.constant 0 : index
    %c0_508 = arith.constant 0 : index
    %503 = vector.load %arg10[%c3_505, %c2_506, %c0_507, %c0_508] : memref<4x5x8x32xf32, #tpu.memory_space<vmem>>, vector<1x1x4x32xf32>
    %504 = vector.shape_cast %503 : vector<1x1x4x32xf32> to vector<4x32xf32>
    %505 = arith.truncf %502 : vector<4x32xf32> to vector<4x32xbf16>
    %c0_509 = arith.constant 0 : index
    %c0_510 = arith.constant 0 : index
    %c0_511 = arith.constant 0 : index
    %506 = vector.load %arg4[%c0_509, %c0_510, %c0_511] : memref<9x32x32xbf16, #tpu.memory_space<vmem>>, vector<1x32x32xbf16>
    %507 = vector.shape_cast %506 : vector<1x32x32xbf16> to vector<32x32xbf16>
    %cst_512 = arith.constant dense<0.000000e+00> : vector<4x32xf32>
    %508 = tpu.matmul %505, %507, %cst_512 {dimension_numbers = #tpu.dot_dimension_numbers<[1], [0], [0], [1], [0, 0, 1, 1], [], []>} : vector<4x32xbf16>, vector<32x32xbf16>, vector<4x32xf32> -> vector<4x32xf32>
    %509 = arith.addf %500, %508 : vector<4x32xf32>
    %510 = arith.truncf %504 : vector<4x32xf32> to vector<4x32xbf16>
    %c0_513 = arith.constant 0 : index
    %c0_514 = arith.constant 0 : index
    %c0_515 = arith.constant 0 : index
    %511 = vector.load %arg5[%c0_513, %c0_514, %c0_515] : memref<9x32x32xbf16, #tpu.memory_space<vmem>>, vector<1x32x32xbf16>
    %512 = vector.shape_cast %511 : vector<1x32x32xbf16> to vector<32x32xbf16>
    %cst_516 = arith.constant dense<0.000000e+00> : vector<4x32xf32>
    %513 = tpu.matmul %510, %512, %cst_516 {dimension_numbers = #tpu.dot_dimension_numbers<[1], [0], [0], [1], [0, 0, 1, 1], [], []>} : vector<4x32xbf16>, vector<32x32xbf16>, vector<4x32xf32> -> vector<4x32xf32>
    %514 = arith.addf %509, %513 : vector<4x32xf32>
    %c2_517 = arith.constant 2 : index
    %c2_518 = arith.constant 2 : index
    %c0_519 = arith.constant 0 : index
    %c0_520 = arith.constant 0 : index
    %515 = vector.load %arg9[%c2_517, %c2_518, %c0_519, %c0_520] : memref<4x5x8x32xf32, #tpu.memory_space<vmem>>, vector<1x1x4x32xf32>
    %516 = vector.shape_cast %515 : vector<1x1x4x32xf32> to vector<4x32xf32>
    %c2_521 = arith.constant 2 : index
    %c2_522 = arith.constant 2 : index
    %c0_523 = arith.constant 0 : index
    %c0_524 = arith.constant 0 : index
    %517 = vector.load %arg10[%c2_521, %c2_522, %c0_523, %c0_524] : memref<4x5x8x32xf32, #tpu.memory_space<vmem>>, vector<1x1x4x32xf32>
    %518 = vector.shape_cast %517 : vector<1x1x4x32xf32> to vector<4x32xf32>
    %519 = arith.truncf %516 : vector<4x32xf32> to vector<4x32xbf16>
    %c1_525 = arith.constant 1 : index
    %c0_526 = arith.constant 0 : index
    %c0_527 = arith.constant 0 : index
    %520 = vector.load %arg4[%c1_525, %c0_526, %c0_527] : memref<9x32x32xbf16, #tpu.memory_space<vmem>>, vector<1x32x32xbf16>
    %521 = vector.shape_cast %520 : vector<1x32x32xbf16> to vector<32x32xbf16>
    %cst_528 = arith.constant dense<0.000000e+00> : vector<4x32xf32>
    %522 = tpu.matmul %519, %521, %cst_528 {dimension_numbers = #tpu.dot_dimension_numbers<[1], [0], [0], [1], [0, 0, 1, 1], [], []>} : vector<4x32xbf16>, vector<32x32xbf16>, vector<4x32xf32> -> vector<4x32xf32>
    %523 = arith.addf %514, %522 : vector<4x32xf32>
    %524 = arith.truncf %518 : vector<4x32xf32> to vector<4x32xbf16>
    %c1_529 = arith.constant 1 : index
    %c0_530 = arith.constant 0 : index
    %c0_531 = arith.constant 0 : index
    %525 = vector.load %arg5[%c1_529, %c0_530, %c0_531] : memref<9x32x32xbf16, #tpu.memory_space<vmem>>, vector<1x32x32xbf16>
    %526 = vector.shape_cast %525 : vector<1x32x32xbf16> to vector<32x32xbf16>
    %cst_532 = arith.constant dense<0.000000e+00> : vector<4x32xf32>
    %527 = tpu.matmul %524, %526, %cst_532 {dimension_numbers = #tpu.dot_dimension_numbers<[1], [0], [0], [1], [0, 0, 1, 1], [], []>} : vector<4x32xbf16>, vector<32x32xbf16>, vector<4x32xf32> -> vector<4x32xf32>
    %528 = arith.addf %523, %527 : vector<4x32xf32>
    %c3_533 = arith.constant 3 : index
    %c2_534 = arith.constant 2 : index
    %c1_535 = arith.constant 1 : index
    %c0_536 = arith.constant 0 : index
    %529 = vector.load %arg9[%c3_533, %c2_534, %c1_535, %c0_536] : memref<4x5x8x32xf32, #tpu.memory_space<vmem>>, vector<1x1x4x32xf32>
    %530 = vector.shape_cast %529 : vector<1x1x4x32xf32> to vector<4x32xf32>
    %c3_537 = arith.constant 3 : index
    %c2_538 = arith.constant 2 : index
    %c1_539 = arith.constant 1 : index
    %c0_540 = arith.constant 0 : index
    %531 = vector.load %arg10[%c3_537, %c2_538, %c1_539, %c0_540] : memref<4x5x8x32xf32, #tpu.memory_space<vmem>>, vector<1x1x4x32xf32>
    %532 = vector.shape_cast %531 : vector<1x1x4x32xf32> to vector<4x32xf32>
    %533 = arith.truncf %530 : vector<4x32xf32> to vector<4x32xbf16>
    %c2_541 = arith.constant 2 : index
    %c0_542 = arith.constant 0 : index
    %c0_543 = arith.constant 0 : index
    %534 = vector.load %arg4[%c2_541, %c0_542, %c0_543] : memref<9x32x32xbf16, #tpu.memory_space<vmem>>, vector<1x32x32xbf16>
    %535 = vector.shape_cast %534 : vector<1x32x32xbf16> to vector<32x32xbf16>
    %cst_544 = arith.constant dense<0.000000e+00> : vector<4x32xf32>
    %536 = tpu.matmul %533, %535, %cst_544 {dimension_numbers = #tpu.dot_dimension_numbers<[1], [0], [0], [1], [0, 0, 1, 1], [], []>} : vector<4x32xbf16>, vector<32x32xbf16>, vector<4x32xf32> -> vector<4x32xf32>
    %537 = arith.addf %528, %536 : vector<4x32xf32>
    %538 = arith.truncf %532 : vector<4x32xf32> to vector<4x32xbf16>
    %c2_545 = arith.constant 2 : index
    %c0_546 = arith.constant 0 : index
    %c0_547 = arith.constant 0 : index
    %539 = vector.load %arg5[%c2_545, %c0_546, %c0_547] : memref<9x32x32xbf16, #tpu.memory_space<vmem>>, vector<1x32x32xbf16>
    %540 = vector.shape_cast %539 : vector<1x32x32xbf16> to vector<32x32xbf16>
    %cst_548 = arith.constant dense<0.000000e+00> : vector<4x32xf32>
    %541 = tpu.matmul %538, %540, %cst_548 {dimension_numbers = #tpu.dot_dimension_numbers<[1], [0], [0], [1], [0, 0, 1, 1], [], []>} : vector<4x32xbf16>, vector<32x32xbf16>, vector<4x32xf32> -> vector<4x32xf32>
    %542 = arith.addf %537, %541 : vector<4x32xf32>
    %c1_549 = arith.constant 1 : index
    %c2_550 = arith.constant 2 : index
    %c0_551 = arith.constant 0 : index
    %c0_552 = arith.constant 0 : index
    %543 = vector.load %arg9[%c1_549, %c2_550, %c0_551, %c0_552] : memref<4x5x8x32xf32, #tpu.memory_space<vmem>>, vector<1x1x4x32xf32>
    %544 = vector.shape_cast %543 : vector<1x1x4x32xf32> to vector<4x32xf32>
    %c1_553 = arith.constant 1 : index
    %c2_554 = arith.constant 2 : index
    %c0_555 = arith.constant 0 : index
    %c0_556 = arith.constant 0 : index
    %545 = vector.load %arg10[%c1_553, %c2_554, %c0_555, %c0_556] : memref<4x5x8x32xf32, #tpu.memory_space<vmem>>, vector<1x1x4x32xf32>
    %546 = vector.shape_cast %545 : vector<1x1x4x32xf32> to vector<4x32xf32>
    %547 = arith.truncf %544 : vector<4x32xf32> to vector<4x32xbf16>
    %c3_557 = arith.constant 3 : index
    %c0_558 = arith.constant 0 : index
    %c0_559 = arith.constant 0 : index
    %548 = vector.load %arg4[%c3_557, %c0_558, %c0_559] : memref<9x32x32xbf16, #tpu.memory_space<vmem>>, vector<1x32x32xbf16>
    %549 = vector.shape_cast %548 : vector<1x32x32xbf16> to vector<32x32xbf16>
    %cst_560 = arith.constant dense<0.000000e+00> : vector<4x32xf32>
    %550 = tpu.matmul %547, %549, %cst_560 {dimension_numbers = #tpu.dot_dimension_numbers<[1], [0], [0], [1], [0, 0, 1, 1], [], []>} : vector<4x32xbf16>, vector<32x32xbf16>, vector<4x32xf32> -> vector<4x32xf32>
    %551 = arith.addf %542, %550 : vector<4x32xf32>
    %552 = arith.truncf %546 : vector<4x32xf32> to vector<4x32xbf16>
    %c3_561 = arith.constant 3 : index
    %c0_562 = arith.constant 0 : index
    %c0_563 = arith.constant 0 : index
    %553 = vector.load %arg5[%c3_561, %c0_562, %c0_563] : memref<9x32x32xbf16, #tpu.memory_space<vmem>>, vector<1x32x32xbf16>
    %554 = vector.shape_cast %553 : vector<1x32x32xbf16> to vector<32x32xbf16>
    %cst_564 = arith.constant dense<0.000000e+00> : vector<4x32xf32>
    %555 = tpu.matmul %552, %554, %cst_564 {dimension_numbers = #tpu.dot_dimension_numbers<[1], [0], [0], [1], [0, 0, 1, 1], [], []>} : vector<4x32xbf16>, vector<32x32xbf16>, vector<4x32xf32> -> vector<4x32xf32>
    %556 = arith.addf %551, %555 : vector<4x32xf32>
    %c0_565 = arith.constant 0 : index
    %c2_566 = arith.constant 2 : index
    %c0_567 = arith.constant 0 : index
    %c0_568 = arith.constant 0 : index
    %557 = vector.load %arg9[%c0_565, %c2_566, %c0_567, %c0_568] : memref<4x5x8x32xf32, #tpu.memory_space<vmem>>, vector<1x1x4x32xf32>
    %558 = vector.shape_cast %557 : vector<1x1x4x32xf32> to vector<4x32xf32>
    %c0_569 = arith.constant 0 : index
    %c2_570 = arith.constant 2 : index
    %c0_571 = arith.constant 0 : index
    %c0_572 = arith.constant 0 : index
    %559 = vector.load %arg10[%c0_569, %c2_570, %c0_571, %c0_572] : memref<4x5x8x32xf32, #tpu.memory_space<vmem>>, vector<1x1x4x32xf32>
    %560 = vector.shape_cast %559 : vector<1x1x4x32xf32> to vector<4x32xf32>
    %561 = arith.truncf %558 : vector<4x32xf32> to vector<4x32xbf16>
    %c4_573 = arith.constant 4 : index
    %c0_574 = arith.constant 0 : index
    %c0_575 = arith.constant 0 : index
    %562 = vector.load %arg4[%c4_573, %c0_574, %c0_575] : memref<9x32x32xbf16, #tpu.memory_space<vmem>>, vector<1x32x32xbf16>
    %563 = vector.shape_cast %562 : vector<1x32x32xbf16> to vector<32x32xbf16>
    %cst_576 = arith.constant dense<0.000000e+00> : vector<4x32xf32>
    %564 = tpu.matmul %561, %563, %cst_576 {dimension_numbers = #tpu.dot_dimension_numbers<[1], [0], [0], [1], [0, 0, 1, 1], [], []>} : vector<4x32xbf16>, vector<32x32xbf16>, vector<4x32xf32> -> vector<4x32xf32>
    %565 = arith.addf %556, %564 : vector<4x32xf32>
    %566 = arith.truncf %560 : vector<4x32xf32> to vector<4x32xbf16>
    %c4_577 = arith.constant 4 : index
    %c0_578 = arith.constant 0 : index
    %c0_579 = arith.constant 0 : index
    %567 = vector.load %arg5[%c4_577, %c0_578, %c0_579] : memref<9x32x32xbf16, #tpu.memory_space<vmem>>, vector<1x32x32xbf16>
    %568 = vector.shape_cast %567 : vector<1x32x32xbf16> to vector<32x32xbf16>
    %cst_580 = arith.constant dense<0.000000e+00> : vector<4x32xf32>
    %569 = tpu.matmul %566, %568, %cst_580 {dimension_numbers = #tpu.dot_dimension_numbers<[1], [0], [0], [1], [0, 0, 1, 1], [], []>} : vector<4x32xbf16>, vector<32x32xbf16>, vector<4x32xf32> -> vector<4x32xf32>
    %570 = arith.addf %565, %569 : vector<4x32xf32>
    %c1_581 = arith.constant 1 : index
    %c2_582 = arith.constant 2 : index
    %c1_583 = arith.constant 1 : index
    %c0_584 = arith.constant 0 : index
    %571 = vector.load %arg9[%c1_581, %c2_582, %c1_583, %c0_584] : memref<4x5x8x32xf32, #tpu.memory_space<vmem>>, vector<1x1x4x32xf32>
    %572 = vector.shape_cast %571 : vector<1x1x4x32xf32> to vector<4x32xf32>
    %c1_585 = arith.constant 1 : index
    %c2_586 = arith.constant 2 : index
    %c1_587 = arith.constant 1 : index
    %c0_588 = arith.constant 0 : index
    %573 = vector.load %arg10[%c1_585, %c2_586, %c1_587, %c0_588] : memref<4x5x8x32xf32, #tpu.memory_space<vmem>>, vector<1x1x4x32xf32>
    %574 = vector.shape_cast %573 : vector<1x1x4x32xf32> to vector<4x32xf32>
    %575 = arith.truncf %572 : vector<4x32xf32> to vector<4x32xbf16>
    %c5_589 = arith.constant 5 : index
    %c0_590 = arith.constant 0 : index
    %c0_591 = arith.constant 0 : index
    %576 = vector.load %arg4[%c5_589, %c0_590, %c0_591] : memref<9x32x32xbf16, #tpu.memory_space<vmem>>, vector<1x32x32xbf16>
    %577 = vector.shape_cast %576 : vector<1x32x32xbf16> to vector<32x32xbf16>
    %cst_592 = arith.constant dense<0.000000e+00> : vector<4x32xf32>
    %578 = tpu.matmul %575, %577, %cst_592 {dimension_numbers = #tpu.dot_dimension_numbers<[1], [0], [0], [1], [0, 0, 1, 1], [], []>} : vector<4x32xbf16>, vector<32x32xbf16>, vector<4x32xf32> -> vector<4x32xf32>
    %579 = arith.addf %570, %578 : vector<4x32xf32>
    %580 = arith.truncf %574 : vector<4x32xf32> to vector<4x32xbf16>
    %c5_593 = arith.constant 5 : index
    %c0_594 = arith.constant 0 : index
    %c0_595 = arith.constant 0 : index
    %581 = vector.load %arg5[%c5_593, %c0_594, %c0_595] : memref<9x32x32xbf16, #tpu.memory_space<vmem>>, vector<1x32x32xbf16>
    %582 = vector.shape_cast %581 : vector<1x32x32xbf16> to vector<32x32xbf16>
    %cst_596 = arith.constant dense<0.000000e+00> : vector<4x32xf32>
    %583 = tpu.matmul %580, %582, %cst_596 {dimension_numbers = #tpu.dot_dimension_numbers<[1], [0], [0], [1], [0, 0, 1, 1], [], []>} : vector<4x32xbf16>, vector<32x32xbf16>, vector<4x32xf32> -> vector<4x32xf32>
    %584 = arith.addf %579, %583 : vector<4x32xf32>
    %c3_597 = arith.constant 3 : index
    %c3_598 = arith.constant 3 : index
    %c0_599 = arith.constant 0 : index
    %c0_600 = arith.constant 0 : index
    %585 = vector.load %arg9[%c3_597, %c3_598, %c0_599, %c0_600] : memref<4x5x8x32xf32, #tpu.memory_space<vmem>>, vector<1x1x4x32xf32>
    %586 = vector.shape_cast %585 : vector<1x1x4x32xf32> to vector<4x32xf32>
    %c3_601 = arith.constant 3 : index
    %c3_602 = arith.constant 3 : index
    %c0_603 = arith.constant 0 : index
    %c0_604 = arith.constant 0 : index
    %587 = vector.load %arg10[%c3_601, %c3_602, %c0_603, %c0_604] : memref<4x5x8x32xf32, #tpu.memory_space<vmem>>, vector<1x1x4x32xf32>
    %588 = vector.shape_cast %587 : vector<1x1x4x32xf32> to vector<4x32xf32>
    %589 = arith.truncf %586 : vector<4x32xf32> to vector<4x32xbf16>
    %c6_605 = arith.constant 6 : index
    %c0_606 = arith.constant 0 : index
    %c0_607 = arith.constant 0 : index
    %590 = vector.load %arg4[%c6_605, %c0_606, %c0_607] : memref<9x32x32xbf16, #tpu.memory_space<vmem>>, vector<1x32x32xbf16>
    %591 = vector.shape_cast %590 : vector<1x32x32xbf16> to vector<32x32xbf16>
    %cst_608 = arith.constant dense<0.000000e+00> : vector<4x32xf32>
    %592 = tpu.matmul %589, %591, %cst_608 {dimension_numbers = #tpu.dot_dimension_numbers<[1], [0], [0], [1], [0, 0, 1, 1], [], []>} : vector<4x32xbf16>, vector<32x32xbf16>, vector<4x32xf32> -> vector<4x32xf32>
    %593 = arith.addf %584, %592 : vector<4x32xf32>
    %594 = arith.truncf %588 : vector<4x32xf32> to vector<4x32xbf16>
    %c6_609 = arith.constant 6 : index
    %c0_610 = arith.constant 0 : index
    %c0_611 = arith.constant 0 : index
    %595 = vector.load %arg5[%c6_609, %c0_610, %c0_611] : memref<9x32x32xbf16, #tpu.memory_space<vmem>>, vector<1x32x32xbf16>
    %596 = vector.shape_cast %595 : vector<1x32x32xbf16> to vector<32x32xbf16>
    %cst_612 = arith.constant dense<0.000000e+00> : vector<4x32xf32>
    %597 = tpu.matmul %594, %596, %cst_612 {dimension_numbers = #tpu.dot_dimension_numbers<[1], [0], [0], [1], [0, 0, 1, 1], [], []>} : vector<4x32xbf16>, vector<32x32xbf16>, vector<4x32xf32> -> vector<4x32xf32>
    %598 = arith.addf %593, %597 : vector<4x32xf32>
    %c2_613 = arith.constant 2 : index
    %c3_614 = arith.constant 3 : index
    %c0_615 = arith.constant 0 : index
    %c0_616 = arith.constant 0 : index
    %599 = vector.load %arg9[%c2_613, %c3_614, %c0_615, %c0_616] : memref<4x5x8x32xf32, #tpu.memory_space<vmem>>, vector<1x1x4x32xf32>
    %600 = vector.shape_cast %599 : vector<1x1x4x32xf32> to vector<4x32xf32>
    %c2_617 = arith.constant 2 : index
    %c3_618 = arith.constant 3 : index
    %c0_619 = arith.constant 0 : index
    %c0_620 = arith.constant 0 : index
    %601 = vector.load %arg10[%c2_617, %c3_618, %c0_619, %c0_620] : memref<4x5x8x32xf32, #tpu.memory_space<vmem>>, vector<1x1x4x32xf32>
    %602 = vector.shape_cast %601 : vector<1x1x4x32xf32> to vector<4x32xf32>
    %603 = arith.truncf %600 : vector<4x32xf32> to vector<4x32xbf16>
    %c7_621 = arith.constant 7 : index
    %c0_622 = arith.constant 0 : index
    %c0_623 = arith.constant 0 : index
    %604 = vector.load %arg4[%c7_621, %c0_622, %c0_623] : memref<9x32x32xbf16, #tpu.memory_space<vmem>>, vector<1x32x32xbf16>
    %605 = vector.shape_cast %604 : vector<1x32x32xbf16> to vector<32x32xbf16>
    %cst_624 = arith.constant dense<0.000000e+00> : vector<4x32xf32>
    %606 = tpu.matmul %603, %605, %cst_624 {dimension_numbers = #tpu.dot_dimension_numbers<[1], [0], [0], [1], [0, 0, 1, 1], [], []>} : vector<4x32xbf16>, vector<32x32xbf16>, vector<4x32xf32> -> vector<4x32xf32>
    %607 = arith.addf %598, %606 : vector<4x32xf32>
    %608 = arith.truncf %602 : vector<4x32xf32> to vector<4x32xbf16>
    %c7_625 = arith.constant 7 : index
    %c0_626 = arith.constant 0 : index
    %c0_627 = arith.constant 0 : index
    %609 = vector.load %arg5[%c7_625, %c0_626, %c0_627] : memref<9x32x32xbf16, #tpu.memory_space<vmem>>, vector<1x32x32xbf16>
    %610 = vector.shape_cast %609 : vector<1x32x32xbf16> to vector<32x32xbf16>
    %cst_628 = arith.constant dense<0.000000e+00> : vector<4x32xf32>
    %611 = tpu.matmul %608, %610, %cst_628 {dimension_numbers = #tpu.dot_dimension_numbers<[1], [0], [0], [1], [0, 0, 1, 1], [], []>} : vector<4x32xbf16>, vector<32x32xbf16>, vector<4x32xf32> -> vector<4x32xf32>
    %612 = arith.addf %607, %611 : vector<4x32xf32>
    %c3_629 = arith.constant 3 : index
    %c3_630 = arith.constant 3 : index
    %c1_631 = arith.constant 1 : index
    %c0_632 = arith.constant 0 : index
    %613 = vector.load %arg9[%c3_629, %c3_630, %c1_631, %c0_632] : memref<4x5x8x32xf32, #tpu.memory_space<vmem>>, vector<1x1x4x32xf32>
    %614 = vector.shape_cast %613 : vector<1x1x4x32xf32> to vector<4x32xf32>
    %c3_633 = arith.constant 3 : index
    %c3_634 = arith.constant 3 : index
    %c1_635 = arith.constant 1 : index
    %c0_636 = arith.constant 0 : index
    %615 = vector.load %arg10[%c3_633, %c3_634, %c1_635, %c0_636] : memref<4x5x8x32xf32, #tpu.memory_space<vmem>>, vector<1x1x4x32xf32>
    %616 = vector.shape_cast %615 : vector<1x1x4x32xf32> to vector<4x32xf32>
    %617 = arith.truncf %614 : vector<4x32xf32> to vector<4x32xbf16>
    %c8_637 = arith.constant 8 : index
    %c0_638 = arith.constant 0 : index
    %c0_639 = arith.constant 0 : index
    %618 = vector.load %arg4[%c8_637, %c0_638, %c0_639] : memref<9x32x32xbf16, #tpu.memory_space<vmem>>, vector<1x32x32xbf16>
    %619 = vector.shape_cast %618 : vector<1x32x32xbf16> to vector<32x32xbf16>
    %cst_640 = arith.constant dense<0.000000e+00> : vector<4x32xf32>
    %620 = tpu.matmul %617, %619, %cst_640 {dimension_numbers = #tpu.dot_dimension_numbers<[1], [0], [0], [1], [0, 0, 1, 1], [], []>} : vector<4x32xbf16>, vector<32x32xbf16>, vector<4x32xf32> -> vector<4x32xf32>
    %621 = arith.addf %612, %620 : vector<4x32xf32>
    %622 = arith.truncf %616 : vector<4x32xf32> to vector<4x32xbf16>
    %c8_641 = arith.constant 8 : index
    %c0_642 = arith.constant 0 : index
    %c0_643 = arith.constant 0 : index
    %623 = vector.load %arg5[%c8_641, %c0_642, %c0_643] : memref<9x32x32xbf16, #tpu.memory_space<vmem>>, vector<1x32x32xbf16>
    %624 = vector.shape_cast %623 : vector<1x32x32xbf16> to vector<32x32xbf16>
    %cst_644 = arith.constant dense<0.000000e+00> : vector<4x32xf32>
    %625 = tpu.matmul %622, %624, %cst_644 {dimension_numbers = #tpu.dot_dimension_numbers<[1], [0], [0], [1], [0, 0, 1, 1], [], []>} : vector<4x32xbf16>, vector<32x32xbf16>, vector<4x32xf32> -> vector<4x32xf32>
    %626 = arith.addf %621, %625 : vector<4x32xf32>
    %627 = vector.broadcast %205 : vector<1x32xf32> to vector<4x32xf32>
    %628 = arith.addf %626, %627 : vector<4x32xf32>
    %cst_645 = arith.constant 3.000000e-01 : f32
    %629 = vector.broadcast %cst_645 : f32 to vector<4x32xf32>
    %630 = arith.subf %628, %629 : vector<4x32xf32>
    %cst_646 = arith.constant 0.000000e+00 : f32
    %631 = vector.broadcast %cst_646 : f32 to vector<4x32xf32>
    %632 = arith.maximumf %630, %631 : vector<4x32xf32>
    %633 = arith.addf %628, %632 : vector<4x32xf32>
    %cst_647 = arith.constant 0.000000e+00 : f32
    %634 = vector.broadcast %cst_647 : f32 to vector<4x32xf32>
    %635 = arith.maximumf %633, %634 : vector<4x32xf32>
    %c0_648 = arith.constant 0 : index
    %c2_649 = arith.constant 2 : index
    %c0_650 = arith.constant 0 : index
    %c0_651 = arith.constant 0 : index
    %636 = vector.load %arg8[%c0_648, %c2_649, %c0_650, %c0_651] : memref<1x4x4x32xf32, #tpu.memory_space<vmem>>, vector<1x1x4x32xf32>
    %637 = vector.shape_cast %636 : vector<1x1x4x32xf32> to vector<4x32xf32>
    %638 = vector.shape_cast %635 : vector<4x32xf32> to vector<1x1x4x32xf32>
    tpu.vector_store %arg8[%c0_648, %c2_649, %c0_650, %c0_651], %638 {strides = array<i32>} : memref<1x4x4x32xf32, #tpu.memory_space<vmem>>, vector<1x1x4x32xf32>,
    %cst_652 = arith.constant 1.000000e+02 : f32
    %639 = vector.broadcast %cst_652 : f32 to vector<4x32xf32>
    %640 = arith.divf %635, %639 : vector<4x32xf32>
    %641 = math.floor %640 : vector<4x32xf32>
    %cst_653 = arith.constant 1.400000e+01 : f32
    %642 = vector.broadcast %cst_653 : f32 to vector<4x32xf32>
    %643 = arith.addf %641, %642 : vector<4x32xf32>
    %c0_654 = arith.constant 0 : index
    %c2_655 = arith.constant 2 : index
    %c0_656 = arith.constant 0 : index
    %c0_657 = arith.constant 0 : index
    %644 = vector.load %arg7[%c0_654, %c2_655, %c0_656, %c0_657] : memref<1x4x4x32xf32, #tpu.memory_space<vmem>>, vector<1x1x4x32xf32>
    %645 = vector.shape_cast %644 : vector<1x1x4x32xf32> to vector<4x32xf32>
    %646 = vector.shape_cast %643 : vector<4x32xf32> to vector<1x1x4x32xf32>
    tpu.vector_store %arg7[%c0_654, %c2_655, %c0_656, %c0_657], %646 {strides = array<i32>} : memref<1x4x4x32xf32, #tpu.memory_space<vmem>>, vector<1x1x4x32xf32>,
    %cst_658 = arith.constant 0.000000e+00 : f32
    %647 = vector.broadcast %cst_658 : f32 to vector<4x32xf32>
    %c3_659 = arith.constant 3 : index
    %c3_660 = arith.constant 3 : index
    %c0_661 = arith.constant 0 : index
    %c0_662 = arith.constant 0 : index
    %648 = vector.load %arg9[%c3_659, %c3_660, %c0_661, %c0_662] : memref<4x5x8x32xf32, #tpu.memory_space<vmem>>, vector<1x1x4x32xf32>
    %649 = vector.shape_cast %648 : vector<1x1x4x32xf32> to vector<4x32xf32>
    %c3_663 = arith.constant 3 : index
    %c3_664 = arith.constant 3 : index
    %c0_665 = arith.constant 0 : index
    %c0_666 = arith.constant 0 : index
    %650 = vector.load %arg10[%c3_663, %c3_664, %c0_665, %c0_666] : memref<4x5x8x32xf32, #tpu.memory_space<vmem>>, vector<1x1x4x32xf32>
    %651 = vector.shape_cast %650 : vector<1x1x4x32xf32> to vector<4x32xf32>
    %652 = arith.truncf %649 : vector<4x32xf32> to vector<4x32xbf16>
    %c0_667 = arith.constant 0 : index
    %c0_668 = arith.constant 0 : index
    %c0_669 = arith.constant 0 : index
    %653 = vector.load %arg4[%c0_667, %c0_668, %c0_669] : memref<9x32x32xbf16, #tpu.memory_space<vmem>>, vector<1x32x32xbf16>
    %654 = vector.shape_cast %653 : vector<1x32x32xbf16> to vector<32x32xbf16>
    %cst_670 = arith.constant dense<0.000000e+00> : vector<4x32xf32>
    %655 = tpu.matmul %652, %654, %cst_670 {dimension_numbers = #tpu.dot_dimension_numbers<[1], [0], [0], [1], [0, 0, 1, 1], [], []>} : vector<4x32xbf16>, vector<32x32xbf16>, vector<4x32xf32> -> vector<4x32xf32>
    %656 = arith.addf %647, %655 : vector<4x32xf32>
    %657 = arith.truncf %651 : vector<4x32xf32> to vector<4x32xbf16>
    %c0_671 = arith.constant 0 : index
    %c0_672 = arith.constant 0 : index
    %c0_673 = arith.constant 0 : index
    %658 = vector.load %arg5[%c0_671, %c0_672, %c0_673] : memref<9x32x32xbf16, #tpu.memory_space<vmem>>, vector<1x32x32xbf16>
    %659 = vector.shape_cast %658 : vector<1x32x32xbf16> to vector<32x32xbf16>
    %cst_674 = arith.constant dense<0.000000e+00> : vector<4x32xf32>
    %660 = tpu.matmul %657, %659, %cst_674 {dimension_numbers = #tpu.dot_dimension_numbers<[1], [0], [0], [1], [0, 0, 1, 1], [], []>} : vector<4x32xbf16>, vector<32x32xbf16>, vector<4x32xf32> -> vector<4x32xf32>
    %661 = arith.addf %656, %660 : vector<4x32xf32>
    %c2_675 = arith.constant 2 : index
    %c3_676 = arith.constant 3 : index
    %c0_677 = arith.constant 0 : index
    %c0_678 = arith.constant 0 : index
    %662 = vector.load %arg9[%c2_675, %c3_676, %c0_677, %c0_678] : memref<4x5x8x32xf32, #tpu.memory_space<vmem>>, vector<1x1x4x32xf32>
    %663 = vector.shape_cast %662 : vector<1x1x4x32xf32> to vector<4x32xf32>
    %c2_679 = arith.constant 2 : index
    %c3_680 = arith.constant 3 : index
    %c0_681 = arith.constant 0 : index
    %c0_682 = arith.constant 0 : index
    %664 = vector.load %arg10[%c2_679, %c3_680, %c0_681, %c0_682] : memref<4x5x8x32xf32, #tpu.memory_space<vmem>>, vector<1x1x4x32xf32>
    %665 = vector.shape_cast %664 : vector<1x1x4x32xf32> to vector<4x32xf32>
    %666 = arith.truncf %663 : vector<4x32xf32> to vector<4x32xbf16>
    %c1_683 = arith.constant 1 : index
    %c0_684 = arith.constant 0 : index
    %c0_685 = arith.constant 0 : index
    %667 = vector.load %arg4[%c1_683, %c0_684, %c0_685] : memref<9x32x32xbf16, #tpu.memory_space<vmem>>, vector<1x32x32xbf16>
    %668 = vector.shape_cast %667 : vector<1x32x32xbf16> to vector<32x32xbf16>
    %cst_686 = arith.constant dense<0.000000e+00> : vector<4x32xf32>
    %669 = tpu.matmul %666, %668, %cst_686 {dimension_numbers = #tpu.dot_dimension_numbers<[1], [0], [0], [1], [0, 0, 1, 1], [], []>} : vector<4x32xbf16>, vector<32x32xbf16>, vector<4x32xf32> -> vector<4x32xf32>
    %670 = arith.addf %661, %669 : vector<4x32xf32>
    %671 = arith.truncf %665 : vector<4x32xf32> to vector<4x32xbf16>
    %c1_687 = arith.constant 1 : index
    %c0_688 = arith.constant 0 : index
    %c0_689 = arith.constant 0 : index
    %672 = vector.load %arg5[%c1_687, %c0_688, %c0_689] : memref<9x32x32xbf16, #tpu.memory_space<vmem>>, vector<1x32x32xbf16>
    %673 = vector.shape_cast %672 : vector<1x32x32xbf16> to vector<32x32xbf16>
    %cst_690 = arith.constant dense<0.000000e+00> : vector<4x32xf32>
    %674 = tpu.matmul %671, %673, %cst_690 {dimension_numbers = #tpu.dot_dimension_numbers<[1], [0], [0], [1], [0, 0, 1, 1], [], []>} : vector<4x32xbf16>, vector<32x32xbf16>, vector<4x32xf32> -> vector<4x32xf32>
    %675 = arith.addf %670, %674 : vector<4x32xf32>
    %c3_691 = arith.constant 3 : index
    %c3_692 = arith.constant 3 : index
    %c1_693 = arith.constant 1 : index
    %c0_694 = arith.constant 0 : index
    %676 = vector.load %arg9[%c3_691, %c3_692, %c1_693, %c0_694] : memref<4x5x8x32xf32, #tpu.memory_space<vmem>>, vector<1x1x4x32xf32>
    %677 = vector.shape_cast %676 : vector<1x1x4x32xf32> to vector<4x32xf32>
    %c3_695 = arith.constant 3 : index
    %c3_696 = arith.constant 3 : index
    %c1_697 = arith.constant 1 : index
    %c0_698 = arith.constant 0 : index
    %678 = vector.load %arg10[%c3_695, %c3_696, %c1_697, %c0_698] : memref<4x5x8x32xf32, #tpu.memory_space<vmem>>, vector<1x1x4x32xf32>
    %679 = vector.shape_cast %678 : vector<1x1x4x32xf32> to vector<4x32xf32>
    %680 = arith.truncf %677 : vector<4x32xf32> to vector<4x32xbf16>
    %c2_699 = arith.constant 2 : index
    %c0_700 = arith.constant 0 : index
    %c0_701 = arith.constant 0 : index
    %681 = vector.load %arg4[%c2_699, %c0_700, %c0_701] : memref<9x32x32xbf16, #tpu.memory_space<vmem>>, vector<1x32x32xbf16>
    %682 = vector.shape_cast %681 : vector<1x32x32xbf16> to vector<32x32xbf16>
    %cst_702 = arith.constant dense<0.000000e+00> : vector<4x32xf32>
    %683 = tpu.matmul %680, %682, %cst_702 {dimension_numbers = #tpu.dot_dimension_numbers<[1], [0], [0], [1], [0, 0, 1, 1], [], []>} : vector<4x32xbf16>, vector<32x32xbf16>, vector<4x32xf32> -> vector<4x32xf32>
    %684 = arith.addf %675, %683 : vector<4x32xf32>
    %685 = arith.truncf %679 : vector<4x32xf32> to vector<4x32xbf16>
    %c2_703 = arith.constant 2 : index
    %c0_704 = arith.constant 0 : index
    %c0_705 = arith.constant 0 : index
    %686 = vector.load %arg5[%c2_703, %c0_704, %c0_705] : memref<9x32x32xbf16, #tpu.memory_space<vmem>>, vector<1x32x32xbf16>
    %687 = vector.shape_cast %686 : vector<1x32x32xbf16> to vector<32x32xbf16>
    %cst_706 = arith.constant dense<0.000000e+00> : vector<4x32xf32>
    %688 = tpu.matmul %685, %687, %cst_706 {dimension_numbers = #tpu.dot_dimension_numbers<[1], [0], [0], [1], [0, 0, 1, 1], [], []>} : vector<4x32xbf16>, vector<32x32xbf16>, vector<4x32xf32> -> vector<4x32xf32>
    %689 = arith.addf %684, %688 : vector<4x32xf32>
    %c1_707 = arith.constant 1 : index
    %c3_708 = arith.constant 3 : index
    %c0_709 = arith.constant 0 : index
    %c0_710 = arith.constant 0 : index
    %690 = vector.load %arg9[%c1_707, %c3_708, %c0_709, %c0_710] : memref<4x5x8x32xf32, #tpu.memory_space<vmem>>, vector<1x1x4x32xf32>
    %691 = vector.shape_cast %690 : vector<1x1x4x32xf32> to vector<4x32xf32>
    %c1_711 = arith.constant 1 : index
    %c3_712 = arith.constant 3 : index
    %c0_713 = arith.constant 0 : index
    %c0_714 = arith.constant 0 : index
    %692 = vector.load %arg10[%c1_711, %c3_712, %c0_713, %c0_714] : memref<4x5x8x32xf32, #tpu.memory_space<vmem>>, vector<1x1x4x32xf32>
    %693 = vector.shape_cast %692 : vector<1x1x4x32xf32> to vector<4x32xf32>
    %694 = arith.truncf %691 : vector<4x32xf32> to vector<4x32xbf16>
    %c3_715 = arith.constant 3 : index
    %c0_716 = arith.constant 0 : index
    %c0_717 = arith.constant 0 : index
    %695 = vector.load %arg4[%c3_715, %c0_716, %c0_717] : memref<9x32x32xbf16, #tpu.memory_space<vmem>>, vector<1x32x32xbf16>
    %696 = vector.shape_cast %695 : vector<1x32x32xbf16> to vector<32x32xbf16>
    %cst_718 = arith.constant dense<0.000000e+00> : vector<4x32xf32>
    %697 = tpu.matmul %694, %696, %cst_718 {dimension_numbers = #tpu.dot_dimension_numbers<[1], [0], [0], [1], [0, 0, 1, 1], [], []>} : vector<4x32xbf16>, vector<32x32xbf16>, vector<4x32xf32> -> vector<4x32xf32>
    %698 = arith.addf %689, %697 : vector<4x32xf32>
    %699 = arith.truncf %693 : vector<4x32xf32> to vector<4x32xbf16>
    %c3_719 = arith.constant 3 : index
    %c0_720 = arith.constant 0 : index
    %c0_721 = arith.constant 0 : index
    %700 = vector.load %arg5[%c3_719, %c0_720, %c0_721] : memref<9x32x32xbf16, #tpu.memory_space<vmem>>, vector<1x32x32xbf16>
    %701 = vector.shape_cast %700 : vector<1x32x32xbf16> to vector<32x32xbf16>
    %cst_722 = arith.constant dense<0.000000e+00> : vector<4x32xf32>
    %702 = tpu.matmul %699, %701, %cst_722 {dimension_numbers = #tpu.dot_dimension_numbers<[1], [0], [0], [1], [0, 0, 1, 1], [], []>} : vector<4x32xbf16>, vector<32x32xbf16>, vector<4x32xf32> -> vector<4x32xf32>
    %703 = arith.addf %698, %702 : vector<4x32xf32>
    %c0_723 = arith.constant 0 : index
    %c3_724 = arith.constant 3 : index
    %c0_725 = arith.constant 0 : index
    %c0_726 = arith.constant 0 : index
    %704 = vector.load %arg9[%c0_723, %c3_724, %c0_725, %c0_726] : memref<4x5x8x32xf32, #tpu.memory_space<vmem>>, vector<1x1x4x32xf32>
    %705 = vector.shape_cast %704 : vector<1x1x4x32xf32> to vector<4x32xf32>
    %c0_727 = arith.constant 0 : index
    %c3_728 = arith.constant 3 : index
    %c0_729 = arith.constant 0 : index
    %c0_730 = arith.constant 0 : index
    %706 = vector.load %arg10[%c0_727, %c3_728, %c0_729, %c0_730] : memref<4x5x8x32xf32, #tpu.memory_space<vmem>>, vector<1x1x4x32xf32>
    %707 = vector.shape_cast %706 : vector<1x1x4x32xf32> to vector<4x32xf32>
    %708 = arith.truncf %705 : vector<4x32xf32> to vector<4x32xbf16>
    %c4_731 = arith.constant 4 : index
    %c0_732 = arith.constant 0 : index
    %c0_733 = arith.constant 0 : index
    %709 = vector.load %arg4[%c4_731, %c0_732, %c0_733] : memref<9x32x32xbf16, #tpu.memory_space<vmem>>, vector<1x32x32xbf16>
    %710 = vector.shape_cast %709 : vector<1x32x32xbf16> to vector<32x32xbf16>
    %cst_734 = arith.constant dense<0.000000e+00> : vector<4x32xf32>
    %711 = tpu.matmul %708, %710, %cst_734 {dimension_numbers = #tpu.dot_dimension_numbers<[1], [0], [0], [1], [0, 0, 1, 1], [], []>} : vector<4x32xbf16>, vector<32x32xbf16>, vector<4x32xf32> -> vector<4x32xf32>
    %712 = arith.addf %703, %711 : vector<4x32xf32>
    %713 = arith.truncf %707 : vector<4x32xf32> to vector<4x32xbf16>
    %c4_735 = arith.constant 4 : index
    %c0_736 = arith.constant 0 : index
    %c0_737 = arith.constant 0 : index
    %714 = vector.load %arg5[%c4_735, %c0_736, %c0_737] : memref<9x32x32xbf16, #tpu.memory_space<vmem>>, vector<1x32x32xbf16>
    %715 = vector.shape_cast %714 : vector<1x32x32xbf16> to vector<32x32xbf16>
    %cst_738 = arith.constant dense<0.000000e+00> : vector<4x32xf32>
    %716 = tpu.matmul %713, %715, %cst_738 {dimension_numbers = #tpu.dot_dimension_numbers<[1], [0], [0], [1], [0, 0, 1, 1], [], []>} : vector<4x32xbf16>, vector<32x32xbf16>, vector<4x32xf32> -> vector<4x32xf32>
    %717 = arith.addf %712, %716 : vector<4x32xf32>
    %c1_739 = arith.constant 1 : index
    %c3_740 = arith.constant 3 : index
    %c1_741 = arith.constant 1 : index
    %c0_742 = arith.constant 0 : index
    %718 = vector.load %arg9[%c1_739, %c3_740, %c1_741, %c0_742] : memref<4x5x8x32xf32, #tpu.memory_space<vmem>>, vector<1x1x4x32xf32>
    %719 = vector.shape_cast %718 : vector<1x1x4x32xf32> to vector<4x32xf32>
    %c1_743 = arith.constant 1 : index
    %c3_744 = arith.constant 3 : index
    %c1_745 = arith.constant 1 : index
    %c0_746 = arith.constant 0 : index
    %720 = vector.load %arg10[%c1_743, %c3_744, %c1_745, %c0_746] : memref<4x5x8x32xf32, #tpu.memory_space<vmem>>, vector<1x1x4x32xf32>
    %721 = vector.shape_cast %720 : vector<1x1x4x32xf32> to vector<4x32xf32>
    %722 = arith.truncf %719 : vector<4x32xf32> to vector<4x32xbf16>
    %c5_747 = arith.constant 5 : index
    %c0_748 = arith.constant 0 : index
    %c0_749 = arith.constant 0 : index
    %723 = vector.load %arg4[%c5_747, %c0_748, %c0_749] : memref<9x32x32xbf16, #tpu.memory_space<vmem>>, vector<1x32x32xbf16>
    %724 = vector.shape_cast %723 : vector<1x32x32xbf16> to vector<32x32xbf16>
    %cst_750 = arith.constant dense<0.000000e+00> : vector<4x32xf32>
    %725 = tpu.matmul %722, %724, %cst_750 {dimension_numbers = #tpu.dot_dimension_numbers<[1], [0], [0], [1], [0, 0, 1, 1], [], []>} : vector<4x32xbf16>, vector<32x32xbf16>, vector<4x32xf32> -> vector<4x32xf32>
    %726 = arith.addf %717, %725 : vector<4x32xf32>
    %727 = arith.truncf %721 : vector<4x32xf32> to vector<4x32xbf16>
    %c5_751 = arith.constant 5 : index
    %c0_752 = arith.constant 0 : index
    %c0_753 = arith.constant 0 : index
    %728 = vector.load %arg5[%c5_751, %c0_752, %c0_753] : memref<9x32x32xbf16, #tpu.memory_space<vmem>>, vector<1x32x32xbf16>
    %729 = vector.shape_cast %728 : vector<1x32x32xbf16> to vector<32x32xbf16>
    %cst_754 = arith.constant dense<0.000000e+00> : vector<4x32xf32>
    %730 = tpu.matmul %727, %729, %cst_754 {dimension_numbers = #tpu.dot_dimension_numbers<[1], [0], [0], [1], [0, 0, 1, 1], [], []>} : vector<4x32xbf16>, vector<32x32xbf16>, vector<4x32xf32> -> vector<4x32xf32>
    %731 = arith.addf %726, %730 : vector<4x32xf32>
    %c3_755 = arith.constant 3 : index
    %c4_756 = arith.constant 4 : index
    %c0_757 = arith.constant 0 : index
    %c0_758 = arith.constant 0 : index
    %732 = vector.load %arg9[%c3_755, %c4_756, %c0_757, %c0_758] : memref<4x5x8x32xf32, #tpu.memory_space<vmem>>, vector<1x1x4x32xf32>
    %733 = vector.shape_cast %732 : vector<1x1x4x32xf32> to vector<4x32xf32>
    %c3_759 = arith.constant 3 : index
    %c4_760 = arith.constant 4 : index
    %c0_761 = arith.constant 0 : index
    %c0_762 = arith.constant 0 : index
    %734 = vector.load %arg10[%c3_759, %c4_760, %c0_761, %c0_762] : memref<4x5x8x32xf32, #tpu.memory_space<vmem>>, vector<1x1x4x32xf32>
    %735 = vector.shape_cast %734 : vector<1x1x4x32xf32> to vector<4x32xf32>
    %736 = arith.truncf %733 : vector<4x32xf32> to vector<4x32xbf16>
    %c6_763 = arith.constant 6 : index
    %c0_764 = arith.constant 0 : index
    %c0_765 = arith.constant 0 : index
    %737 = vector.load %arg4[%c6_763, %c0_764, %c0_765] : memref<9x32x32xbf16, #tpu.memory_space<vmem>>, vector<1x32x32xbf16>
    %738 = vector.shape_cast %737 : vector<1x32x32xbf16> to vector<32x32xbf16>
    %cst_766 = arith.constant dense<0.000000e+00> : vector<4x32xf32>
    %739 = tpu.matmul %736, %738, %cst_766 {dimension_numbers = #tpu.dot_dimension_numbers<[1], [0], [0], [1], [0, 0, 1, 1], [], []>} : vector<4x32xbf16>, vector<32x32xbf16>, vector<4x32xf32> -> vector<4x32xf32>
    %740 = arith.addf %731, %739 : vector<4x32xf32>
    %741 = arith.truncf %735 : vector<4x32xf32> to vector<4x32xbf16>
    %c6_767 = arith.constant 6 : index
    %c0_768 = arith.constant 0 : index
    %c0_769 = arith.constant 0 : index
    %742 = vector.load %arg5[%c6_767, %c0_768, %c0_769] : memref<9x32x32xbf16, #tpu.memory_space<vmem>>, vector<1x32x32xbf16>
    %743 = vector.shape_cast %742 : vector<1x32x32xbf16> to vector<32x32xbf16>
    %cst_770 = arith.constant dense<0.000000e+00> : vector<4x32xf32>
    %744 = tpu.matmul %741, %743, %cst_770 {dimension_numbers = #tpu.dot_dimension_numbers<[1], [0], [0], [1], [0, 0, 1, 1], [], []>} : vector<4x32xbf16>, vector<32x32xbf16>, vector<4x32xf32> -> vector<4x32xf32>
    %745 = arith.addf %740, %744 : vector<4x32xf32>
    %c2_771 = arith.constant 2 : index
    %c4_772 = arith.constant 4 : index
    %c0_773 = arith.constant 0 : index
    %c0_774 = arith.constant 0 : index
    %746 = vector.load %arg9[%c2_771, %c4_772, %c0_773, %c0_774] : memref<4x5x8x32xf32, #tpu.memory_space<vmem>>, vector<1x1x4x32xf32>
    %747 = vector.shape_cast %746 : vector<1x1x4x32xf32> to vector<4x32xf32>
    %c2_775 = arith.constant 2 : index
    %c4_776 = arith.constant 4 : index
    %c0_777 = arith.constant 0 : index
    %c0_778 = arith.constant 0 : index
    %748 = vector.load %arg10[%c2_775, %c4_776, %c0_777, %c0_778] : memref<4x5x8x32xf32, #tpu.memory_space<vmem>>, vector<1x1x4x32xf32>
    %749 = vector.shape_cast %748 : vector<1x1x4x32xf32> to vector<4x32xf32>
    %750 = arith.truncf %747 : vector<4x32xf32> to vector<4x32xbf16>
    %c7_779 = arith.constant 7 : index
    %c0_780 = arith.constant 0 : index
    %c0_781 = arith.constant 0 : index
    %751 = vector.load %arg4[%c7_779, %c0_780, %c0_781] : memref<9x32x32xbf16, #tpu.memory_space<vmem>>, vector<1x32x32xbf16>
    %752 = vector.shape_cast %751 : vector<1x32x32xbf16> to vector<32x32xbf16>
    %cst_782 = arith.constant dense<0.000000e+00> : vector<4x32xf32>
    %753 = tpu.matmul %750, %752, %cst_782 {dimension_numbers = #tpu.dot_dimension_numbers<[1], [0], [0], [1], [0, 0, 1, 1], [], []>} : vector<4x32xbf16>, vector<32x32xbf16>, vector<4x32xf32> -> vector<4x32xf32>
    %754 = arith.addf %745, %753 : vector<4x32xf32>
    %755 = arith.truncf %749 : vector<4x32xf32> to vector<4x32xbf16>
    %c7_783 = arith.constant 7 : index
    %c0_784 = arith.constant 0 : index
    %c0_785 = arith.constant 0 : index
    %756 = vector.load %arg5[%c7_783, %c0_784, %c0_785] : memref<9x32x32xbf16, #tpu.memory_space<vmem>>, vector<1x32x32xbf16>
    %757 = vector.shape_cast %756 : vector<1x32x32xbf16> to vector<32x32xbf16>
    %cst_786 = arith.constant dense<0.000000e+00> : vector<4x32xf32>
    %758 = tpu.matmul %755, %757, %cst_786 {dimension_numbers = #tpu.dot_dimension_numbers<[1], [0], [0], [1], [0, 0, 1, 1], [], []>} : vector<4x32xbf16>, vector<32x32xbf16>, vector<4x32xf32> -> vector<4x32xf32>
    %759 = arith.addf %754, %758 : vector<4x32xf32>
    %c3_787 = arith.constant 3 : index
    %c4_788 = arith.constant 4 : index
    %c1_789 = arith.constant 1 : index
    %c0_790 = arith.constant 0 : index
    %760 = vector.load %arg9[%c3_787, %c4_788, %c1_789, %c0_790] : memref<4x5x8x32xf32, #tpu.memory_space<vmem>>, vector<1x1x4x32xf32>
    %761 = vector.shape_cast %760 : vector<1x1x4x32xf32> to vector<4x32xf32>
    %c3_791 = arith.constant 3 : index
    %c4_792 = arith.constant 4 : index
    %c1_793 = arith.constant 1 : index
    %c0_794 = arith.constant 0 : index
    %762 = vector.load %arg10[%c3_791, %c4_792, %c1_793, %c0_794] : memref<4x5x8x32xf32, #tpu.memory_space<vmem>>, vector<1x1x4x32xf32>
    %763 = vector.shape_cast %762 : vector<1x1x4x32xf32> to vector<4x32xf32>
    %764 = arith.truncf %761 : vector<4x32xf32> to vector<4x32xbf16>
    %c8_795 = arith.constant 8 : index
    %c0_796 = arith.constant 0 : index
    %c0_797 = arith.constant 0 : index
    %765 = vector.load %arg4[%c8_795, %c0_796, %c0_797] : memref<9x32x32xbf16, #tpu.memory_space<vmem>>, vector<1x32x32xbf16>
    %766 = vector.shape_cast %765 : vector<1x32x32xbf16> to vector<32x32xbf16>
    %cst_798 = arith.constant dense<0.000000e+00> : vector<4x32xf32>
    %767 = tpu.matmul %764, %766, %cst_798 {dimension_numbers = #tpu.dot_dimension_numbers<[1], [0], [0], [1], [0, 0, 1, 1], [], []>} : vector<4x32xbf16>, vector<32x32xbf16>, vector<4x32xf32> -> vector<4x32xf32>
    %768 = arith.addf %759, %767 : vector<4x32xf32>
    %769 = arith.truncf %763 : vector<4x32xf32> to vector<4x32xbf16>
    %c8_799 = arith.constant 8 : index
    %c0_800 = arith.constant 0 : index
    %c0_801 = arith.constant 0 : index
    %770 = vector.load %arg5[%c8_799, %c0_800, %c0_801] : memref<9x32x32xbf16, #tpu.memory_space<vmem>>, vector<1x32x32xbf16>
    %771 = vector.shape_cast %770 : vector<1x32x32xbf16> to vector<32x32xbf16>
    %cst_802 = arith.constant dense<0.000000e+00> : vector<4x32xf32>
    %772 = tpu.matmul %769, %771, %cst_802 {dimension_numbers = #tpu.dot_dimension_numbers<[1], [0], [0], [1], [0, 0, 1, 1], [], []>} : vector<4x32xbf16>, vector<32x32xbf16>, vector<4x32xf32> -> vector<4x32xf32>
    %773 = arith.addf %768, %772 : vector<4x32xf32>
    %774 = vector.broadcast %205 : vector<1x32xf32> to vector<4x32xf32>
    %775 = arith.addf %773, %774 : vector<4x32xf32>
    %cst_803 = arith.constant 3.000000e-01 : f32
    %776 = vector.broadcast %cst_803 : f32 to vector<4x32xf32>
    %777 = arith.subf %775, %776 : vector<4x32xf32>
    %cst_804 = arith.constant 0.000000e+00 : f32
    %778 = vector.broadcast %cst_804 : f32 to vector<4x32xf32>
    %779 = arith.maximumf %777, %778 : vector<4x32xf32>
    %780 = arith.addf %775, %779 : vector<4x32xf32>
    %cst_805 = arith.constant 0.000000e+00 : f32
    %781 = vector.broadcast %cst_805 : f32 to vector<4x32xf32>
    %782 = arith.maximumf %780, %781 : vector<4x32xf32>
    %c0_806 = arith.constant 0 : index
    %c3_807 = arith.constant 3 : index
    %c0_808 = arith.constant 0 : index
    %c0_809 = arith.constant 0 : index
    %783 = vector.load %arg8[%c0_806, %c3_807, %c0_808, %c0_809] : memref<1x4x4x32xf32, #tpu.memory_space<vmem>>, vector<1x1x4x32xf32>
    %784 = vector.shape_cast %783 : vector<1x1x4x32xf32> to vector<4x32xf32>
    %785 = vector.shape_cast %782 : vector<4x32xf32> to vector<1x1x4x32xf32>
    tpu.vector_store %arg8[%c0_806, %c3_807, %c0_808, %c0_809], %785 {strides = array<i32>} : memref<1x4x4x32xf32, #tpu.memory_space<vmem>>, vector<1x1x4x32xf32>,
    %cst_810 = arith.constant 1.000000e+02 : f32
    %786 = vector.broadcast %cst_810 : f32 to vector<4x32xf32>
    %787 = arith.divf %782, %786 : vector<4x32xf32>
    %788 = math.floor %787 : vector<4x32xf32>
    %cst_811 = arith.constant 1.400000e+01 : f32
    %789 = vector.broadcast %cst_811 : f32 to vector<4x32xf32>
    %790 = arith.addf %788, %789 : vector<4x32xf32>
    %c0_812 = arith.constant 0 : index
    %c3_813 = arith.constant 3 : index
    %c0_814 = arith.constant 0 : index
    %c0_815 = arith.constant 0 : index
    %791 = vector.load %arg7[%c0_812, %c3_813, %c0_814, %c0_815] : memref<1x4x4x32xf32, #tpu.memory_space<vmem>>, vector<1x1x4x32xf32>
    %792 = vector.shape_cast %791 : vector<1x1x4x32xf32> to vector<4x32xf32>
    %793 = vector.shape_cast %790 : vector<4x32xf32> to vector<1x1x4x32xf32>
    tpu.vector_store %arg7[%c0_812, %c3_813, %c0_814, %c0_815], %793 {strides = array<i32>} : memref<1x4x4x32xf32, #tpu.memory_space<vmem>>, vector<1x1x4x32xf32>,
    return
  }
  func.func @transform_0(%arg0: i32) -> (i32, i32, i32, i32) {
    %c0_i32 = arith.constant 0 : i32
    %c0_i32_0 = arith.constant 0 : i32
    %c0_i32_1 = arith.constant 0 : i32
    %c0_i32_2 = arith.constant 0 : i32
    return %arg0, %c0_i32, %c0_i32_0, %c0_i32_1 : i32, i32, i32, i32
  }
  func.func @transform_1(%arg0: i32) -> (i32, i32) {
    %c0_i32 = arith.constant 0 : i32
    %c0_i32_0 = arith.constant 0 : i32
    %c0_i32_1 = arith.constant 0 : i32
    return %c0_i32, %c0_i32_0 : i32, i32
  }
  func.func @transform_2(%arg0: i32) -> (i32, i32) {
    %c0_i32 = arith.constant 0 : i32
    %c0_i32_0 = arith.constant 0 : i32
    %c0_i32_1 = arith.constant 0 : i32
    return %c0_i32, %c0_i32_0 : i32, i32
  }
  func.func @transform_3(%arg0: i32) -> (i32, i32, i32) {
    %c0_i32 = arith.constant 0 : i32
    %c0_i32_0 = arith.constant 0 : i32
    %c0_i32_1 = arith.constant 0 : i32
    %c0_i32_2 = arith.constant 0 : i32
    return %c0_i32, %c0_i32_0, %c0_i32_1 : i32, i32, i32
  }
  func.func @transform_4(%arg0: i32) -> (i32, i32, i32) {
    %c0_i32 = arith.constant 0 : i32
    %c0_i32_0 = arith.constant 0 : i32
    %c0_i32_1 = arith.constant 0 : i32
    %c0_i32_2 = arith.constant 0 : i32
    return %c0_i32, %c0_i32_0, %c0_i32_1 : i32, i32, i32
  }
  func.func @transform_5(%arg0: i32) -> (i32, i32) {
    %c0_i32 = arith.constant 0 : i32
    %c0_i32_0 = arith.constant 0 : i32
    %c0_i32_1 = arith.constant 0 : i32
    return %c0_i32, %c0_i32_0 : i32, i32
  }
  func.func @transform_6(%arg0: i32) -> (i32, i32, i32, i32) {
    %c0_i32 = arith.constant 0 : i32
    %c0_i32_0 = arith.constant 0 : i32
    %c0_i32_1 = arith.constant 0 : i32
    %c0_i32_2 = arith.constant 0 : i32
    return %arg0, %c0_i32, %c0_i32_0, %c0_i32_1 : i32, i32, i32, i32
  }
  func.func @transform_7(%arg0: i32) -> (i32, i32, i32, i32) {
    %c0_i32 = arith.constant 0 : i32
    %c0_i32_0 = arith.constant 0 : i32
    %c0_i32_1 = arith.constant 0 : i32
    %c0_i32_2 = arith.constant 0 : i32
    return %arg0, %c0_i32, %c0_i32_0, %c0_i32_1 : i32, i32, i32, i32
  }
}

</mosaic_0001>

<bundles_post_ra>
// kernel: _fused_forward.1
= control target key start
LH: loop header
LB: loop body
LE: loop exit
PB: predicated region body
PF: predicated region fallthrough
CT: control target
= control target key end

     0   :  { %13 = vsyncpa [#allocation5], 0  ;;  %s8241_s0 = inlined_call_operand.vmem [shape: bf16[2,4,16,32], index: 0, kind: input, shape index: {}]   ;;  %s8242_s1 = inlined_call_operand.vmem [shape: bf16[32,32], index: 1, kind: input, shape index: {}]   ;;  %s8243_s2 = inlined_call_operand.vmem [shape: f32[1,32], index: 2, kind: input, shape index: {}]   ;;  %s8244_s3 = inlined_call_operand.vmem [shape: bf16[9,32,32], index: 3, kind: input, shape index: {}]   ;;  %s8245_s4 = inlined_call_operand.vmem [shape: bf16[9,32,32], index: 4, kind: input, shape index: {}]   ;;  %s8246_s5 = inlined_call_operand.vmem [shape: f32[1,32], index: 5, kind: input, shape index: {}]   ;;  %s8247_s6 = inlined_call_operand.hbm [shape: f32[2,4,4,32], index: 6, kind: output, shape index: {0}]   ;;  %s8248_s7 = inlined_call_operand.hbm [shape: f32[2,4,4,32], index: 7, kind: output, shape index: {1}]  }
   0x1   :  { %15 = vsyncpa [#allocation5 + $0x1], 0 }
   0x2   :  { %16 = vsyncpa [#allocation7], 0 }
   0x3   :  { %18 = vsyncpa [#allocation7 + $0x1], 0  ;;  %s7102_s24 = smov 0   ;;  %s7104_s25 = smov 0  }
   0x4   :  { %s7106_s26 = smov 0   ;;  %s7108_s27 = smov 0  }
   0x5 LB: > { %s7123_s28 = sadd.s32 4294967295, %s7054_s27   ;;  %s5379_s29 = sadd.s32 4294967294, %s7054_s27   ;;  %s7054_s27 = sphi %s7108_s27, %s8255_s27   ;;  %s7050_s26 = sphi %s7106_s26, %s8254_s26   ;;  %s7046_s25 = sphi %s7104_s25, %s8253_s25   ;;  %s7042_s24 = sphi %s7102_s24, %s8252_s24  }
   0x6   : > { %s7127_s30 = sadd.s32 1, %s7054_s27   ;;  %s162_s8 = sadd.s32 1, %s7050_s26 }
   0x7   : > { %s159_s9 = ssub.s32 %s7054_s27, %s7127_s30  ;;  %p172_p0 = scmp.ne.s32.totalorder %s7050_s26, %s7046_s25 }
   0x8   : > { %p160_p1 = scmp.eq.s32.totalorder %s159_s9, 0  ;;  %p173_p2 = scmp.eq.s32.totalorder %s7123_s28, 1 }
   0x9   : > { %p178_p3 = scmp.ne.s32.totalorder %s7046_s25, %s7042_s24  ;;  %p179_p4 = scmp.eq.s32.totalorder %s5379_s29, 1 }
   0xa   : > { %s7138_s10 = scalar_select %p160_p1, %s7050_s26, %s162_s8  }
   0xb   : > { %p7140_p5 = por %p173_p2, %p172_p0  ;;  %p7144_p6 = por %p179_p4, %p178_p3 }
   0xc   : > { %p5382_p7 = scmp.ge.s32.totalorder %s7054_s27, 1  ;;  %p246_p8 = scmp.lt.s32.totalorder %s7054_s27, 3 }
   0xe   : > { %p247_p9 = pnand %p5382_p7, %p246_p8 }
   0xf   : > { %v6804_v0 = vld [vmem:[%s8242_s1] sm:$0xff] (!%p247_p9)   ;;  %v7056_v1 = vmov (!%p247_p9), 0.0   ;;  %v6805_v2 = vld [vmem:[%s8242_s1 + $0x8] sm:$0xff] (!%p247_p9)   ;;  %vm7057_vm0 = vmmov (!%p247_p9), 0   ;;  %p283_p10 = scmp.lt.s32.totalorder (!%p247_p9), %s7123_s28, 1  ;;  %vm289_vm1 = vcmask (!%p247_p9), 261120  }
  0x10   : > { %250 = sbr.rel (%p247_p9) target bundleno = 783 (0x30f), region = 44  ;;  %6156 = vmatprep.subr.bf16.mxu1 (!%p247_p9), %v7056_v1  ;;  %6148 = vmatprep.subr.bf16.mxu0 (!%p247_p9), %v7056_v1  ;;  %v6806_v3 = vld [vmem:[%s8242_s1] sm:$0xff] (!%p247_p9)   ;;  %290 = vst.msk [vmem:[#allocation2] sm:$0xff] (!%p247_p9), %vm289_vm1, %v7056_v1  ;;  %291 = vst.msk [vmem:[#allocation2 + $0x8] sm:$0xff] (!%p247_p9), %vm289_vm1, %v7056_v1  ;;  %v6808_v4 = vld [vmem:[%s8242_s1 + $0x8] sm:$0xff] (!%p247_p9)   ;;  %vm416_vm2 = vcmask (!%p247_p9), 257024  }
  0x11   : > { %6157 = vmatpush3.bf16.msra.mxu1 (!%p247_p9), %v6804_v0  ;;  %6160 = vmatprep.mubr.msk.bf16.mxu1 (!%p247_p9), %vm7057_vm0, %v7056_v1  ;;  %292 = vst.msk [vmem:[#allocation2 + $0x10] sm:$0xff] (!%p247_p9), %vm289_vm1, %v7056_v1  ;;  %293 = vst.msk [vmem:[#allocation2 + $0x18] sm:$0xff] (!%p247_p9), %vm289_vm1, %v7056_v1  ;;  %v6810_v5 = vld [vmem:[%s8242_s1] sm:$0xff] (!%p247_p9)   ;;  %v6811_v9 = vld [vmem:[%s8242_s1 + $0x8] sm:$0xff] (!%p247_p9)   ;;  %vm420_vm3 = vcmask (!%p247_p9), 261124   ;;  %s8120_s18 = sand.u32 (!%p247_p9), 1, %s7046_s25  }
  0x12   : > { %6158 = vmatprep.subr.bf16.mxu1 (!%p247_p9), %v7056_v1  ;;  %6152 = vmatprep.mubr.msk.bf16.mxu0 (!%p247_p9), %vm7057_vm0, %v7056_v1  ;;  %295 = vst.msk [vmem:[#allocation2 + $0x28] sm:$0xff] (!%p247_p9), %vm289_vm1, %v7056_v1  ;;  %296 = vst.msk [vmem:[#allocation2 + $0x30] sm:$0xff] (!%p247_p9), %vm289_vm1, %v7056_v1  ;;  %v6813_v6 = vld [vmem:[%s8242_s1] sm:$0xff] (!%p247_p9)   ;;  %v6814_v10 = vld [vmem:[%s8242_s1 + $0x8] sm:$0xff] (!%p247_p9)   ;;  %s5256_s14 = scalar_lea.sflag (!%p247_p9), [#allocation7], %s8120_s18  ;;  %s7058_s16 = smov (!%p247_p9), [#allocation6]  }
  0x13   : > { %6149 = vmatpush3.bf16.msra.mxu0 (!%p247_p9), %v6806_v3  ;;  %297 = vst.msk [vmem:[#allocation2 + $0x38] sm:$0xff] (!%p247_p9), %vm289_vm1, %v7056_v1  ;;  %298 = vst.msk [vmem:[#allocation2 + $0x40] sm:$0xff] (!%p247_p9), %vm289_vm1, %v7056_v1  ;;  %v6817_v12 = vld [vmem:[%s8244_s3] sm:$0xff] (!%p247_p9)   ;;  %v6819_v15 = vld [vmem:[%s8244_s3 + $0x8] sm:$0xff] (!%p247_p9)   ;;  %s6964_s17 = sshll.u32 (!%p247_p9), %s7058_s16, 4  ;;  %s6965_s17 = int_to_ptr.vmem [resolvable:$false] %s6964_s17 }
  0x14   : > { %300 = vst.msk [vmem:[#allocation2 + $0x50] sm:$0xff] (!%p247_p9), %vm289_vm1, %v7056_v1  ;;  %301 = vst.msk [vmem:[#allocation2 + $0x58] sm:$0xff] (!%p247_p9), %vm289_vm1, %v7056_v1  ;;  %6150 = vmatprep.subr.bf16.mxu0 (!%p247_p9), %v7056_v1  ;;  %v6816_v14 = vld [vmem:[%s8245_s4] sm:$0xff] (!%p247_p9)   ;;  %v6818_v17 = vld [vmem:[%s8245_s4 + $0x8] sm:$0xff] (!%p247_p9)  }
  0x15   : > { %302 = vst.msk [vmem:[#allocation2 + $0x60] sm:$0xff] (!%p247_p9), %vm289_vm1, %v7056_v1  ;;  %303 = vst.msk [vmem:[#allocation2 + $0x68] sm:$0xff] (!%p247_p9), %vm289_vm1, %v7056_v1  ;;  %6159 = vmatpush3.bf16.msra.mxu1 (!%p247_p9), %v6805_v2  ;;  %v6821_v20 = vld [vmem:[%s8245_s4 + $0x10] sm:$0xff] (!%p247_p9)   ;;  %v6823_v23 = vld [vmem:[%s8245_s4 + $0x18] sm:$0xff] (!%p247_p9)  }
  0x16   : > { %304 = vst.msk [vmem:[#allocation2 + $0x70] sm:$0xff] (!%p247_p9), %vm289_vm1, %v7056_v1  ;;  %305 = vst.msk [vmem:[#allocation2 + $0x78] sm:$0xff] (!%p247_p9), %vm289_vm1, %v7056_v1  ;;  %6172 = vmatprep.subr.bf16.mxu1 (!%p247_p9), %v7056_v1  ;;  %v6820_v22 = vld [vmem:[%s8244_s3 + $0x10] sm:$0xff] (!%p247_p9)   ;;  %v6822_v25 = vld [vmem:[%s8244_s3 + $0x18] sm:$0xff] (!%p247_p9)  }
  0x17   : > { %s7168_s19 = scalar_select %p283_p10, %s7123_s28, 1  ;;  %306 = vst.msk [vmem:[#allocation2 + $0x80] sm:$0xff] %vm289_vm1, %v7056_v1  ;;  %307 = vst.msk [vmem:[#allocation2 + $0x88] sm:$0xff] %vm289_vm1, %v7056_v1  ;;  %6151 = vmatpush3.bf16.msra.mxu0 %v6808_v4  ;;  %v6825_v27 = vld [vmem:[%s8245_s4 + $0x20] sm:$0xff]   ;;  %v6826_v31 = vld [vmem:[%s8244_s3 + $0x28] sm:$0xff]  }
  0x18   : > { %308 = vst.msk [vmem:[#allocation2 + $0x90] sm:$0xff] %vm289_vm1, %v7056_v1  ;;  %309 = vst.msk [vmem:[#allocation2 + $0x98] sm:$0xff] %vm289_vm1, %v7056_v1  ;;  %6164 = vmatprep.subr.bf16.mxu0 %v7056_v1  ;;  %v6824_v29 = vld [vmem:[%s8244_s3 + $0x20] sm:$0xff]   ;;  %v6827_v32 = vld [vmem:[%s8245_s4 + $0x28] sm:$0xff]  }
  0x19   : > { %310 = vst.msk [vmem:[#allocation3] sm:$0xff] %vm289_vm1, %v7056_v1  ;;  %311 = vst.msk [vmem:[#allocation3 + $0x8] sm:$0xff] %vm289_vm1, %v7056_v1  ;;  %s5917_s22 = sshll.u32 %s7168_s19, 5  ;;  %v6828_v37 = vld [vmem:[%s8244_s3 + $0x30] sm:$0xff]   ;;  %v6830_v39 = vld [vmem:[%s8244_s3 + $0x38] sm:$0xff]   ;;  %s5383_s19 = sshll.u32 %s8120_s18, 4 }
  0x1a   : > { %312 = vst.msk [vmem:[#allocation3 + $0x10] sm:$0xff] %vm289_vm1, %v7056_v1  ;;  %313 = vst.msk [vmem:[#allocation3 + $0x18] sm:$0xff] %vm289_vm1, %v7056_v1  ;;  %s287_s13 = scalar_lea.vmem %s8241_s0, %s5917_s22  ;;  %v6829_v38 = vld [vmem:[%s8245_s4 + $0x30] sm:$0xff]   ;;  %v6831_v40 = vld [vmem:[%s8245_s4 + $0x38] sm:$0xff]   ;;  %s8124_s20 = scalar_lea.vmem [#allocation6], %s5383_s19 }
  0x1b   : > { %315 = vst.msk [vmem:[#allocation3 + $0x28] sm:$0xff] %vm289_vm1, %v7056_v1  ;;  %316 = vst.msk [vmem:[#allocation3 + $0x30] sm:$0xff] %vm289_vm1, %v7056_v1  ;;  %v6807_v7 = vld [vmem:[%s287_s13 + $0x8] sm:$0xff]   ;;  %v6809_v8 = vld [vmem:[%s287_s13] sm:$0xff]   ;;  %s8128_s21 = scalar_lea.vmem [#allocation4], %s5383_s19  ;;  %s5918_s22 = sshll.u32 %s7123_s28, 8 }
  0x1c   : > { %317 = vst.msk [vmem:[#allocation3 + $0x38] sm:$0xff] %vm289_vm1, %v7056_v1  ;;  %318 = vst.msk [vmem:[#allocation3 + $0x40] sm:$0xff] %vm289_vm1, %v7056_v1  ;;  %6161 = vmatmul.mubr.msk.bf16.vlgmr.msra.gmra.mrb[0].mxu1 %vm289_vm1, %v6807_v7  ;;  %6153 = vmatmul.mubr.msk.bf16.vlgmr.msra.gmra.mrb[0].mxu0 %vm289_vm1, %v6809_v8  ;;  %v6812_v11 = vld [vmem:[%s287_s13 + $0x18] sm:$0xff]   ;;  %v6815_v13 = vld [vmem:[%s287_s13 + $0x10] sm:$0xff]   ;;  %s5285_s23 = sshll.u32 %s8124_s20, 4  ;;  %s8150_s9 = scalar_lea.hbm %s8248_s7, %s5918_s22  ;;  %s8152_s23 = int_to_ptr.vmem [resolvable:$true] %s5285_s23 }
  0x1d   : > { %320 = vst.msk [vmem:[#allocation3 + $0x50] sm:$0xff] %vm289_vm1, %v7056_v1  ;;  %321 = vst.msk [vmem:[#allocation3 + $0x58] sm:$0xff] %vm289_vm1, %v7056_v1  ;;  %6173 = vmatpush3.bf16.msra.mxu1 %v6810_v5  ;;  %6176 = vmatprep.mubr.msk.bf16.mxu1 %vm7057_vm0, %v7056_v1  ;;  %v722_v16 = vld [vmem:[#allocation2 + $0x78] sm:$0xf]  ;;  %v846_v26 = vld [vmem:[#allocation2 + $0x50] sm:$0xf]  ;;  %p6967_p0 = scmp.lt.s32.totalorder %s8152_s23, %s6965_s17 }
  0x1e   : > { %322 = vst.msk [vmem:[#allocation3 + $0x60] sm:$0xff] %vm289_vm1, %v7056_v1  ;;  %323 = vst.msk [vmem:[#allocation3 + $0x68] sm:$0xff] %vm289_vm1, %v7056_v1  ;;  %6174 = vmatprep.subr.bf16.mxu1 %v7056_v1  ;;  %6165 = vmatpush3.bf16.msra.mxu0 %v6813_v6  ;;  %v725_v19 = vpack.c.bf16 %v722_v16, %v722_v16  ;;  %v849_v30 = vpack.c.bf16 %v846_v26, %v846_v26  ;;  %v973_v33 = vld [vmem:[#allocation2 + $0x79] sm:$0xf]  ;;  %v7365_v41 = vld [vmem:[%s8243_s2] ss:$0 sm:$0xff] }
  0x1f   : > { %324 = vst.msk [vmem:[#allocation3 + $0x70] sm:$0xff] %vm289_vm1, %v7056_v1  ;;  %325 = vst.msk [vmem:[#allocation3 + $0x78] sm:$0xff] %vm289_vm1, %v7056_v1  ;;  %6168 = vmatprep.mubr.msk.bf16.mxu0 %vm7057_vm0, %v7056_v1  ;;  %6166 = vmatprep.subr.bf16.mxu0 %v7056_v1  ;;  %v975_v34 = vpack.c.bf16 %v973_v33, %v973_v33  ;;  %v6832_v33 = vld [vmem:[%s8244_s3 + $0x40] sm:$0xff]   ;;  %s6960_s15 = scalar_lea.vmem %s8152_s23, 256  ;;  %s6966_s19 = scalar_lea.vmem %s6965_s17, 512 }
  0x20   : > { %326 = vst.msk [vmem:[#allocation3 + $0x80] sm:$0xff] %vm289_vm1, %v7056_v1  ;;  %327 = vst.msk [vmem:[#allocation3 + $0x88] sm:$0xff] %vm289_vm1, %v7056_v1  ;;  %p6961_p11 = scmp.ne.s32.totalorder %s8152_s23, %s6960_s15  ;;  %p6968_p1 = scmp.lt.s32.totalorder %s6966_s19, %s6960_s15 }
  0x21   : > { %328 = vst.msk [vmem:[#allocation3 + $0x90] sm:$0xff] %vm289_vm1, %v7056_v1  ;;  %329 = vst.msk [vmem:[#allocation3 + $0x98] sm:$0xff] %vm289_vm1, %v7056_v1  ;;  %6175 = vmatpush3.bf16.msra.mxu1 %v6811_v9 }
  0x22   : > { %6188 = vmatprep.subr.bf16.mxu1 %v7056_v1  ;;  %6167 = vmatpush3.bf16.msra.mxu0 %v6814_v10  ;;  %p6962_p12 = pnand %p6961_p11, %p7140_p5  ;;  %p6969_p2 = por %p6968_p1, %p6967_p0 }
  0x23   : > { %6180 = vmatprep.subr.bf16.mxu0 %v7056_v1 }
  0x24   : > { %6177 = vmatmul.mubr.msk.bf16.vlgmr.msra.gmra.mrb[4].mxu1 %vm289_vm1, %v6812_v11  ;;  %v848_v24 = vld [vmem:[#allocation3 + $0x50] sm:$0xf]  ;;  %p6963_p13 = pneg %p6962_p12 }
  0x25   : > { %6189 = vmatpush3.bf16.msra.mxu1 %v6817_v12  ;;  %6192 = vmatprep.mubr.msk.bf16.mxu1 %vm7057_vm0, %v7056_v1  ;;  %v911_v28 = vpack.c.bf16 %v848_v24, %v848_v24 }
  0x26   : > { %6169 = vmatmul.mubr.msk.bf16.vlgmr.msra.gmra.mrb[4].mxu0 %vm289_vm1, %v6815_v13  ;;  %6190 = vmatprep.subr.bf16.mxu1 %v7056_v1  ;;  %v724_v18 = vld [vmem:[#allocation3 + $0x78] sm:$0xf]  ;;  %p6970_p3 = pnand %p6969_p2, %p6963_p13 }
  0x27   : > { %6181 = vmatpush3.bf16.msra.mxu0 %v6816_v14  ;;  %6184 = vmatprep.mubr.msk.bf16.mxu0 %vm7057_vm0, %v7056_v1  ;;  %v730_v21 = vpack.c.bf16 %v724_v18, %v724_v18  ;;  %v974_v35 = vld [vmem:[#allocation3 + $0x79] sm:$0xf] }
  0x28   : > { %6182 = vmatprep.subr.bf16.mxu0 %v7056_v1  ;;  %v1037_v36 = vpack.c.bf16 %v974_v35, %v974_v35 }
  0x29   : > { %6191 = vmatpush3.bf16.msra.mxu1 %v6819_v15 }
  0x2a   : > { %6204 = vmatprep.subr.bf16.mxu1 %v7056_v1 }
  0x2b   : > { %6183 = vmatpush3.bf16.msra.mxu0 %v6818_v17 }
  0x2c   : > { %6196 = vmatprep.subr.bf16.mxu0 %v7056_v1  ;;  %6193 = vmatmul.mubr.msk.bf16.vlgmr.msra.gmra.mrb[8].mxu1 %vm289_vm1, %v725_v19 }
  0x2d   : > { %6205 = vmatpush3.bf16.msra.mxu1 %v6821_v20  ;;  %6208 = vmatprep.mubr.msk.bf16.mxu1 %vm7057_vm0, %v7056_v1 }
  0x2e   : > { %6185 = vmatmul.mubr.msk.bf16.vlgmr.msra.gmra.mrb[8].mxu0 %vm289_vm1, %v730_v21  ;;  %6206 = vmatprep.subr.bf16.mxu1 %v7056_v1 }
  0x2f   : > { %6197 = vmatpush3.bf16.msra.mxu0 %v6820_v22  ;;  %6200 = vmatprep.mubr.msk.bf16.mxu0 %vm7057_vm0, %v7056_v1 }
  0x30   : > { %6198 = vmatprep.subr.bf16.mxu0 %v7056_v1 }
  0x31   : > { %6207 = vmatpush3.bf16.msra.mxu1 %v6823_v23 }
  0x32   : > { %6220 = vmatprep.subr.bf16.mxu1 %v7056_v1 }
  0x33   : > { %6199 = vmatpush3.bf16.msra.mxu0 %v6822_v25 }
  0x34   : > { %6212 = vmatprep.subr.bf16.mxu0 %v7056_v1  ;;  %6209 = vmatmul.mubr.msk.bf16.vlgmr.msra.gmra.mrb[12].mxu1 %vm289_vm1, %v911_v28 }
  0x35   : > { %6221 = vmatpush3.bf16.msra.mxu1 %v6825_v27  ;;  %6224 = vmatprep.mubr.msk.bf16.mxu1 %vm7057_vm0, %v7056_v1 }
  0x36   : > { %6201 = vmatmul.mubr.msk.bf16.vlgmr.msra.gmra.mrb[12].mxu0 %vm289_vm1, %v849_v30  ;;  %6222 = vmatprep.subr.bf16.mxu1 %v7056_v1 }
  0x37   : > { %6213 = vmatpush3.bf16.msra.mxu0 %v6824_v29  ;;  %6216 = vmatprep.mubr.msk.bf16.mxu0 %vm7057_vm0, %v7056_v1 }
  0x38   : > { %6214 = vmatprep.subr.bf16.mxu0 %v7056_v1 }
  0x39   : > { %6223 = vmatpush3.bf16.msra.mxu1 %v6827_v32 }
  0x3a   : > { %6236 = vmatprep.subr.bf16.mxu1 %v7056_v1 }
  0x3b   : > { %6215 = vmatpush3.bf16.msra.mxu0 %v6826_v31 }
  0x3c   : > { %6228 = vmatprep.subr.bf16.mxu0 %v7056_v1  ;;  %6225 = vmatmul.mubr.msk.bf16.vlgmr.msra.gmra.mrb[16].mxu1 %vm289_vm1, %v1037_v36 }
  0x3d   : > { %6240 = vmatprep.mubr.msk.bf16.mxu1 %vm7057_vm0, %v7056_v1  ;;  %6237 = vmatpush3.bf16.msra.mxu1 %v6829_v38 }
  0x3e   : > { %6217 = vmatmul.mubr.msk.bf16.vlgmr.msra.gmra.mrb[16].mxu0 %vm289_vm1, %v975_v34  ;;  %6238 = vmatprep.subr.bf16.mxu1 %v7056_v1 }
  0x3f   : > { %6232 = vmatprep.mubr.msk.bf16.mxu0 %vm7057_vm0, %v7056_v1  ;;  %6229 = vmatpush3.bf16.msra.mxu0 %v6828_v37 }
  0x40   : > { %6230 = vmatprep.subr.bf16.mxu0 %v7056_v1 }
  0x41   : > { %6239 = vmatpush3.bf16.msra.mxu1 %v6831_v40 }
  0x42   : > { %6252 = vmatprep.subr.bf16.mxu1 %v7056_v1 }
  0x43   : > { %6231 = vmatpush3.bf16.msra.mxu0 %v6830_v39 }
  0x44   : > { %6244 = vmatprep.subr.bf16.mxu0 %v7056_v1 }
  0xef   : > { %v493_v42 = vpop.f32.mrb[0].mxu1  ;;  %v397_v45 = vpop.f32.mrb[0].mxu0 }
  0xf0   : > { %v494_v43 = vadd.f32 %v7365_v41, %v493_v42  ;;  %v6162_v44 = vpop.f32.mrb[1].mxu1  ;;  %v398_v47 = vadd.f32 %v7365_v41, %v397_v45  ;;  %v6154_v48 = vpop.f32.mrb[1].mxu0  ;;  %v6833_v42 = vld [vmem:[%s8245_s4 + $0x40] sm:$0xff]  }
  0xf1   : > { %v496_v46 = vpop.f32.mrb[2].mxu1  ;;  %v400_v53 = vpop.f32.mrb[2].mxu0 }
  0xf2   : > { %v500_v49 = vadd.f32 1.3, %v494_v43  ;;  %v5402_v50 = vadd.f32 -2.0, %v494_v43  ;;  %v497_v51 = vadd.f32 %v7365_v41, %v496_v46  ;;  %v6163_v52 = vpop.f32.mrb[3].mxu1  ;;  %v404_v54 = vadd.f32 1.3, %v398_v47 }
  0xf3   : > { %v5392_v55 = vadd.f32 -2.0, %v398_v47  ;;  %v401_v56 = vadd.f32 %v7365_v41, %v400_v53  ;;  %v6155_v57 = vpop.f32.mrb[3].mxu0 }
  0xf4   : > { %v502_v58 = vmax.f32 %v500_v49, 0.0  ;;  %v506_v59 = vmax.f32 %v5402_v50, 0.0  ;;  %v501_v60 = vadd.f32 1.3, %v497_v51  ;;  %v5403_v61 = vadd.f32 -2.0, %v497_v51  ;;  %v6834_v50 = vld [vmem:[%s8244_s3 + $0x48] sm:$0xff]  }
  0xf5   : > { %v406_v62 = vmax.f32 %v404_v54, 0.0  ;;  %v410_v63 = vmax.f32 %v5392_v55, 0.0  ;;  %v405_v0 = vadd.f32 1.3, %v401_v56  ;;  %v5393_v2 = vadd.f32 -2.0, %v401_v56 }
  0xf6   : > { %v5404_v3 = vadd.f32 -0.2, %v506_v59  ;;  %513 = vst.msk [vmem:[#allocation2 + $0x29] sm:$0xf] %vm416_vm2, %v502_v58  ;;  %v503_v4 = vmax.f32 %v501_v60, 0.0  ;;  %v507_v5 = vmax.f32 %v5403_v61, 0.0 }
  0xf7   : > { %517 = vst.msk [vmem:[#allocation2 + $0x2d] sm:$0xf0] %vm420_vm3, %v502_v58  ;;  %v5394_v6 = vadd.f32 -0.2, %v410_v63  ;;  %421 = vst.msk [vmem:[#allocation2 + $0x4] sm:$0xf0] %vm420_vm3, %v406_v62 }
  0xf8   : > { %417 = vst.msk [vmem:[#allocation2] sm:$0xf] %vm416_vm2, %v406_v62  ;;  %v407_v7 = vmax.f32 %v405_v0, 0.0  ;;  %v411_v8 = vmax.f32 %v5393_v2, 0.0  ;;  %v685_v9 = vpop.f32.mrb[4].mxu1  ;;  %v510_v10 = vmax.f32 %v5404_v3, 0.0 }
  0xf9   : > { %v5405_v11 = vadd.f32 -0.2, %v507_v5  ;;  %521 = vst.msk [vmem:[#allocation2 + $0x39] sm:$0xf] %vm416_vm2, %v503_v4  ;;  %v686_v12 = vadd.f32 %v7365_v41, %v685_v9  ;;  %v6178_v13 = vpop.f32.mrb[5].mxu1  ;;  %v414_v14 = vmax.f32 %v5394_v6, 0.0 }
  0xfa   : > { %525 = vst.msk [vmem:[#allocation2 + $0x3d] sm:$0xf0] %vm420_vm3, %v503_v4  ;;  %v5395_v15 = vadd.f32 -0.2, %v411_v8  ;;  %429 = vst.msk [vmem:[#allocation2 + $0x14] sm:$0xf0] %vm420_vm3, %v407_v7 }
  0xfb   : > { %425 = vst.msk [vmem:[#allocation2 + $0x10] sm:$0xf] %vm416_vm2, %v407_v7  ;;  %v688_v16 = vpop.f32.mrb[6].mxu1  ;;  %v589_v17 = vpop.f32.mrb[4].mxu0  ;;  %515 = vst.msk [vmem:[#allocation3 + $0x29] sm:$0xf] %vm416_vm2, %v510_v10 }
  0xfc   : > { %519 = vst.msk [vmem:[#allocation3 + $0x2d] sm:$0xf0] %vm420_vm3, %v510_v10  ;;  %v511_v18 = vmax.f32 %v5405_v11, 0.0  ;;  %v692_v19 = vadd.f32 1.3, %v686_v12  ;;  %v5422_v20 = vadd.f32 -2.0, %v686_v12  ;;  %v689_v21 = vadd.f32 %v7365_v41, %v688_v16 }
  0xfd   : > { %v6179_v22 = vpop.f32.mrb[7].mxu1  ;;  %v6170_v23 = vpop.f32.mrb[5].mxu0  ;;  %418 = vst.msk [vmem:[#allocation3] sm:$0xf] %vm416_vm2, %v414_v14  ;;  %v415_v24 = vmax.f32 %v5395_v15, 0.0  ;;  %v590_v25 = vadd.f32 %v7365_v41, %v589_v17  ;;  %v6835_v59 = vld [vmem:[%s8245_s4 + $0x48] sm:$0xff]  }
  0xfe   : > { %423 = vst.msk [vmem:[#allocation3 + $0x4] sm:$0xf0] %vm420_vm3, %v414_v14  ;;  %v592_v26 = vpop.f32.mrb[6].mxu0  ;;  %527 = vst.msk [vmem:[#allocation3 + $0x3d] sm:$0xf0] %vm420_vm3, %v511_v18  ;;  %v694_v27 = vmax.f32 %v692_v19, 0.0 }
  0xff   : > { %523 = vst.msk [vmem:[#allocation3 + $0x39] sm:$0xf] %vm416_vm2, %v511_v18  ;;  %v698_v28 = vmax.f32 %v5422_v20, 0.0  ;;  %v693_v29 = vadd.f32 1.3, %v689_v21  ;;  %v5423_v30 = vadd.f32 -2.0, %v689_v21  ;;  %v593_v36 = vadd.f32 %v7365_v41, %v592_v26 }
 0x100   : > { %v6171_v31 = vpop.f32.mrb[7].mxu0  ;;  %427 = vst.msk [vmem:[#allocation3 + $0x10] sm:$0xf] %vm416_vm2, %v415_v24  ;;  %v1099_v32 = vld [vmem:[#allocation2 + $0x28] sm:$0xf]  ;;  %v5412_v35 = vadd.f32 -2.0, %v590_v25 }
 0x101   : > { %431 = vst.msk [vmem:[#allocation3 + $0x14] sm:$0xf0] %vm420_vm3, %v415_v24  ;;  %v596_v34 = vadd.f32 1.3, %v590_v25  ;;  %v1101_v37 = vpack.c.bf16 %v1099_v32, %v1099_v32  ;;  %v5424_v38 = vadd.f32 -0.2, %v698_v28 }
 0x102   : > { %705 = vst.msk [vmem:[#allocation2 + $0x81] sm:$0xf] %vm416_vm2, %v694_v27  ;;  %v695_v39 = vmax.f32 %v693_v29, 0.0  ;;  %v699_v40 = vmax.f32 %v5423_v30, 0.0  ;;  %v602_v44 = vmax.f32 %v5412_v35, 0.0  ;;  %v5413_v48 = vadd.f32 -2.0, %v593_v36 }
 0x103   : > { %709 = vst.msk [vmem:[#allocation2 + $0x85] sm:$0xf0] %vm420_vm3, %v694_v27  ;;  %v598_v43 = vmax.f32 %v596_v34, 0.0  ;;  %v597_v45 = vadd.f32 1.3, %v593_v36  ;;  %6233 = vmatmul.mubr.msk.bf16.vlgmr.msra.gmra.mrb[20].mxu0 %vm289_vm1, %v1101_v37  ;;  %v702_v46 = vmax.f32 %v5424_v38, 0.0 }
 0x104   : > { %v5425_v47 = vadd.f32 -0.2, %v699_v40  ;;  %713 = vst.msk [vmem:[#allocation2 + $0x91] sm:$0xf] %vm416_vm2, %v695_v39  ;;  %v1225_v41 = vld [vmem:[#allocation2] sm:$0xf]  ;;  %6245 = vmatpush3.bf16.msra.mxu0 %v6832_v33  ;;  %6248 = vmatprep.mubr.msk.bf16.mxu0 %vm7057_vm0, %v7056_v1 }
 0x105   : > { %717 = vst.msk [vmem:[#allocation2 + $0x95] sm:$0xf0] %vm420_vm3, %v695_v39  ;;  %v1100_v49 = vld [vmem:[#allocation3 + $0x28] sm:$0xf]  ;;  %v5414_v51 = vadd.f32 -0.2, %v602_v44  ;;  %6246 = vmatprep.subr.bf16.mxu0 %v7056_v1  ;;  %v1227_v57 = vpack.c.bf16 %v1225_v41, %v1225_v41 }
 0x106   : > { %609 = vst.msk [vmem:[#allocation2 + $0x58] sm:$0xf] %vm416_vm2, %v598_v43  ;;  %v599_v52 = vmax.f32 %v597_v45, 0.0  ;;  %707 = vst.msk [vmem:[#allocation3 + $0x81] sm:$0xf] %vm416_vm2, %v702_v46  ;;  %v1163_v53 = vpack.c.bf16 %v1100_v49, %v1100_v49  ;;  %v703_v54 = vmax.f32 %v5425_v47, 0.0 }
 0x107   : > { %613 = vst.msk [vmem:[#allocation2 + $0x5c] sm:$0xf0] %vm420_vm3, %v598_v43  ;;  %711 = vst.msk [vmem:[#allocation3 + $0x85] sm:$0xf0] %vm420_vm3, %v702_v46  ;;  %v603_v55 = vmax.f32 %v5413_v48, 0.0  ;;  %v606_v56 = vmax.f32 %v5414_v51, 0.0 }
 0x108   : > { %617 = vst.msk [vmem:[#allocation2 + $0x68] sm:$0xf] %vm416_vm2, %v599_v52  ;;  %6241 = vmatmul.mubr.msk.bf16.vlgmr.msra.gmra.mrb[20].mxu1 %vm289_vm1, %v1163_v53  ;;  %715 = vst.msk [vmem:[#allocation3 + $0x91] sm:$0xf] %vm416_vm2, %v703_v54  ;;  %6247 = vmatpush3.bf16.msra.mxu0 %v6834_v50  ;;  %v6836_v60 = vld [vmem:[%s8244_s3 + $0x50] sm:$0xff]   ;;  %v6838_v2 = vld [vmem:[%s8244_s3 + $0x58] sm:$0xff]  }
 0x109   : > { %621 = vst.msk [vmem:[#allocation2 + $0x6c] sm:$0xf0] %vm420_vm3, %v599_v52  ;;  %719 = vst.msk [vmem:[#allocation3 + $0x95] sm:$0xf0] %vm420_vm3, %v703_v54  ;;  %v5415_v58 = vadd.f32 -0.2, %v603_v55  ;;  %6253 = vmatpush3.bf16.msra.mxu1 %v6833_v42  ;;  %6260 = vmatprep.subr.bf16.mxu0 %v7056_v1 }
 0x10a   : > { %611 = vst.msk [vmem:[#allocation3 + $0x58] sm:$0xf] %vm416_vm2, %v606_v56  ;;  %v1226_v61 = vld [vmem:[#allocation3] sm:$0xf]  ;;  %6254 = vmatprep.subr.bf16.mxu1 %v7056_v1  ;;  %6256 = vmatprep.mubr.msk.bf16.mxu1 %vm7057_vm0, %v7056_v1  ;;  %v6837_v0 = vld [vmem:[%s8245_s4 + $0x50] sm:$0xff]   ;;  %v6839_v4 = vld [vmem:[%s8245_s4 + $0x58] sm:$0xff]  }
 0x10b   : > { %615 = vst.msk [vmem:[#allocation3 + $0x5c] sm:$0xf0] %vm420_vm3, %v606_v56  ;;  %v607_v62 = vmax.f32 %v5415_v58, 0.0  ;;  %6249 = vmatmul.mubr.msk.bf16.vlgmr.msra.gmra.mrb[24].mxu0 %vm289_vm1, %v1227_v57  ;;  %v1289_v63 = vpack.c.bf16 %v1226_v61, %v1226_v61  ;;  %v1351_v3 = vld [vmem:[#allocation2 + $0x29] sm:$0xf]  ;;  %v6840_v5 = vld [vmem:[%s8244_s3 + $0x60] sm:$0xff]  }
 0x10c   : > { %6261 = vmatpush3.bf16.msra.mxu0 %v6836_v60  ;;  %6264 = vmatprep.mubr.msk.bf16.mxu0 %vm7057_vm0, %v7056_v1  ;;  %v1353_v6 = vpack.c.bf16 %v1351_v3, %v1351_v3  ;;  %v1352_v7 = vld [vmem:[#allocation3 + $0x29] sm:$0xf]  ;;  %v6841_v8 = vld [vmem:[%s8245_s4 + $0x60] sm:$0xff]   ;;  %v6844_v14 = vld [vmem:[%s8244_s3 + $0x70] sm:$0xff]   ;;  %v784_v50 = vpop.f32.mrb[8].mxu0  ;;  %v839_v53 = vpop.f32.mrb[8].mxu1 }
 0x10d   : > { %619 = vst.msk [vmem:[#allocation3 + $0x68] sm:$0xf] %vm416_vm2, %v607_v62  ;;  %6255 = vmatpush3.bf16.msra.mxu1 %v6835_v59  ;;  %6262 = vmatprep.subr.bf16.mxu0 %v7056_v1  ;;  %v6842_v9 = vld [vmem:[%s8244_s3 + $0x68] sm:$0xff]   ;;  %v1477_v10 = vld [vmem:[#allocation2 + $0x80] sm:$0xf]  ;;  %v1415_v11 = vpack.c.bf16 %v1352_v7, %v1352_v7  ;;  %v6845_v17 = vld [vmem:[%s8245_s4 + $0x70] sm:$0xff]   ;;  %v840_v56 = vadd.f32 %v839_v53, %v784_v50 }
 0x10e   : > { %623 = vst.msk [vmem:[#allocation3 + $0x6c] sm:$0xf0] %vm420_vm3, %v607_v62  ;;  %6268 = vmatprep.subr.bf16.mxu1 %v7056_v1  ;;  %v1479_v12 = vpack.c.bf16 %v1477_v10, %v1477_v10  ;;  %v6843_v13 = vld [vmem:[%s8245_s4 + $0x68] sm:$0xff]   ;;  %v1478_v15 = vld [vmem:[#allocation3 + $0x80] sm:$0xf]  ;;  %v6846_v18 = vld [vmem:[%s8244_s3 + $0x78] sm:$0xff]  }
 0x10f   : > { %v1541_v16 = vpack.c.bf16 %v1478_v15, %v1478_v15  ;;  %v1603_v19 = vld [vmem:[#allocation2 + $0x58] sm:$0xf]  ;;  %v6848_v22 = vld [vmem:[%s8244_s3 + $0x80] sm:$0xff]   ;;  %v6850_v26 = vld [vmem:[%s8244_s3 + $0x88] sm:$0xff]   ;;  %v6186_v52 = vpop.f32.mrb[9].mxu0  ;;  %v6194_v57 = vpop.f32.mrb[9].mxu1 }
 0x110   : > { %6257 = vmatmul.mubr.msk.bf16.vlgmr.msra.gmra.mrb[24].mxu1 %vm289_vm1, %v1289_v63  ;;  %6263 = vmatpush3.bf16.msra.mxu0 %v6838_v2  ;;  %v1605_v20 = vpack.c.bf16 %v1603_v19, %v1603_v19  ;;  %v6847_v21 = vld [vmem:[%s8245_s4 + $0x78] sm:$0xff]   ;;  %v6849_v25 = vld [vmem:[%s8245_s4 + $0x80] sm:$0xff]   ;;  %v6851_v28 = vld [vmem:[%s8245_s4 + $0x88] sm:$0xff]   ;;  %v787_v55 = vpop.f32.mrb[10].mxu0  ;;  %v842_v59 = vpop.f32.mrb[10].mxu1 }
 0x111   : > { %6269 = vmatpush3.bf16.msra.mxu1 %v6837_v0  ;;  %6276 = vmatprep.subr.bf16.mxu0 %v7056_v1  ;;  %v1604_v23 = vld [vmem:[#allocation3 + $0x58] sm:$0xf]  ;;  %v1729_v27 = vld [vmem:[#allocation2 + $0x81] sm:$0xf]  ;;  %v6854_v33 = vld [vmem:[%s8245_s4 + $0x8] sm:$0xff]   ;;  %v6187_v58 = vpop.f32.mrb[11].mxu0 }
 0x112   : > { %6270 = vmatprep.subr.bf16.mxu1 %v7056_v1  ;;  %6272 = vmatprep.mubr.msk.bf16.mxu1 %vm7057_vm0, %v7056_v1  ;;  %v1667_v24 = vpack.c.bf16 %v1604_v23, %v1604_v23  ;;  %v6852_v29 = vld [vmem:[%s8245_s4] sm:$0xff]   ;;  %v1731_v30 = vpack.c.bf16 %v1729_v27, %v1729_v27  ;;  %v6855_v36 = vld [vmem:[%s8244_s3 + $0x8] sm:$0xff]   ;;  %v6856_v37 = vld [vmem:[%s8244_s3 + $0x10] sm:$0xff]   ;;  %v6195_v62 = vpop.f32.mrb[11].mxu1  ;;  %v904_v63 = vpop.f32.mrb[12].mxu0 }
 0x113   : > { %6265 = vmatmul.mubr.msk.bf16.vlgmr.msra.gmra.mrb[28].mxu0 %vm289_vm1, %v1353_v6  ;;  %v1730_v31 = vld [vmem:[#allocation3 + $0x81] sm:$0xf]  ;;  %v6857_v40 = vld [vmem:[%s8245_s4 + $0x10] sm:$0xff]   ;;  %v6858_v42 = vld [vmem:[%s8244_s3 + $0x18] sm:$0xff]   ;;  %v910_v2 = vadd.f32 %v904_v63, %v840_v56  ;;  %v6202_v3 = vpop.f32.mrb[13].mxu0 }
 0x114   : > { %6277 = vmatpush3.bf16.msra.mxu0 %v6840_v5  ;;  %6280 = vmatprep.mubr.msk.bf16.mxu0 %vm7057_vm0, %v7056_v1  ;;  %v6853_v32 = vld [vmem:[%s8244_s3] sm:$0xff]   ;;  %v1793_v34 = vpack.c.bf16 %v1730_v31, %v1730_v31  ;;  %v1994_v44 = vld [vmem:[#allocation2 + $0x58] sm:$0xf]  ;;  %v6862_v49 = vld [vmem:[%s8244_s3 + $0x28] sm:$0xff]   ;;  %v907_v5 = vpop.f32.mrb[14].mxu0 }
 0x115   : > { %6271 = vmatpush3.bf16.msra.mxu1 %v6839_v4  ;;  %6278 = vmatprep.subr.bf16.mxu0 %v7056_v1  ;;  %v1873_v35 = vld [vmem:[#allocation3 + $0x80] sm:$0xf]  ;;  %v6859_v45 = vld [vmem:[%s8245_s4 + $0x18] sm:$0xff]   ;;  %v1996_v47 = vpack.c.bf16 %v1994_v44, %v1994_v44  ;;  %v6863_v60 = vld [vmem:[%s8245_s4 + $0x28] sm:$0xff]   ;;  %v6203_v6 = vpop.f32.mrb[15].mxu0 }
 0x116   : > { %6284 = vmatprep.subr.bf16.mxu1 %v7056_v1  ;;  %v1879_v38 = vpack.c.bf16 %v1873_v35, %v1873_v35  ;;  %v1872_v39 = vld [vmem:[#allocation2 + $0x80] sm:$0xf]  ;;  %v1995_v41 = vld [vmem:[#allocation3 + $0x58] sm:$0xf]  ;;  %v6864_v61 = vld [vmem:[%s8244_s3 + $0x30] sm:$0xff]   ;;  %v1030_v15 = vpop.f32.mrb[16].mxu0 }
 0x117   : > { %v1874_v43 = vpack.c.bf16 %v1872_v39, %v1872_v39  ;;  %v6860_v46 = vld [vmem:[%s8244_s3 + $0x20] sm:$0xff]   ;;  %v2057_v51 = vpack.c.bf16 %v1995_v41, %v1995_v41  ;;  %v6865_v7 = vld [vmem:[%s8245_s4 + $0x30] sm:$0xff]   ;;  %v6867_v19 = vld [vmem:[%s8245_s4 + $0x38] sm:$0xff]  }
 0x118   : > { %6273 = vmatmul.mubr.msk.bf16.vlgmr.msra.gmra.mrb[28].mxu1 %vm289_vm1, %v1415_v11  ;;  %6279 = vmatpush3.bf16.msra.mxu0 %v6842_v9  ;;  %v6861_v48 = vld [vmem:[%s8245_s4 + $0x20] sm:$0xff]   ;;  %v966_v9 = vpop.f32.mrb[12].mxu1  ;;  %v2243_v27 = vld [vmem:[#allocation3 + $0x30] sm:$0xf]  ;;  %v6870_v31 = vld [vmem:[%s8244_s3 + $0x48] sm:$0xff]  }
 0x119   : > { %6285 = vmatpush3.bf16.msra.mxu1 %v6841_v8  ;;  %6292 = vmatprep.subr.bf16.mxu0 %v7056_v1  ;;  %v2118_v54 = vld [vmem:[#allocation2 + $0x81] sm:$0xf]  ;;  %v6866_v8 = vld [vmem:[%s8244_s3 + $0x38] sm:$0xff]   ;;  %v972_v11 = vadd.f32 %v966_v9, %v910_v2  ;;  %v6872_v35 = vld [vmem:[%s8244_s3 + $0x50] sm:$0xff]  }
 0x11a   : > { %6286 = vmatprep.subr.bf16.mxu1 %v7056_v1  ;;  %6288 = vmatprep.mubr.msk.bf16.mxu1 %vm7057_vm0, %v7056_v1  ;;  %v2120_v0 = vpack.c.bf16 %v2118_v54, %v2118_v54  ;;  %v2119_v4 = vld [vmem:[#allocation3 + $0x81] sm:$0xf]  ;;  %v6874_v39 = vld [vmem:[%s8244_s3 + $0x58] sm:$0xff]   ;;  %v6878_v41 = vld [vmem:[%s8244_s3 + $0x68] sm:$0xff]  }
 0x11b   : > { %6281 = vmatmul.mubr.msk.bf16.vlgmr.msra.gmra.mrb[32].mxu0 %vm289_vm1, %v1479_v12  ;;  %v2181_v10 = vpack.c.bf16 %v2119_v4, %v2119_v4  ;;  %v6210_v12 = vpop.f32.mrb[13].mxu1  ;;  %v6876_v44 = vld [vmem:[%s8244_s3 + $0x60] sm:$0xff]   ;;  %v6879_v50 = vld [vmem:[%s8245_s4 + $0x68] sm:$0xff]   ;;  %v6881_v54 = vld [vmem:[%s8245_s4 + $0x70] sm:$0xff]  }
 0x11c   : > { %6293 = vmatpush3.bf16.msra.mxu0 %v6844_v14  ;;  %6296 = vmatprep.mubr.msk.bf16.mxu0 %vm7057_vm0, %v7056_v1  ;;  %v969_v14 = vpop.f32.mrb[14].mxu1  ;;  %v2615_v53 = vld [vmem:[#allocation3 + $0x88] sm:$0xf]  ;;  %v6882_v55 = vld [vmem:[%s8244_s3 + $0x78] sm:$0xff]   ;;  %v2738_v57 = vld [vmem:[#allocation2 + $0x60] sm:$0xf] }
 0x11d   : > { %6287 = vmatpush3.bf16.msra.mxu1 %v6843_v13  ;;  %6294 = vmatprep.subr.bf16.mxu0 %v7056_v1  ;;  %v2242_v13 = vld [vmem:[#allocation2 + $0x30] sm:$0xf]  ;;  %v2677_v56 = vpack.c.bf16 %v2615_v53, %v2615_v53  ;;  %v6883_v58 = vld [vmem:[%s8245_s4 + $0x78] sm:$0xff]   ;;  %v6884_v59 = vld [vmem:[%s8244_s3 + $0x80] sm:$0xff]  }
 0x11e   : > { %6300 = vmatprep.subr.bf16.mxu1 %v7056_v1  ;;  %v2244_v23 = vpack.c.bf16 %v2242_v13, %v2242_v13  ;;  %v6885_v62 = vld [vmem:[%s8245_s4 + $0x80] sm:$0xff]   ;;  %v6886_v63 = vld [vmem:[%s8244_s3 + $0x88] sm:$0xff]   ;;  %v6892_v12 = vld [vmem:[%s8244_s3 + $0x10] sm:$0xff]  }
 0x11f   : > { %v2862_v2 = vld [vmem:[#allocation2 + $0x89] sm:$0xf]  ;;  %v6888_v4 = vld [vmem:[%s8245_s4] sm:$0xff]  }
 0x120   : > { %6289 = vmatmul.mubr.msk.bf16.vlgmr.msra.gmra.mrb[32].mxu1 %vm289_vm1, %v1541_v16  ;;  %6295 = vmatpush3.bf16.msra.mxu0 %v6846_v18  ;;  %v1036_v16 = vadd.f32 %v1030_v15, %v972_v11  ;;  %v6218_v18 = vpop.f32.mrb[17].mxu0  ;;  %v6887_v3 = vld [vmem:[%s8245_s4 + $0x88] sm:$0xff]   ;;  %v2864_v5 = vpack.c.bf16 %v2862_v2, %v2862_v2  ;;  %v6893_v15 = vld [vmem:[%s8245_s4 + $0x10] sm:$0xff]   ;;  %v6912_v53 = vld [vmem:[%s8244_s3 + $0x60] sm:$0xff]  }
 0x121   : > { %6301 = vmatpush3.bf16.msra.mxu1 %v6845_v17  ;;  %6308 = vmatprep.subr.bf16.mxu0 %v7056_v1  ;;  %v6211_v17 = vpop.f32.mrb[15].mxu1  ;;  %v2863_v6 = vld [vmem:[#allocation3 + $0x89] sm:$0xf]  ;;  %v3120_v18 = vld [vmem:[#allocation2 + $0x60] sm:$0xf]  ;;  %v6918_v2 = vld [vmem:[%s8244_s3 + $0x78] sm:$0xff]  }
 0x122   : > { %6302 = vmatprep.subr.bf16.mxu1 %v7056_v1  ;;  %6304 = vmatprep.mubr.msk.bf16.mxu1 %vm7057_vm0, %v7056_v1  ;;  %v2925_v9 = vpack.c.bf16 %v2863_v6, %v2863_v6  ;;  %v6891_v11 = vld [vmem:[%s8244_s3 + $0x8] sm:$0xff]   ;;  %v6920_v6 = vld [vmem:[%s8244_s3 + $0x80] sm:$0xff]  }
 0x123   : > { %6297 = vmatmul.mubr.msk.bf16.vlgmr.msra.gmra.mrb[36].mxu0 %vm289_vm1, %v1605_v20  ;;  %v6868_v20 = vld [vmem:[%s8244_s3 + $0x40] sm:$0xff]   ;;  %v2998_v14 = vld [vmem:[#allocation2 + $0x88] sm:$0xf] }
 0x124   : > { %6309 = vmatpush3.bf16.msra.mxu0 %v6848_v22  ;;  %6312 = vmatprep.mubr.msk.bf16.mxu0 %vm7057_vm0, %v7056_v1  ;;  %v1033_v22 = vpop.f32.mrb[18].mxu0  ;;  %v3000_v17 = vpack.c.bf16 %v2998_v14, %v2998_v14  ;;  %v6924_v14 = vld [vmem:[%s8245_s4] sm:$0xff]  }
 0x125   : > { %6303 = vmatpush3.bf16.msra.mxu1 %v6847_v21  ;;  %6310 = vmatprep.subr.bf16.mxu0 %v7056_v1  ;;  %v1092_v21 = vpop.f32.mrb[16].mxu1  ;;  %v3121_v22 = vld [vmem:[#allocation3 + $0x60] sm:$0xf] }
 0x126   : > { %6316 = vmatprep.subr.bf16.mxu1 %v7056_v1 }
 0x128   : > { %6305 = vmatmul.mubr.msk.bf16.vlgmr.msra.gmra.mrb[36].mxu1 %vm289_vm1, %v1667_v24  ;;  %6311 = vmatpush3.bf16.msra.mxu0 %v6850_v26  ;;  %v7605_v24 = vadd.f32 %v1092_v21, %v1036_v16  ;;  %v6226_v26 = vpop.f32.mrb[17].mxu1  ;;  %v6894_v16 = vld [vmem:[%s8244_s3 + $0x18] sm:$0xff]   ;;  %v3122_v21 = vpack.c.bf16 %v3120_v18, %v3120_v18  ;;  %v6926_v18 = vld [vmem:[%s8245_s4 + $0x8] sm:$0xff]  }
 0x129   : > { %6317 = vmatpush3.bf16.msra.mxu1 %v6849_v25  ;;  %6324 = vmatprep.subr.bf16.mxu0 %v7056_v1  ;;  %v6219_v25 = vpop.f32.mrb[19].mxu0  ;;  %v3183_v26 = vpack.c.bf16 %v3121_v22, %v3121_v22  ;;  %v6928_v22 = vld [vmem:[%s8244_s3 + $0x10] sm:$0xff]  }
 0x12a   : > { %6318 = vmatprep.subr.bf16.mxu1 %v7056_v1  ;;  %6320 = vmatprep.mubr.msk.bf16.mxu1 %vm7057_vm0, %v7056_v1  ;;  %v6898_v25 = vld [vmem:[%s8244_s3 + $0x28] sm:$0xff]  }
 0x12b   : > { %6313 = vmatmul.mubr.msk.bf16.vlgmr.msra.gmra.mrb[40].mxu0 %vm289_vm1, %v1731_v30  ;;  %v6869_v30 = vld [vmem:[%s8245_s4 + $0x40] sm:$0xff]  }
 0x12c   : > { %6325 = vmatpush3.bf16.msra.mxu0 %v6852_v29  ;;  %6328 = vmatprep.mubr.msk.bf16.mxu0 %vm7057_vm0, %v7056_v1 }
 0x12d   : > { %6319 = vmatpush3.bf16.msra.mxu1 %v6851_v28  ;;  %6326 = vmatprep.subr.bf16.mxu0 %v7056_v1  ;;  %v1095_v28 = vpop.f32.mrb[18].mxu1 }
 0x12e   : > { %6332 = vmatprep.subr.bf16.mxu1 %v7056_v1  ;;  %v6227_v29 = vpop.f32.mrb[19].mxu1  ;;  %v6899_v28 = vld [vmem:[%s8245_s4 + $0x28] sm:$0xff]  }
 0x12f   : > { %v6900_v29 = vld [vmem:[%s8244_s3 + $0x30] sm:$0xff]  }
 0x130   : > { %6321 = vmatmul.mubr.msk.bf16.vlgmr.msra.gmra.mrb[40].mxu1 %vm289_vm1, %v1793_v34  ;;  %6327 = vmatpush3.bf16.msra.mxu0 %v6854_v33  ;;  %v2366_v33 = vld [vmem:[#allocation2 + $0x8] sm:$0xf] }
 0x131   : > { %6333 = vmatpush3.bf16.msra.mxu1 %v6853_v32  ;;  %6340 = vmatprep.subr.bf16.mxu0 %v7056_v1  ;;  %v2305_v32 = vpack.c.bf16 %v2243_v27, %v2243_v27  ;;  %v6871_v34 = vld [vmem:[%s8245_s4 + $0x48] sm:$0xff]  }
 0x132   : > { %6334 = vmatprep.subr.bf16.mxu1 %v7056_v1  ;;  %6336 = vmatprep.mubr.msk.bf16.mxu1 %vm7057_vm0, %v7056_v1  ;;  %v3244_v27 = vld [vmem:[#allocation2 + $0x89] sm:$0xf] }
 0x133   : > { %6329 = vmatmul.mubr.msk.bf16.vlgmr.msra.gmra.mrb[44].mxu0 %vm289_vm1, %v1879_v38  ;;  %v6873_v38 = vld [vmem:[%s8245_s4 + $0x50] sm:$0xff]  }
 0x134   : > { %6341 = vmatpush3.bf16.msra.mxu0 %v6856_v37  ;;  %6344 = vmatprep.mubr.msk.bf16.mxu0 %vm7057_vm0, %v7056_v1  ;;  %v2367_v37 = vld [vmem:[#allocation3 + $0x8] sm:$0xf] }
 0x135   : > { %6335 = vmatpush3.bf16.msra.mxu1 %v6855_v36  ;;  %6342 = vmatprep.subr.bf16.mxu0 %v7056_v1  ;;  %v2368_v36 = vpack.c.bf16 %v2366_v33, %v2366_v33  ;;  %v6902_v33 = vld [vmem:[%s8244_s3 + $0x38] sm:$0xff]  }
 0x136   : > { %6348 = vmatprep.subr.bf16.mxu1 %v7056_v1 }
 0x138   : > { %6337 = vmatmul.mubr.msk.bf16.vlgmr.msra.gmra.mrb[44].mxu1 %vm289_vm1, %v1874_v43  ;;  %6343 = vmatpush3.bf16.msra.mxu0 %v6858_v42  ;;  %v2490_v42 = vld [vmem:[#allocation2 + $0x31] sm:$0xf]  ;;  %v6875_v43 = vld [vmem:[%s8245_s4 + $0x58] sm:$0xff]  }
 0x139   : > { %6349 = vmatpush3.bf16.msra.mxu1 %v6857_v40  ;;  %6356 = vmatprep.subr.bf16.mxu0 %v7056_v1  ;;  %v2429_v40 = vpack.c.bf16 %v2367_v37, %v2367_v37  ;;  %v6904_v37 = vld [vmem:[%s8244_s3 + $0x40] sm:$0xff]  }
 0x13a   : > { %6350 = vmatprep.subr.bf16.mxu1 %v7056_v1  ;;  %6352 = vmatprep.mubr.msk.bf16.mxu1 %vm7057_vm0, %v7056_v1 }
 0x13b   : > { %6345 = vmatmul.mubr.msk.bf16.vlgmr.msra.gmra.mrb[48].mxu0 %vm289_vm1, %v1996_v47  ;;  %v6877_v47 = vld [vmem:[%s8245_s4 + $0x60] sm:$0xff]  }
 0x13c   : > { %6357 = vmatpush3.bf16.msra.mxu0 %v6860_v46  ;;  %6360 = vmatprep.mubr.msk.bf16.mxu0 %vm7057_vm0, %v7056_v1  ;;  %v2491_v46 = vld [vmem:[#allocation3 + $0x31] sm:$0xf] }
 0x13d   : > { %6351 = vmatpush3.bf16.msra.mxu1 %v6859_v45  ;;  %6358 = vmatprep.subr.bf16.mxu0 %v7056_v1  ;;  %v2492_v45 = vpack.c.bf16 %v2490_v42, %v2490_v42  ;;  %v6906_v42 = vld [vmem:[%s8244_s3 + $0x48] sm:$0xff]  }
 0x13e   : > { %6364 = vmatprep.subr.bf16.mxu1 %v7056_v1 }
 0x140   : > { %6353 = vmatmul.mubr.msk.bf16.vlgmr.msra.gmra.mrb[48].mxu1 %vm289_vm1, %v2057_v51  ;;  %6359 = vmatpush3.bf16.msra.mxu0 %v6862_v49  ;;  %v2614_v49 = vld [vmem:[#allocation2 + $0x88] sm:$0xf]  ;;  %v6880_v51 = vld [vmem:[%s8244_s3 + $0x70] sm:$0xff]  }
 0x141   : > { %6365 = vmatpush3.bf16.msra.mxu1 %v6861_v48  ;;  %6372 = vmatprep.subr.bf16.mxu0 %v7056_v1  ;;  %v2553_v48 = vpack.c.bf16 %v2491_v46, %v2491_v46  ;;  %v2616_v52 = vpack.c.bf16 %v2614_v49, %v2614_v49  ;;  %v6908_v46 = vld [vmem:[%s8244_s3 + $0x50] sm:$0xff]   ;;  %v6910_v49 = vld [vmem:[%s8244_s3 + $0x58] sm:$0xff]  }
 0x142   : > { %6366 = vmatprep.subr.bf16.mxu1 %v7056_v1  ;;  %6368 = vmatprep.mubr.msk.bf16.mxu1 %vm7057_vm0, %v7056_v1 }
 0x143   : > { %6361 = vmatmul.mubr.msk.bf16.vlgmr.msra.gmra.mrb[52].mxu0 %vm289_vm1, %v2120_v0 }
 0x144   : > { %6373 = vmatpush3.bf16.msra.mxu0 %v6864_v61  ;;  %6376 = vmatprep.mubr.msk.bf16.mxu0 %vm7057_vm0, %v7056_v1  ;;  %v2739_v61 = vld [vmem:[#allocation3 + $0x60] sm:$0xf] }
 0x145   : > { %6367 = vmatpush3.bf16.msra.mxu1 %v6863_v60  ;;  %6374 = vmatprep.subr.bf16.mxu0 %v7056_v1  ;;  %v2740_v60 = vpack.c.bf16 %v2738_v57, %v2738_v57  ;;  %v2801_v0 = vpack.c.bf16 %v2739_v61, %v2739_v61  ;;  %v6914_v57 = vld [vmem:[%s8244_s3 + $0x68] sm:$0xff]   ;;  %v6916_v61 = vld [vmem:[%s8244_s3 + $0x70] sm:$0xff]  }
 0x146   : > { %6380 = vmatprep.subr.bf16.mxu1 %v7056_v1 }
 0x148   : > { %6369 = vmatmul.mubr.msk.bf16.vlgmr.msra.gmra.mrb[52].mxu1 %vm289_vm1, %v2181_v10  ;;  %6375 = vmatpush3.bf16.msra.mxu0 %v6866_v8  ;;  %v6890_v8 = vld [vmem:[%s8245_s4 + $0x8] sm:$0xff]  }
 0x149   : > { %6381 = vmatpush3.bf16.msra.mxu1 %v6865_v7  ;;  %6388 = vmatprep.subr.bf16.mxu0 %v7056_v1  ;;  %v6889_v7 = vld [vmem:[%s8244_s3] sm:$0xff]   ;;  %v2999_v10 = vld [vmem:[#allocation3 + $0x88] sm:$0xf] }
 0x14a   : > { %6382 = vmatprep.subr.bf16.mxu1 %v7056_v1  ;;  %6384 = vmatprep.mubr.msk.bf16.mxu1 %vm7057_vm0, %v7056_v1  ;;  %v3005_v13 = vpack.c.bf16 %v2999_v10, %v2999_v10  ;;  %v6922_v10 = vld [vmem:[%s8244_s3 + $0x88] sm:$0xff]  }
 0x14b   : > { %6377 = vmatmul.mubr.msk.bf16.vlgmr.msra.gmra.mrb[56].mxu0 %vm289_vm1, %v2244_v23  ;;  %v6897_v23 = vld [vmem:[%s8245_s4 + $0x20] sm:$0xff]  }
 0x14c   : > { %6389 = vmatpush3.bf16.msra.mxu0 %v6868_v20  ;;  %6392 = vmatprep.mubr.msk.bf16.mxu0 %vm7057_vm0, %v7056_v1  ;;  %v6896_v20 = vld [vmem:[%s8244_s3 + $0x20] sm:$0xff]  }
 0x14d   : > { %6383 = vmatpush3.bf16.msra.mxu1 %v6867_v19  ;;  %6390 = vmatprep.subr.bf16.mxu0 %v7056_v1  ;;  %v6895_v19 = vld [vmem:[%s8245_s4 + $0x18] sm:$0xff]  }
 0x14e   : > { %6396 = vmatprep.subr.bf16.mxu1 %v7056_v1 }
 0x150   : > { %6385 = vmatmul.mubr.msk.bf16.vlgmr.msra.gmra.mrb[56].mxu1 %vm289_vm1, %v2305_v32  ;;  %6391 = vmatpush3.bf16.msra.mxu0 %v6870_v31  ;;  %v3245_v31 = vld [vmem:[#allocation3 + $0x89] sm:$0xf]  ;;  %v6901_v32 = vld [vmem:[%s8245_s4 + $0x30] sm:$0xff]  }
 0x151   : > { %6397 = vmatpush3.bf16.msra.mxu1 %v6869_v30  ;;  %6404 = vmatprep.subr.bf16.mxu0 %v7056_v1  ;;  %v3246_v30 = vpack.c.bf16 %v3244_v27, %v3244_v27  ;;  %v6930_v27 = vld [vmem:[%s8244_s3 + $0x18] sm:$0xff]  }
 0x152   : > { %6398 = vmatprep.subr.bf16.mxu1 %v7056_v1  ;;  %6400 = vmatprep.mubr.msk.bf16.mxu1 %vm7057_vm0, %v7056_v1 }
 0x153   : > { %6393 = vmatmul.mubr.msk.bf16.vlgmr.msra.gmra.mrb[60].mxu0 %vm289_vm1, %v2368_v36  ;;  %v6903_v36 = vld [vmem:[%s8245_s4 + $0x38] sm:$0xff]  }
 0x154   : > { %6405 = vmatpush3.bf16.msra.mxu0 %v6872_v35  ;;  %6408 = vmatprep.mubr.msk.bf16.mxu0 %vm7057_vm0, %v7056_v1  ;;  %v3368_v35 = vld [vmem:[#allocation2 + $0x38] sm:$0xf] }
 0x155   : > { %6399 = vmatpush3.bf16.msra.mxu1 %v6871_v34  ;;  %6406 = vmatprep.subr.bf16.mxu0 %v7056_v1  ;;  %v3307_v34 = vpack.c.bf16 %v3245_v31, %v3245_v31  ;;  %v6932_v31 = vld [vmem:[%s8244_s3 + $0x20] sm:$0xff]  }
 0x156   : > { %6412 = vmatprep.subr.bf16.mxu1 %v7056_v1 }
 0x158   : > { %6401 = vmatmul.mubr.msk.bf16.vlgmr.msra.gmra.mrb[60].mxu1 %vm289_vm1, %v2429_v40  ;;  %6407 = vmatpush3.bf16.msra.mxu0 %v6874_v39  ;;  %v3369_v39 = vld [vmem:[#allocation3 + $0x38] sm:$0xf]  ;;  %v6905_v40 = vld [vmem:[%s8245_s4 + $0x40] sm:$0xff]  }
 0x159   : > { %6413 = vmatpush3.bf16.msra.mxu1 %v6873_v38  ;;  %6420 = vmatprep.subr.bf16.mxu0 %v7056_v1  ;;  %v3370_v38 = vpack.c.bf16 %v3368_v35, %v3368_v35  ;;  %v6934_v35 = vld [vmem:[%s8244_s3 + $0x28] sm:$0xff]  }
 0x15a   : > { %6414 = vmatprep.subr.bf16.mxu1 %v7056_v1  ;;  %6416 = vmatprep.mubr.msk.bf16.mxu1 %vm7057_vm0, %v7056_v1 }
 0x15b   : > { %6409 = vmatmul.mubr.msk.bf16.vlgmr.msra.gmra.mrb[64].mxu0 %vm289_vm1, %v2492_v45  ;;  %v6907_v45 = vld [vmem:[%s8245_s4 + $0x48] sm:$0xff]  }
 0x15c   : > { %6421 = vmatpush3.bf16.msra.mxu0 %v6876_v44  ;;  %6424 = vmatprep.mubr.msk.bf16.mxu0 %vm7057_vm0, %v7056_v1  ;;  %v3492_v44 = vld [vmem:[#allocation2 + $0x10] sm:$0xf] }
 0x15d   : > { %6415 = vmatpush3.bf16.msra.mxu1 %v6875_v43  ;;  %6422 = vmatprep.subr.bf16.mxu0 %v7056_v1  ;;  %v3431_v43 = vpack.c.bf16 %v3369_v39, %v3369_v39  ;;  %v6936_v39 = vld [vmem:[%s8244_s3 + $0x30] sm:$0xff]  }
 0x15e   : > { %6428 = vmatprep.subr.bf16.mxu1 %v7056_v1 }
 0x160   : > { %6417 = vmatmul.mubr.msk.bf16.vlgmr.msra.gmra.mrb[64].mxu1 %vm289_vm1, %v2553_v48  ;;  %6423 = vmatpush3.bf16.msra.mxu0 %v6878_v41  ;;  %v3493_v41 = vld [vmem:[#allocation3 + $0x10] sm:$0xf] }
 0x161   : > { %6429 = vmatpush3.bf16.msra.mxu1 %v6877_v47  ;;  %6436 = vmatprep.subr.bf16.mxu0 %v7056_v1  ;;  %v3494_v47 = vpack.c.bf16 %v3492_v44, %v3492_v44  ;;  %v6909_v48 = vld [vmem:[%s8245_s4 + $0x50] sm:$0xff]   ;;  %v6938_v44 = vld [vmem:[%s8244_s3 + $0x38] sm:$0xff]  }
 0x162   : > { %6430 = vmatprep.subr.bf16.mxu1 %v7056_v1  ;;  %6432 = vmatprep.mubr.msk.bf16.mxu1 %vm7057_vm0, %v7056_v1 }
 0x163   : > { %6425 = vmatmul.mubr.msk.bf16.vlgmr.msra.gmra.mrb[68].mxu0 %vm289_vm1, %v2616_v52  ;;  %v6911_v52 = vld [vmem:[%s8245_s4 + $0x58] sm:$0xff]  }
 0x164   : > { %6437 = vmatpush3.bf16.msra.mxu0 %v6880_v51  ;;  %6440 = vmatprep.mubr.msk.bf16.mxu0 %vm7057_vm0, %v7056_v1  ;;  %v3616_v51 = vld [vmem:[#allocation2 + $0x39] sm:$0xf] }
 0x165   : > { %6431 = vmatpush3.bf16.msra.mxu1 %v6879_v50  ;;  %6438 = vmatprep.subr.bf16.mxu0 %v7056_v1  ;;  %v3555_v50 = vpack.c.bf16 %v3493_v41, %v3493_v41 }
 0x166   : > { %6444 = vmatprep.subr.bf16.mxu1 %v7056_v1 }
 0x168   : > { %6433 = vmatmul.mubr.msk.bf16.vlgmr.msra.gmra.mrb[68].mxu1 %vm289_vm1, %v2677_v56  ;;  %6439 = vmatpush3.bf16.msra.mxu0 %v6882_v55  ;;  %v3617_v55 = vld [vmem:[#allocation3 + $0x39] sm:$0xf]  ;;  %v6913_v56 = vld [vmem:[%s8245_s4 + $0x60] sm:$0xff]  }
 0x169   : > { %6445 = vmatpush3.bf16.msra.mxu1 %v6881_v54  ;;  %6452 = vmatprep.subr.bf16.mxu0 %v7056_v1  ;;  %v3618_v54 = vpack.c.bf16 %v3616_v51, %v3616_v51  ;;  %v6940_v51 = vld [vmem:[%s8244_s3 + $0x40] sm:$0xff]  }
 0x16a   : > { %6446 = vmatprep.subr.bf16.mxu1 %v7056_v1  ;;  %6448 = vmatprep.mubr.msk.bf16.mxu1 %vm7057_vm0, %v7056_v1 }
 0x16b   : > { %6441 = vmatmul.mubr.msk.bf16.vlgmr.msra.gmra.mrb[72].mxu0 %vm289_vm1, %v2740_v60  ;;  %v6915_v60 = vld [vmem:[%s8245_s4 + $0x68] sm:$0xff]  }
 0x16c   : > { %6453 = vmatpush3.bf16.msra.mxu0 %v6884_v59  ;;  %6456 = vmatprep.mubr.msk.bf16.mxu0 %vm7057_vm0, %v7056_v1  ;;  %v3740_v59 = vld [vmem:[#allocation2 + $0x90] sm:$0xf] }
 0x16d   : > { %6447 = vmatpush3.bf16.msra.mxu1 %v6883_v58  ;;  %6454 = vmatprep.subr.bf16.mxu0 %v7056_v1  ;;  %v3679_v58 = vpack.c.bf16 %v3617_v55, %v3617_v55 }
 0x16e   : > { %6460 = vmatprep.subr.bf16.mxu1 %v7056_v1 }
 0x170   : > { %6449 = vmatmul.mubr.msk.bf16.vlgmr.msra.gmra.mrb[72].mxu1 %vm289_vm1, %v2801_v0  ;;  %6455 = vmatpush3.bf16.msra.mxu0 %v6886_v63  ;;  %v3741_v63 = vld [vmem:[#allocation3 + $0x90] sm:$0xf] }
 0x171   : > { %6461 = vmatpush3.bf16.msra.mxu1 %v6885_v62  ;;  %6468 = vmatprep.subr.bf16.mxu0 %v7056_v1  ;;  %v3742_v62 = vpack.c.bf16 %v3740_v59, %v3740_v59  ;;  %v6917_v0 = vld [vmem:[%s8245_s4 + $0x70] sm:$0xff]   ;;  %v6942_v59 = vld [vmem:[%s8244_s3 + $0x48] sm:$0xff]  }
 0x172   : > { %6462 = vmatprep.subr.bf16.mxu1 %v7056_v1  ;;  %6464 = vmatprep.mubr.msk.bf16.mxu1 %vm7057_vm0, %v7056_v1 }
 0x173   : > { %6457 = vmatmul.mubr.msk.bf16.vlgmr.msra.gmra.mrb[76].mxu0 %vm289_vm1, %v2864_v5  ;;  %v6919_v5 = vld [vmem:[%s8245_s4 + $0x78] sm:$0xff]  }
 0x174   : > { %6469 = vmatpush3.bf16.msra.mxu0 %v6888_v4  ;;  %6472 = vmatprep.mubr.msk.bf16.mxu0 %vm7057_vm0, %v7056_v1  ;;  %v3864_v4 = vld [vmem:[#allocation2 + $0x68] sm:$0xf] }
 0x175   : > { %6463 = vmatpush3.bf16.msra.mxu1 %v6887_v3  ;;  %6470 = vmatprep.subr.bf16.mxu0 %v7056_v1  ;;  %v3803_v3 = vpack.c.bf16 %v3741_v63, %v3741_v63  ;;  %v4618_v63 = vld [vmem:[#allocation2 + $0x18] sm:$0xf] }
 0x176   : > { %6476 = vmatprep.subr.bf16.mxu1 %v7056_v1 }
 0x178   : > { %6465 = vmatmul.mubr.msk.bf16.vlgmr.msra.gmra.mrb[76].mxu1 %vm289_vm1, %v2925_v9  ;;  %6471 = vmatpush3.bf16.msra.mxu0 %v6890_v8  ;;  %v3865_v8 = vld [vmem:[#allocation3 + $0x68] sm:$0xf]  ;;  %v6921_v9 = vld [vmem:[%s8245_s4 + $0x80] sm:$0xff]  }
 0x179   : > { %6477 = vmatpush3.bf16.msra.mxu1 %v6889_v7  ;;  %6484 = vmatprep.subr.bf16.mxu0 %v7056_v1  ;;  %v3866_v7 = vpack.c.bf16 %v3864_v4, %v3864_v4  ;;  %v6943_v4 = vld [vmem:[%s8245_s4 + $0x48] sm:$0xff]  }
 0x17a   : > { %6478 = vmatprep.subr.bf16.mxu1 %v7056_v1  ;;  %6480 = vmatprep.mubr.msk.bf16.mxu1 %vm7057_vm0, %v7056_v1 }
 0x17b   : > { %6473 = vmatmul.mubr.msk.bf16.vlgmr.msra.gmra.mrb[80].mxu0 %vm289_vm1, %v3005_v13  ;;  %v6923_v13 = vld [vmem:[%s8245_s4 + $0x88] sm:$0xff]  }
 0x17c   : > { %6485 = vmatpush3.bf16.msra.mxu0 %v6892_v12  ;;  %6488 = vmatprep.mubr.msk.bf16.mxu0 %vm7057_vm0, %v7056_v1  ;;  %v3988_v12 = vld [vmem:[#allocation2 + $0x91] sm:$0xf] }
 0x17d   : > { %6479 = vmatpush3.bf16.msra.mxu1 %v6891_v11  ;;  %6486 = vmatprep.subr.bf16.mxu0 %v7056_v1  ;;  %v3927_v11 = vpack.c.bf16 %v3865_v8, %v3865_v8 }
 0x17e   : > { %6492 = vmatprep.subr.bf16.mxu1 %v7056_v1 }
 0x180   : > { %6481 = vmatmul.mubr.msk.bf16.vlgmr.msra.gmra.mrb[80].mxu1 %vm289_vm1, %v3000_v17  ;;  %6487 = vmatpush3.bf16.msra.mxu0 %v6894_v16  ;;  %v3989_v16 = vld [vmem:[#allocation3 + $0x91] sm:$0xf]  ;;  %v6925_v17 = vld [vmem:[%s8244_s3] sm:$0xff]  }
 0x181   : > { %6493 = vmatpush3.bf16.msra.mxu1 %v6893_v15  ;;  %6500 = vmatprep.subr.bf16.mxu0 %v7056_v1  ;;  %v3990_v15 = vpack.c.bf16 %v3988_v12, %v3988_v12 }
 0x182   : > { %6494 = vmatprep.subr.bf16.mxu1 %v7056_v1  ;;  %6496 = vmatprep.mubr.msk.bf16.mxu1 %vm7057_vm0, %v7056_v1 }
 0x183   : > { %6489 = vmatmul.mubr.msk.bf16.vlgmr.msra.gmra.mrb[84].mxu0 %vm289_vm1, %v3122_v21  ;;  %v6927_v21 = vld [vmem:[%s8244_s3 + $0x8] sm:$0xff]  }
 0x184   : > { %6501 = vmatpush3.bf16.msra.mxu0 %v6896_v20  ;;  %6504 = vmatprep.mubr.msk.bf16.mxu0 %vm7057_vm0, %v7056_v1  ;;  %v4125_v20 = vld [vmem:[#allocation3 + $0x90] sm:$0xf] }
 0x185   : > { %6495 = vmatpush3.bf16.msra.mxu1 %v6895_v19  ;;  %6502 = vmatprep.subr.bf16.mxu0 %v7056_v1  ;;  %v4051_v19 = vpack.c.bf16 %v3989_v16, %v3989_v16 }
 0x186   : > { %6508 = vmatprep.subr.bf16.mxu1 %v7056_v1 }
 0x188   : > { %6497 = vmatmul.mubr.msk.bf16.vlgmr.msra.gmra.mrb[84].mxu1 %vm289_vm1, %v3183_v26  ;;  %6503 = vmatpush3.bf16.msra.mxu0 %v6898_v25  ;;  %v4124_v25 = vld [vmem:[#allocation2 + $0x90] sm:$0xf] }
 0x189   : > { %6509 = vmatpush3.bf16.msra.mxu1 %v6897_v23  ;;  %6516 = vmatprep.subr.bf16.mxu0 %v7056_v1  ;;  %v4131_v23 = vpack.c.bf16 %v4125_v20, %v4125_v20  ;;  %v6929_v26 = vld [vmem:[%s8245_s4 + $0x10] sm:$0xff]  }
 0x18a   : > { %6510 = vmatprep.subr.bf16.mxu1 %v7056_v1  ;;  %6512 = vmatprep.mubr.msk.bf16.mxu1 %vm7057_vm0, %v7056_v1 }
 0x18b   : > { %6505 = vmatmul.mubr.msk.bf16.vlgmr.msra.gmra.mrb[88].mxu0 %vm289_vm1, %v3246_v30  ;;  %v6931_v30 = vld [vmem:[%s8245_s4 + $0x18] sm:$0xff]  }
 0x18c   : > { %6517 = vmatpush3.bf16.msra.mxu0 %v6900_v29  ;;  %6520 = vmatprep.mubr.msk.bf16.mxu0 %vm7057_vm0, %v7056_v1  ;;  %v4246_v29 = vld [vmem:[#allocation2 + $0x68] sm:$0xf] }
 0x18d   : > { %6511 = vmatpush3.bf16.msra.mxu1 %v6899_v28  ;;  %6518 = vmatprep.subr.bf16.mxu0 %v7056_v1  ;;  %v4126_v28 = vpack.c.bf16 %v4124_v25, %v4124_v25 }
 0x18e   : > { %6524 = vmatprep.subr.bf16.mxu1 %v7056_v1 }
 0x190   : > { %6513 = vmatmul.mubr.msk.bf16.vlgmr.msra.gmra.mrb[88].mxu1 %vm289_vm1, %v3307_v34  ;;  %6519 = vmatpush3.bf16.msra.mxu0 %v6902_v33  ;;  %v4247_v33 = vld [vmem:[#allocation3 + $0x68] sm:$0xf]  ;;  %v6933_v34 = vld [vmem:[%s8245_s4 + $0x20] sm:$0xff]  }
 0x191   : > { %6525 = vmatpush3.bf16.msra.mxu1 %v6901_v32  ;;  %6532 = vmatprep.subr.bf16.mxu0 %v7056_v1  ;;  %v4248_v32 = vpack.c.bf16 %v4246_v29, %v4246_v29 }
 0x192   : > { %6526 = vmatprep.subr.bf16.mxu1 %v7056_v1  ;;  %6528 = vmatprep.mubr.msk.bf16.mxu1 %vm7057_vm0, %v7056_v1 }
 0x193   : > { %6521 = vmatmul.mubr.msk.bf16.vlgmr.msra.gmra.mrb[92].mxu0 %vm289_vm1, %v3370_v38  ;;  %v6935_v38 = vld [vmem:[%s8245_s4 + $0x28] sm:$0xff]  }
 0x194   : > { %6533 = vmatpush3.bf16.msra.mxu0 %v6904_v37  ;;  %6536 = vmatprep.mubr.msk.bf16.mxu0 %vm7057_vm0, %v7056_v1  ;;  %v4370_v37 = vld [vmem:[#allocation2 + $0x91] sm:$0xf] }
 0x195   : > { %6527 = vmatpush3.bf16.msra.mxu1 %v6903_v36  ;;  %6534 = vmatprep.subr.bf16.mxu0 %v7056_v1  ;;  %v4309_v36 = vpack.c.bf16 %v4247_v33, %v4247_v33  ;;  %v6950_v33 = vld [vmem:[%s8244_s3 + $0x68] sm:$0xff]  }
 0x196   : > { %6540 = vmatprep.subr.bf16.mxu1 %v7056_v1 }
 0x198   : > { %6529 = vmatmul.mubr.msk.bf16.vlgmr.msra.gmra.mrb[92].mxu1 %vm289_vm1, %v3431_v43  ;;  %6535 = vmatpush3.bf16.msra.mxu0 %v6906_v42  ;;  %v4371_v42 = vld [vmem:[#allocation3 + $0x91] sm:$0xf] }
 0x199   : > { %6541 = vmatpush3.bf16.msra.mxu1 %v6905_v40  ;;  %6548 = vmatprep.subr.bf16.mxu0 %v7056_v1  ;;  %v4372_v40 = vpack.c.bf16 %v4370_v37, %v4370_v37  ;;  %v6937_v43 = vld [vmem:[%s8245_s4 + $0x30] sm:$0xff]   ;;  %v4866_v37 = vld [vmem:[#allocation2 + $0x98] sm:$0xf] }
 0x19a   : > { %6542 = vmatprep.subr.bf16.mxu1 %v7056_v1  ;;  %6544 = vmatprep.mubr.msk.bf16.mxu1 %vm7057_vm0, %v7056_v1 }
 0x19b   : > { %6537 = vmatmul.mubr.msk.bf16.vlgmr.msra.gmra.mrb[96].mxu0 %vm289_vm1, %v3494_v47  ;;  %v4494_v47 = vld [vmem:[#allocation2 + $0x40] sm:$0xf] }
 0x19c   : > { %6549 = vmatpush3.bf16.msra.mxu0 %v6908_v46  ;;  %6552 = vmatprep.mubr.msk.bf16.mxu0 %vm7057_vm0, %v7056_v1 }
 0x19d   : > { %6543 = vmatpush3.bf16.msra.mxu1 %v6907_v45  ;;  %6550 = vmatprep.subr.bf16.mxu0 %v7056_v1  ;;  %v4433_v45 = vpack.c.bf16 %v4371_v42, %v4371_v42  ;;  %v6951_v42 = vld [vmem:[%s8245_s4 + $0x68] sm:$0xff]  }
 0x19e   : > { %6556 = vmatprep.subr.bf16.mxu1 %v7056_v1 }
 0x1a0   : > { %6545 = vmatmul.mubr.msk.bf16.vlgmr.msra.gmra.mrb[96].mxu1 %vm289_vm1, %v3555_v50  ;;  %6551 = vmatpush3.bf16.msra.mxu0 %v6910_v49  ;;  %v6939_v50 = vld [vmem:[%s8245_s4 + $0x38] sm:$0xff]  }
 0x1a1   : > { %6557 = vmatpush3.bf16.msra.mxu1 %v6909_v48  ;;  %6564 = vmatprep.subr.bf16.mxu0 %v7056_v1 }
 0x1a2   : > { %6558 = vmatprep.subr.bf16.mxu1 %v7056_v1  ;;  %6560 = vmatprep.mubr.msk.bf16.mxu1 %vm7057_vm0, %v7056_v1 }
 0x1a3   : > { %6553 = vmatmul.mubr.msk.bf16.vlgmr.msra.gmra.mrb[100].mxu0 %vm289_vm1, %v3618_v54  ;;  %v4495_v54 = vld [vmem:[#allocation3 + $0x40] sm:$0xf] }
 0x1a4   : > { %6565 = vmatpush3.bf16.msra.mxu0 %v6912_v53  ;;  %6568 = vmatprep.mubr.msk.bf16.mxu0 %vm7057_vm0, %v7056_v1  ;;  %v4496_v53 = vpack.c.bf16 %v4494_v47, %v4494_v47  ;;  %v4867_v47 = vld [vmem:[#allocation3 + $0x98] sm:$0xf] }
 0x1a5   : > { %6559 = vmatpush3.bf16.msra.mxu1 %v6911_v52  ;;  %6566 = vmatprep.subr.bf16.mxu0 %v7056_v1 }
 0x1a6   : > { %6572 = vmatprep.subr.bf16.mxu1 %v7056_v1 }
 0x1a8   : > { %6561 = vmatmul.mubr.msk.bf16.vlgmr.msra.gmra.mrb[100].mxu1 %vm289_vm1, %v3679_v58  ;;  %6567 = vmatpush3.bf16.msra.mxu0 %v6914_v57  ;;  %v6941_v58 = vld [vmem:[%s8245_s4 + $0x40] sm:$0xff]  }
 0x1a9   : > { %6573 = vmatpush3.bf16.msra.mxu1 %v6913_v56  ;;  %6580 = vmatprep.subr.bf16.mxu0 %v7056_v1 }
 0x1aa   : > { %6574 = vmatprep.subr.bf16.mxu1 %v7056_v1  ;;  %6576 = vmatprep.mubr.msk.bf16.mxu1 %vm7057_vm0, %v7056_v1 }
 0x1ab   : > { %6569 = vmatmul.mubr.msk.bf16.vlgmr.msra.gmra.mrb[104].mxu0 %vm289_vm1, %v3742_v62 }
 0x1ac   : > { %6581 = vmatpush3.bf16.msra.mxu0 %v6916_v61  ;;  %6584 = vmatprep.mubr.msk.bf16.mxu0 %vm7057_vm0, %v7056_v1  ;;  %v4557_v61 = vpack.c.bf16 %v4495_v54, %v4495_v54  ;;  %v4990_v54 = vld [vmem:[#allocation2 + $0x70] sm:$0xf] }
 0x1ad   : > { %6575 = vmatpush3.bf16.msra.mxu1 %v6915_v60  ;;  %6582 = vmatprep.subr.bf16.mxu0 %v7056_v1 }
 0x1ae   : > { %6588 = vmatprep.subr.bf16.mxu1 %v7056_v1 }
 0x1b0   : > { %6577 = vmatmul.mubr.msk.bf16.vlgmr.msra.gmra.mrb[104].mxu1 %vm289_vm1, %v3803_v3  ;;  %6583 = vmatpush3.bf16.msra.mxu0 %v6918_v2 }
 0x1b1   : > { %6589 = vmatpush3.bf16.msra.mxu1 %v6917_v0  ;;  %6596 = vmatprep.subr.bf16.mxu0 %v7056_v1 }
 0x1b2   : > { %6590 = vmatprep.subr.bf16.mxu1 %v7056_v1  ;;  %6592 = vmatprep.mubr.msk.bf16.mxu1 %vm7057_vm0, %v7056_v1 }
 0x1b3   : > { %6585 = vmatmul.mubr.msk.bf16.vlgmr.msra.gmra.mrb[108].mxu0 %vm289_vm1, %v3866_v7  ;;  %v4620_v7 = vpack.c.bf16 %v4618_v63, %v4618_v63  ;;  %v4991_v63 = vld [vmem:[#allocation3 + $0x70] sm:$0xf] }
 0x1b4   : > { %6597 = vmatpush3.bf16.msra.mxu0 %v6920_v6  ;;  %6600 = vmatprep.mubr.msk.bf16.mxu0 %vm7057_vm0, %v7056_v1 }
 0x1b5   : > { %6591 = vmatpush3.bf16.msra.mxu1 %v6919_v5  ;;  %6598 = vmatprep.subr.bf16.mxu0 %v7056_v1  ;;  %v6944_v5 = vld [vmem:[%s8244_s3 + $0x50] sm:$0xff]  }
 0x1b6   : > { %6604 = vmatprep.subr.bf16.mxu1 %v7056_v1 }
 0x1b8   : > { %6593 = vmatmul.mubr.msk.bf16.vlgmr.msra.gmra.mrb[108].mxu1 %vm289_vm1, %v3927_v11  ;;  %6599 = vmatpush3.bf16.msra.mxu0 %v6922_v10 }
 0x1b9   : > { %6605 = vmatpush3.bf16.msra.mxu1 %v6921_v9  ;;  %6612 = vmatprep.subr.bf16.mxu0 %v7056_v1  ;;  %v4619_v9 = vld [vmem:[#allocation3 + $0x18] sm:$0xf] }
 0x1ba   : > { %6606 = vmatprep.subr.bf16.mxu1 %v7056_v1  ;;  %6608 = vmatprep.mubr.msk.bf16.mxu1 %vm7057_vm0, %v7056_v1  ;;  %v4681_v16 = vpack.c.bf16 %v4619_v9, %v4619_v9  ;;  %v5114_v9 = vld [vmem:[#allocation2 + $0x99] sm:$0xf] }
 0x1bb   : > { %6601 = vmatmul.mubr.msk.bf16.vlgmr.msra.gmra.mrb[112].mxu0 %vm289_vm1, %v3990_v15 }
 0x1bc   : > { %6613 = vmatpush3.bf16.msra.mxu0 %v6924_v14  ;;  %6616 = vmatprep.mubr.msk.bf16.mxu0 %vm7057_vm0, %v7056_v1  ;;  %v6946_v14 = vld [vmem:[%s8244_s3 + $0x58] sm:$0xff]  }
 0x1bd   : > { %6607 = vmatpush3.bf16.msra.mxu1 %v6923_v13  ;;  %6614 = vmatprep.subr.bf16.mxu0 %v7056_v1  ;;  %v6945_v13 = vld [vmem:[%s8245_s4 + $0x50] sm:$0xff]  }
 0x1be   : > { %6620 = vmatprep.subr.bf16.mxu1 %v7056_v1 }
 0x1c0   : > { %6609 = vmatmul.mubr.msk.bf16.vlgmr.msra.gmra.mrb[112].mxu1 %vm289_vm1, %v4051_v19  ;;  %6615 = vmatpush3.bf16.msra.mxu0 %v6926_v18  ;;  %v4742_v18 = vld [vmem:[#allocation2 + $0x41] sm:$0xf] }
 0x1c1   : > { %6621 = vmatpush3.bf16.msra.mxu1 %v6925_v17  ;;  %6628 = vmatprep.subr.bf16.mxu0 %v7056_v1 }
 0x1c2   : > { %6622 = vmatprep.subr.bf16.mxu1 %v7056_v1  ;;  %6624 = vmatprep.mubr.msk.bf16.mxu1 %vm7057_vm0, %v7056_v1 }
 0x1c3   : > { %6617 = vmatmul.mubr.msk.bf16.vlgmr.msra.gmra.mrb[116].mxu0 %vm289_vm1, %v4131_v23  ;;  %v6948_v23 = vld [vmem:[%s8244_s3 + $0x60] sm:$0xff]  }
 0x1c4   : > { %6629 = vmatpush3.bf16.msra.mxu0 %v6928_v22  ;;  %6632 = vmatprep.mubr.msk.bf16.mxu0 %vm7057_vm0, %v7056_v1  ;;  %v6947_v22 = vld [vmem:[%s8245_s4 + $0x58] sm:$0xff]  }
 0x1c5   : > { %6623 = vmatpush3.bf16.msra.mxu1 %v6927_v21  ;;  %6630 = vmatprep.subr.bf16.mxu0 %v7056_v1 }
 0x1c6   : > { %6636 = vmatprep.subr.bf16.mxu1 %v7056_v1 }
 0x1c8   : > { %6625 = vmatmul.mubr.msk.bf16.vlgmr.msra.gmra.mrb[116].mxu1 %vm289_vm1, %v4126_v28  ;;  %6631 = vmatpush3.bf16.msra.mxu0 %v6930_v27  ;;  %v4743_v28 = vld [vmem:[#allocation3 + $0x41] sm:$0xf] }
 0x1c9   : > { %6637 = vmatpush3.bf16.msra.mxu1 %v6929_v26  ;;  %6644 = vmatprep.subr.bf16.mxu0 %v7056_v1  ;;  %v4744_v26 = vpack.c.bf16 %v4742_v18, %v4742_v18  ;;  %v5115_v18 = vld [vmem:[#allocation3 + $0x99] sm:$0xf] }
 0x1ca   : > { %6638 = vmatprep.subr.bf16.mxu1 %v7056_v1  ;;  %6640 = vmatprep.mubr.msk.bf16.mxu1 %vm7057_vm0, %v7056_v1 }
 0x1cb   : > { %6633 = vmatmul.mubr.msk.bf16.vlgmr.msra.gmra.mrb[120].mxu0 %vm289_vm1, %v4248_v32  ;;  %v6949_v32 = vld [vmem:[%s8245_s4 + $0x60] sm:$0xff]  }
 0x1cc   : > { %6645 = vmatpush3.bf16.msra.mxu0 %v6932_v31  ;;  %6648 = vmatprep.mubr.msk.bf16.mxu0 %vm7057_vm0, %v7056_v1 }
 0x1cd   : > { %6639 = vmatpush3.bf16.msra.mxu1 %v6931_v30  ;;  %6646 = vmatprep.subr.bf16.mxu0 %v7056_v1 }
 0x1ce   : > { %6652 = vmatprep.subr.bf16.mxu1 %v7056_v1 }
 0x1d0   : > { %6641 = vmatmul.mubr.msk.bf16.vlgmr.msra.gmra.mrb[120].mxu1 %vm289_vm1, %v4309_v36  ;;  %6647 = vmatpush3.bf16.msra.mxu0 %v6934_v35  ;;  %v4805_v35 = vpack.c.bf16 %v4743_v28, %v4743_v28 }
 0x1d1   : > { %6653 = vmatpush3.bf16.msra.mxu1 %v6933_v34  ;;  %6660 = vmatprep.subr.bf16.mxu0 %v7056_v1 }
 0x1d2   : > { %6654 = vmatprep.subr.bf16.mxu1 %v7056_v1  ;;  %6656 = vmatprep.mubr.msk.bf16.mxu1 %vm7057_vm0, %v7056_v1 }
 0x1d3   : > { %6649 = vmatmul.mubr.msk.bf16.vlgmr.msra.gmra.mrb[124].mxu0 %vm289_vm1, %v4372_v40 }
 0x1d4   : > { %6661 = vmatpush3.bf16.msra.mxu0 %v6936_v39  ;;  %6664 = vmatprep.mubr.msk.bf16.mxu0 %vm7057_vm0, %v7056_v1 }
 0x1d5   : > { %6655 = vmatpush3.bf16.msra.mxu1 %v6935_v38  ;;  %6662 = vmatprep.subr.bf16.mxu0 %v7056_v1 }
 0x1d6   : > { %6668 = vmatprep.subr.bf16.mxu1 %v7056_v1  ;;  %v1156_v46 = vpop.f32.mrb[20].mxu0 }
 0x1d7   : > { %v1162_v41 = vadd.f32 %v1156_v46, %v7605_v24  ;;  %v6234_v48 = vpop.f32.mrb[21].mxu0 }
 0x1d8   : > { %6657 = vmatmul.mubr.msk.bf16.vlgmr.msra.gmra.mrb[124].mxu1 %vm289_vm1, %v4433_v45  ;;  %v1159_v49 = vpop.f32.mrb[22].mxu0  ;;  %6663 = vmatpush3.bf16.msra.mxu0 %v6938_v44  ;;  %v4868_v45 = vpack.c.bf16 %v4866_v37, %v4866_v37 }
 0x1d9   : > { %6669 = vmatpush3.bf16.msra.mxu1 %v6937_v43  ;;  %v6235_v52 = vpop.f32.mrb[23].mxu0  ;;  %6676 = vmatprep.subr.bf16.mxu0 %v7056_v1  ;;  %v6952_v43 = vld [vmem:[%s8244_s3 + $0x70] sm:$0xff]  }
 0x1da   : > { %6670 = vmatprep.subr.bf16.mxu1 %v7056_v1  ;;  %6672 = vmatprep.mubr.msk.bf16.mxu1 %vm7057_vm0, %v7056_v1 }
 0x1db   : > { %v1218_v24 = vpop.f32.mrb[20].mxu1  ;;  %6665 = vmatmul.mubr.msk.bf16.vlgmr.msra.gmra.mrb[128].mxu0 %vm289_vm1, %v4496_v53  ;;  %v4929_v53 = vpack.c.bf16 %v4867_v47, %v4867_v47 }
 0x1dc   : > { %v1224_v55 = vadd.f32 %v1218_v24, %v1162_v41  ;;  %v6242_v56 = vpop.f32.mrb[21].mxu1  ;;  %6677 = vmatpush3.bf16.msra.mxu0 %v6940_v51  ;;  %6680 = vmatprep.mubr.msk.bf16.mxu0 %vm7057_vm0, %v7056_v1  ;;  %v6954_v51 = vld [vmem:[%s8244_s3 + $0x78] sm:$0xff]  }
 0x1dd   : > { %6671 = vmatpush3.bf16.msra.mxu1 %v6939_v50  ;;  %v1221_v57 = vpop.f32.mrb[22].mxu1  ;;  %6678 = vmatprep.subr.bf16.mxu0 %v7056_v1  ;;  %v6953_v50 = vld [vmem:[%s8245_s4 + $0x70] sm:$0xff]  }
 0x1de   : > { %v6243_v60 = vpop.f32.mrb[23].mxu1  ;;  %6684 = vmatprep.subr.bf16.mxu1 %v7056_v1  ;;  %v1282_v62 = vpop.f32.mrb[24].mxu0 }
 0x1df   : > { %v1288_v0 = vadd.f32 %v1282_v62, %v1224_v55  ;;  %v6250_v2 = vpop.f32.mrb[25].mxu0 }
 0x1e0   : > { %6673 = vmatmul.mubr.msk.bf16.vlgmr.msra.gmra.mrb[128].mxu1 %vm289_vm1, %v4557_v61  ;;  %v1285_v3 = vpop.f32.mrb[26].mxu0  ;;  %6679 = vmatpush3.bf16.msra.mxu0 %v6942_v59  ;;  %v6956_v59 = vld [vmem:[%s8244_s3 + $0x80] sm:$0xff]   ;;  %v4992_v61 = vpack.c.bf16 %v4990_v54, %v4990_v54 }
 0x1e1   : > { %6685 = vmatpush3.bf16.msra.mxu1 %v6941_v58  ;;  %v6251_v6 = vpop.f32.mrb[27].mxu0  ;;  %6692 = vmatprep.subr.bf16.mxu0 %v7056_v1  ;;  %v6955_v58 = vld [vmem:[%s8245_s4 + $0x78] sm:$0xff]  }
 0x1e2   : > { %6686 = vmatprep.subr.bf16.mxu1 %v7056_v1  ;;  %6688 = vmatprep.mubr.msk.bf16.mxu1 %vm7057_vm0, %v7056_v1 }
 0x1e3   : > { %v1344_v8 = vpop.f32.mrb[24].mxu1  ;;  %6681 = vmatmul.mubr.msk.bf16.vlgmr.msra.gmra.mrb[132].mxu0 %vm289_vm1, %v4620_v7  ;;  %v5053_v7 = vpack.c.bf16 %v4991_v63, %v4991_v63 }
 0x1e4   : > { %v1350_v10 = vadd.f32 %v1344_v8, %v1288_v0  ;;  %v6258_v11 = vpop.f32.mrb[25].mxu1  ;;  %6693 = vmatpush3.bf16.msra.mxu0 %v6944_v5  ;;  %6696 = vmatprep.mubr.msk.bf16.mxu0 %vm7057_vm0, %v7056_v1  ;;  %v6958_v5 = vld [vmem:[%s8244_s3 + $0x88] sm:$0xff]  }
 0x1e5   : > { %6687 = vmatpush3.bf16.msra.mxu1 %v6943_v4  ;;  %v1347_v12 = vpop.f32.mrb[26].mxu1  ;;  %6694 = vmatprep.subr.bf16.mxu0 %v7056_v1  ;;  %v6957_v4 = vld [vmem:[%s8245_s4 + $0x80] sm:$0xff]  }
 0x1e6   : > { %v6259_v15 = vpop.f32.mrb[27].mxu1  ;;  %6700 = vmatprep.subr.bf16.mxu1 %v7056_v1  ;;  %v1408_v17 = vpop.f32.mrb[28].mxu0 }
 0x1e7   : > { %v1414_v19 = vadd.f32 %v1408_v17, %v1350_v10  ;;  %v6266_v20 = vpop.f32.mrb[29].mxu0  ;;  %v5116_v15 = vpack.c.bf16 %v5114_v9, %v5114_v9 }
 0x1e8   : > { %6689 = vmatmul.mubr.msk.bf16.vlgmr.msra.gmra.mrb[132].mxu1 %vm289_vm1, %v4681_v16  ;;  %v1411_v21 = vpop.f32.mrb[30].mxu0  ;;  %6695 = vmatpush3.bf16.msra.mxu0 %v6946_v14  ;;  %v8115_v16 = vld [vmem:[%s8246_s5] ss:$0 sm:$0xff] }
 0x1e9   : > { %6701 = vmatpush3.bf16.msra.mxu1 %v6945_v13  ;;  %v6267_v25 = vpop.f32.mrb[31].mxu0  ;;  %6708 = vmatprep.subr.bf16.mxu0 %v7056_v1  ;;  %v6959_v13 = vld [vmem:[%s8245_s4 + $0x88] sm:$0xff]  }
 0x1ea   : > { %6702 = vmatprep.subr.bf16.mxu1 %v7056_v1  ;;  %6704 = vmatprep.mubr.msk.bf16.mxu1 %vm7057_vm0, %v7056_v1  ;;  %v5177_v25 = vpack.c.bf16 %v5115_v18, %v5115_v18 }
 0x1eb   : > { %v1470_v27 = vpop.f32.mrb[28].mxu1  ;;  %6697 = vmatmul.mubr.msk.bf16.vlgmr.msra.gmra.mrb[136].mxu0 %vm289_vm1, %v4744_v26 }
 0x1ec   : > { %v1476_v29 = vadd.f32 %v1470_v27, %v1414_v19  ;;  %v6274_v30 = vpop.f32.mrb[29].mxu1  ;;  %6709 = vmatpush3.bf16.msra.mxu0 %v6948_v23  ;;  %6712 = vmatprep.mubr.msk.bf16.mxu0 %vm7057_vm0, %v7056_v1 }
 0x1ed   : > { %6703 = vmatpush3.bf16.msra.mxu1 %v6947_v22  ;;  %v1473_v31 = vpop.f32.mrb[30].mxu1  ;;  %6710 = vmatprep.subr.bf16.mxu0 %v7056_v1 }
 0x1ee   : > { %v6275_v34 = vpop.f32.mrb[31].mxu1  ;;  %6716 = vmatprep.subr.bf16.mxu1 %v7056_v1  ;;  %v1534_v36 = vpop.f32.mrb[32].mxu0 }
 0x1ef   : > { %v1540_v38 = vadd.f32 %v1534_v36, %v1476_v29  ;;  %v6282_v39 = vpop.f32.mrb[33].mxu0 }
 0x1f0   : > { %6705 = vmatmul.mubr.msk.bf16.vlgmr.msra.gmra.mrb[136].mxu1 %vm289_vm1, %v4805_v35  ;;  %v1537_v40 = vpop.f32.mrb[34].mxu0  ;;  %6711 = vmatpush3.bf16.msra.mxu0 %v6950_v33 }
 0x1f1   : > { %6717 = vmatpush3.bf16.msra.mxu1 %v6949_v32  ;;  %v6283_v44 = vpop.f32.mrb[35].mxu0  ;;  %6724 = vmatprep.subr.bf16.mxu0 %v7056_v1 }
 0x1f2   : > { %6718 = vmatprep.subr.bf16.mxu1 %v7056_v1  ;;  %6720 = vmatprep.mubr.msk.bf16.mxu1 %vm7057_vm0, %v7056_v1 }
 0x1f3   : > { %v1596_v46 = vpop.f32.mrb[32].mxu1  ;;  %6713 = vmatmul.mubr.msk.bf16.vlgmr.msra.gmra.mrb[140].mxu0 %vm289_vm1, %v4868_v45 }
 0x1f4   : > { %v1602_v41 = vadd.f32 %v1596_v46, %v1540_v38  ;;  %v6290_v48 = vpop.f32.mrb[33].mxu1  ;;  %6725 = vmatpush3.bf16.msra.mxu0 %v6952_v43  ;;  %6728 = vmatprep.mubr.msk.bf16.mxu0 %vm7057_vm0, %v7056_v1 }
 0x1f5   : > { %6719 = vmatpush3.bf16.msra.mxu1 %v6951_v42  ;;  %v1599_v49 = vpop.f32.mrb[34].mxu1  ;;  %6726 = vmatprep.subr.bf16.mxu0 %v7056_v1 }
 0x1f6   : > { %v6291_v52 = vpop.f32.mrb[35].mxu1  ;;  %6732 = vmatprep.subr.bf16.mxu1 %v7056_v1  ;;  %v1660_v24 = vpop.f32.mrb[36].mxu0 }
 0x1f7   : > { %v1666_v55 = vadd.f32 %v1660_v24, %v1602_v41  ;;  %v6298_v56 = vpop.f32.mrb[37].mxu0 }
 0x1f8   : > { %6721 = vmatmul.mubr.msk.bf16.vlgmr.msra.gmra.mrb[140].mxu1 %vm289_vm1, %v4929_v53  ;;  %v1663_v57 = vpop.f32.mrb[38].mxu0  ;;  %6727 = vmatpush3.bf16.msra.mxu0 %v6954_v51 }
 0x1f9   : > { %6733 = vmatpush3.bf16.msra.mxu1 %v6953_v50  ;;  %v6299_v60 = vpop.f32.mrb[39].mxu0  ;;  %6740 = vmatprep.subr.bf16.mxu0 %v7056_v1 }
 0x1fa   : > { %6734 = vmatprep.subr.bf16.mxu1 %v7056_v1  ;;  %6736 = vmatprep.mubr.msk.bf16.mxu1 %vm7057_vm0, %v7056_v1 }
 0x1fb   : > { %v1722_v62 = vpop.f32.mrb[36].mxu1  ;;  %6729 = vmatmul.mubr.msk.bf16.vlgmr.msra.gmra.mrb[144].mxu0 %vm289_vm1, %v4992_v61 }
 0x1fc   : > { %v1728_v0 = vadd.f32 %v1722_v62, %v1666_v55  ;;  %v6306_v2 = vpop.f32.mrb[37].mxu1  ;;  %6741 = vmatpush3.bf16.msra.mxu0 %v6956_v59  ;;  %6744 = vmatprep.mubr.msk.bf16.mxu0 %vm7057_vm0, %v7056_v1 }
 0x1fd   : > { %6735 = vmatpush3.bf16.msra.mxu1 %v6955_v58  ;;  %v1725_v3 = vpop.f32.mrb[38].mxu1  ;;  %6742 = vmatprep.subr.bf16.mxu0 %v7056_v1 }
 0x1fe   : > { %v6307_v6 = vpop.f32.mrb[39].mxu1  ;;  %6748 = vmatprep.subr.bf16.mxu1 %v7056_v1  ;;  %v1786_v8 = vpop.f32.mrb[40].mxu0 }
 0x1ff   : > { %v1792_v10 = vadd.f32 %v1786_v8, %v1728_v0  ;;  %v6314_v11 = vpop.f32.mrb[41].mxu0 }
 0x200   : > { %6737 = vmatmul.mubr.msk.bf16.vlgmr.msra.gmra.mrb[144].mxu1 %vm289_vm1, %v5053_v7  ;;  %v1789_v12 = vpop.f32.mrb[42].mxu0  ;;  %6743 = vmatpush3.bf16.msra.mxu0 %v6958_v5 }
 0x201   : > { %6749 = vmatpush3.bf16.msra.mxu1 %v6957_v4  ;;  %v6315_v14 = vpop.f32.mrb[43].mxu0  ;;  %6752 = vmatprep.mubr.msk.bf16.mxu1 %vm7057_vm0, %v7056_v1 }
 0x202   : > { %6750 = vmatprep.subr.bf16.mxu1 %v7056_v1 }
 0x203   : > { %v1848_v17 = vpop.f32.mrb[40].mxu1  ;;  %6745 = vmatmul.mubr.msk.bf16.vlgmr.msra.gmra.mrb[148].mxu0 %vm289_vm1, %v5116_v15 }
 0x204   : > { %v1854_v19 = vadd.f32 %v1848_v17, %v1792_v10  ;;  %v6322_v20 = vpop.f32.mrb[41].mxu1 }
 0x205   : > { %6751 = vmatpush3.bf16.msra.mxu1 %v6959_v13  ;;  %v1851_v21 = vpop.f32.mrb[42].mxu1 }
 0x206   : > { %v1861_v22 = vadd.f32 %v8115_v16, %v1854_v19  ;;  %v6323_v23 = vpop.f32.mrb[43].mxu1  ;;  %v1933_v1 = vpop.f32.mrb[44].mxu0 }
 0x207   : > { %v6330_v27 = vpop.f32.mrb[45].mxu0 }
 0x208   : > { %v5545_v26 = vadd.f32 -0.3, %v1861_v22  ;;  %6753 = vmatmul.mubr.msk.bf16.vlgmr.msra.gmra.mrb[148].mxu1 %vm289_vm1, %v5177_v25  ;;  %v1936_v28 = vpop.f32.mrb[46].mxu0 }
 0x209   : > { %v6331_v30 = vpop.f32.mrb[47].mxu0 }
 0x20a   : > { %v1863_v29 = vmax.f32 %v5545_v26, 0.0 }
 0x20b   : > { %v1988_v31 = vpop.f32.mrb[44].mxu1 }
 0x20c   : > { %v1864_v32 = vadd.f32 %v1863_v29, %v1861_v22  ;;  %v1989_v33 = vadd.f32 %v1988_v31, %v1933_v1  ;;  %v6338_v34 = vpop.f32.mrb[45].mxu1 }
 0x20d   : > { %v1991_v35 = vpop.f32.mrb[46].mxu1 }
 0x20e   : > { %v1865_v36 = vmax.f32 %v1864_v32, 0.0  ;;  %v6339_v37 = vpop.f32.mrb[47].mxu1  ;;  %v2050_v38 = vpop.f32.mrb[48].mxu0 }
 0x20f   : > { %v2056_v40 = vadd.f32 %v2050_v38, %v1989_v33  ;;  %v6346_v42 = vpop.f32.mrb[49].mxu0 }
 0x210   : > { %1866 = vst.msk [vmem:[%s8124_s20] sm:$0xf] %vm416_vm2, %v1865_v36  ;;  %v1868_v39 = vmul.f32 0.01, %v1865_v36  ;;  %v2053_v43 = vpop.f32.mrb[50].mxu0 }
 0x211   : > { %v6347_v45 = vpop.f32.mrb[51].mxu0 }
 0x212   : > { %v1869_v44 = vfloor.f32 %v1868_v39 }
 0x213   : > { %v2111_v46 = vpop.f32.mrb[48].mxu1 }
 0x214   : > { %v1870_v47 = vadd.f32 14.0, %v1869_v44  ;;  %v2117_v41 = vadd.f32 %v2111_v46, %v2056_v40  ;;  %v6354_v48 = vpop.f32.mrb[49].mxu1 }
 0x215   : > { %v2114_v49 = vpop.f32.mrb[50].mxu1 }
 0x216   : > { %1871 = vst.msk [vmem:[%s8128_s21] sm:$0xf] %vm416_vm2, %v1870_v47  ;;  %v6355_v50 = vpop.f32.mrb[51].mxu1  ;;  %v2174_v51 = vpop.f32.mrb[52].mxu0 }
 0x217   : > { %v2180_v52 = vadd.f32 %v2174_v51, %v2117_v41  ;;  %v6362_v53 = vpop.f32.mrb[53].mxu0 }
 0x218   : > { %v2177_v24 = vpop.f32.mrb[54].mxu0 }
 0x219   : > { %v6363_v54 = vpop.f32.mrb[55].mxu0 }
 0x21b   : > { %v2235_v55 = vpop.f32.mrb[52].mxu1 }
 0x21c   : > { %v2241_v56 = vadd.f32 %v2235_v55, %v2180_v52  ;;  %v6370_v57 = vpop.f32.mrb[53].mxu1 }
 0x21d   : > { %v2238_v58 = vpop.f32.mrb[54].mxu1 }
 0x21e   : > { %v6371_v59 = vpop.f32.mrb[55].mxu1  ;;  %v2298_v60 = vpop.f32.mrb[56].mxu0 }
 0x21f   : > { %v2304_v61 = vadd.f32 %v2298_v60, %v2241_v56  ;;  %v6378_v62 = vpop.f32.mrb[57].mxu0 }
 0x220   : > { %v2301_v63 = vpop.f32.mrb[58].mxu0 }
 0x221   : > { %v6379_v0 = vpop.f32.mrb[59].mxu0 }
 0x223   : > { %v2359_v2 = vpop.f32.mrb[56].mxu1 }
 0x224   : > { %v2365_v3 = vadd.f32 %v2359_v2, %v2304_v61  ;;  %v6386_v4 = vpop.f32.mrb[57].mxu1 }
 0x225   : > { %v2362_v5 = vpop.f32.mrb[58].mxu1 }
 0x226   : > { %v6387_v6 = vpop.f32.mrb[59].mxu1  ;;  %v2422_v7 = vpop.f32.mrb[60].mxu0 }
 0x227   : > { %v2428_v8 = vadd.f32 %v2422_v7, %v2365_v3  ;;  %v6394_v9 = vpop.f32.mrb[61].mxu0 }
 0x228   : > { %v2425_v10 = vpop.f32.mrb[62].mxu0 }
 0x229   : > { %v6395_v11 = vpop.f32.mrb[63].mxu0 }
 0x22b   : > { %v2483_v12 = vpop.f32.mrb[60].mxu1 }
 0x22c   : > { %v2489_v13 = vadd.f32 %v2483_v12, %v2428_v8  ;;  %v6402_v14 = vpop.f32.mrb[61].mxu1 }
 0x22d   : > { %v2486_v15 = vpop.f32.mrb[62].mxu1 }
 0x22e   : > { %v6403_v17 = vpop.f32.mrb[63].mxu1  ;;  %v2546_v18 = vpop.f32.mrb[64].mxu0 }
 0x22f   : > { %v2552_v19 = vadd.f32 %v2546_v18, %v2489_v13  ;;  %v6410_v20 = vpop.f32.mrb[65].mxu0 }
 0x230   : > { %v2549_v21 = vpop.f32.mrb[66].mxu0 }
 0x231   : > { %v6411_v22 = vpop.f32.mrb[67].mxu0 }
 0x233   : > { %v2607_v23 = vpop.f32.mrb[64].mxu1 }
 0x234   : > { %v2613_v25 = vadd.f32 %v2607_v23, %v2552_v19  ;;  %v6418_v1 = vpop.f32.mrb[65].mxu1 }
 0x235   : > { %v2610_v26 = vpop.f32.mrb[66].mxu1 }
 0x236   : > { %v6419_v27 = vpop.f32.mrb[67].mxu1  ;;  %v2670_v28 = vpop.f32.mrb[68].mxu0 }
 0x237   : > { %v2676_v29 = vadd.f32 %v2670_v28, %v2613_v25  ;;  %v6426_v30 = vpop.f32.mrb[69].mxu0 }
 0x238   : > { %v2673_v31 = vpop.f32.mrb[70].mxu0 }
 0x239   : > { %v6427_v32 = vpop.f32.mrb[71].mxu0 }
 0x23b   : > { %v2731_v33 = vpop.f32.mrb[68].mxu1 }
 0x23c   : > { %v2737_v34 = vadd.f32 %v2731_v33, %v2676_v29  ;;  %v6434_v35 = vpop.f32.mrb[69].mxu1 }
 0x23d   : > { %v2734_v36 = vpop.f32.mrb[70].mxu1 }
 0x23e   : > { %v6435_v37 = vpop.f32.mrb[71].mxu1  ;;  %v2794_v38 = vpop.f32.mrb[72].mxu0 }
 0x23f   : > { %v2800_v39 = vadd.f32 %v2794_v38, %v2737_v34  ;;  %v6442_v40 = vpop.f32.mrb[73].mxu0 }
 0x240   : > { %v2797_v42 = vpop.f32.mrb[74].mxu0 }
 0x241   : > { %v6443_v43 = vpop.f32.mrb[75].mxu0 }
 0x243   : > { %v2855_v44 = vpop.f32.mrb[72].mxu1 }
 0x244   : > { %v2861_v45 = vadd.f32 %v2855_v44, %v2800_v39  ;;  %v6450_v46 = vpop.f32.mrb[73].mxu1 }
 0x245   : > { %v2858_v47 = vpop.f32.mrb[74].mxu1 }
 0x246   : > { %v6451_v41 = vpop.f32.mrb[75].mxu1  ;;  %v2918_v48 = vpop.f32.mrb[76].mxu0 }
 0x247   : > { %v2924_v49 = vadd.f32 %v2918_v48, %v2861_v45  ;;  %v6458_v50 = vpop.f32.mrb[77].mxu0 }
 0x248   : > { %v2921_v51 = vpop.f32.mrb[78].mxu0 }
 0x249   : > { %v6459_v52 = vpop.f32.mrb[79].mxu0 }
 0x24b   : > { %v2979_v53 = vpop.f32.mrb[76].mxu1 }
 0x24c   : > { %v2985_v24 = vadd.f32 %v2979_v53, %v2924_v49  ;;  %v6466_v54 = vpop.f32.mrb[77].mxu1 }
 0x24d   : > { %v2982_v55 = vpop.f32.mrb[78].mxu1 }
 0x24e   : > { %v2986_v56 = vadd.f32 %v8115_v16, %v2985_v24  ;;  %v6467_v57 = vpop.f32.mrb[79].mxu1  ;;  %v3059_v58 = vpop.f32.mrb[80].mxu0 }
 0x24f   : > { %v6474_v60 = vpop.f32.mrb[81].mxu0 }
 0x250   : > { %v5664_v59 = vadd.f32 -0.3, %v2986_v56  ;;  %v3062_v61 = vpop.f32.mrb[82].mxu0 }
 0x251   : > { %v6475_v63 = vpop.f32.mrb[83].mxu0 }
 0x252   : > { %v2988_v62 = vmax.f32 %v5664_v59, 0.0 }
 0x253   : > { %v3114_v0 = vpop.f32.mrb[80].mxu1 }
 0x254   : > { %v2989_v2 = vadd.f32 %v2988_v62, %v2986_v56  ;;  %v3115_v3 = vadd.f32 %v3114_v0, %v3059_v58  ;;  %v6482_v4 = vpop.f32.mrb[81].mxu1 }
 0x255   : > { %v3117_v5 = vpop.f32.mrb[82].mxu1 }
 0x256   : > { %v2990_v6 = vmax.f32 %v2989_v2, 0.0  ;;  %v6483_v7 = vpop.f32.mrb[83].mxu1  ;;  %v3176_v8 = vpop.f32.mrb[84].mxu0 }
 0x257   : > { %v3182_v10 = vadd.f32 %v3176_v8, %v3115_v3  ;;  %v6490_v11 = vpop.f32.mrb[85].mxu0 }
 0x258   : > { %5665 = vst.msk [vmem:[%s8124_s20 + $0x4] sm:$0xf] %vm416_vm2, %v2990_v6  ;;  %v2993_v9 = vmul.f32 0.01, %v2990_v6  ;;  %v3179_v12 = vpop.f32.mrb[86].mxu0 }
 0x259   : > { %v6491_v14 = vpop.f32.mrb[87].mxu0 }
 0x25a   : > { %v2994_v13 = vfloor.f32 %v2993_v9 }
 0x25b   : > { %v3237_v15 = vpop.f32.mrb[84].mxu1 }
 0x25c   : > { %v2995_v17 = vadd.f32 14.0, %v2994_v13  ;;  %v3243_v18 = vadd.f32 %v3237_v15, %v3182_v10  ;;  %v6498_v19 = vpop.f32.mrb[85].mxu1 }
 0x25d   : > { %v3240_v20 = vpop.f32.mrb[86].mxu1 }
 0x25e   : > { %5666 = vst.msk [vmem:[%s8128_s21 + $0x4] sm:$0xf] %vm416_vm2, %v2995_v17  ;;  %v6499_v21 = vpop.f32.mrb[87].mxu1  ;;  %v3300_v22 = vpop.f32.mrb[88].mxu0 }
 0x25f   : > { %v3306_v23 = vadd.f32 %v3300_v22, %v3243_v18  ;;  %v6506_v25 = vpop.f32.mrb[89].mxu0 }
 0x260   : > { %v3303_v1 = vpop.f32.mrb[90].mxu0 }
 0x261   : > { %v6507_v26 = vpop.f32.mrb[91].mxu0 }
 0x263   : > { %v3361_v27 = vpop.f32.mrb[88].mxu1 }
 0x264   : > { %v3367_v28 = vadd.f32 %v3361_v27, %v3306_v23  ;;  %v6514_v29 = vpop.f32.mrb[89].mxu1 }
 0x265   : > { %v3364_v30 = vpop.f32.mrb[90].mxu1 }
 0x266   : > { %v6515_v31 = vpop.f32.mrb[91].mxu1  ;;  %v3424_v32 = vpop.f32.mrb[92].mxu0 }
 0x267   : > { %v3430_v33 = vadd.f32 %v3424_v32, %v3367_v28  ;;  %v6522_v34 = vpop.f32.mrb[93].mxu0 }
 0x268   : > { %v3427_v35 = vpop.f32.mrb[94].mxu0 }
 0x269   : > { %v6523_v36 = vpop.f32.mrb[95].mxu0 }
 0x26b   : > { %v3485_v37 = vpop.f32.mrb[92].mxu1 }
 0x26c   : > { %v3491_v38 = vadd.f32 %v3485_v37, %v3430_v33  ;;  %v6530_v39 = vpop.f32.mrb[93].mxu1 }
 0x26d   : > { %v3488_v40 = vpop.f32.mrb[94].mxu1 }
 0x26e   : > { %v6531_v42 = vpop.f32.mrb[95].mxu1  ;;  %v3548_v43 = vpop.f32.mrb[96].mxu0 }
 0x26f   : > { %v3554_v44 = vadd.f32 %v3548_v43, %v3491_v38  ;;  %v6538_v45 = vpop.f32.mrb[97].mxu0 }
 0x270   : > { %v3551_v46 = vpop.f32.mrb[98].mxu0 }
 0x271   : > { %v6539_v47 = vpop.f32.mrb[99].mxu0 }
 0x273   : > { %v3609_v41 = vpop.f32.mrb[96].mxu1 }
 0x274   : > { %v3615_v48 = vadd.f32 %v3609_v41, %v3554_v44  ;;  %v6546_v49 = vpop.f32.mrb[97].mxu1 }
 0x275   : > { %v3612_v50 = vpop.f32.mrb[98].mxu1 }
 0x276   : > { %v6547_v51 = vpop.f32.mrb[99].mxu1  ;;  %v3672_v52 = vpop.f32.mrb[100].mxu0 }
 0x277   : > { %v3678_v53 = vadd.f32 %v3672_v52, %v3615_v48  ;;  %v6554_v24 = vpop.f32.mrb[101].mxu0 }
 0x278   : > { %v3675_v54 = vpop.f32.mrb[102].mxu0 }
 0x279   : > { %v6555_v55 = vpop.f32.mrb[103].mxu0 }
 0x27b   : > { %v3733_v56 = vpop.f32.mrb[100].mxu1 }
 0x27c   : > { %v3739_v57 = vadd.f32 %v3733_v56, %v3678_v53  ;;  %v6562_v58 = vpop.f32.mrb[101].mxu1 }
 0x27d   : > { %v3736_v59 = vpop.f32.mrb[102].mxu1 }
 0x27e   : > { %v6563_v60 = vpop.f32.mrb[103].mxu1  ;;  %v3796_v61 = vpop.f32.mrb[104].mxu0 }
 0x27f   : > { %v3802_v62 = vadd.f32 %v3796_v61, %v3739_v57  ;;  %v6570_v63 = vpop.f32.mrb[105].mxu0 }
 0x280   : > { %v3799_v0 = vpop.f32.mrb[106].mxu0 }
 0x281   : > { %v6571_v2 = vpop.f32.mrb[107].mxu0 }
 0x283   : > { %v3857_v3 = vpop.f32.mrb[104].mxu1 }
 0x284   : > { %v3863_v4 = vadd.f32 %v3857_v3, %v3802_v62  ;;  %v6578_v5 = vpop.f32.mrb[105].mxu1 }
 0x285   : > { %v3860_v6 = vpop.f32.mrb[106].mxu1 }
 0x286   : > { %v6579_v7 = vpop.f32.mrb[107].mxu1  ;;  %v3920_v8 = vpop.f32.mrb[108].mxu0 }
 0x287   : > { %v3926_v9 = vadd.f32 %v3920_v8, %v3863_v4  ;;  %v6586_v10 = vpop.f32.mrb[109].mxu0 }
 0x288   : > { %v3923_v11 = vpop.f32.mrb[110].mxu0 }
 0x289   : > { %v6587_v12 = vpop.f32.mrb[111].mxu0 }
 0x28b   : > { %v3981_v13 = vpop.f32.mrb[108].mxu1 }
 0x28c   : > { %v3987_v14 = vadd.f32 %v3981_v13, %v3926_v9  ;;  %v6594_v15 = vpop.f32.mrb[109].mxu1 }
 0x28d   : > { %v3984_v17 = vpop.f32.mrb[110].mxu1 }
 0x28e   : > { %v6595_v18 = vpop.f32.mrb[111].mxu1  ;;  %v4044_v19 = vpop.f32.mrb[112].mxu0 }
 0x28f   : > { %v4050_v20 = vadd.f32 %v4044_v19, %v3987_v14  ;;  %v6602_v21 = vpop.f32.mrb[113].mxu0 }
 0x290   : > { %v4047_v22 = vpop.f32.mrb[114].mxu0 }
 0x291   : > { %v6603_v23 = vpop.f32.mrb[115].mxu0 }
 0x293   : > { %v4105_v25 = vpop.f32.mrb[112].mxu1 }
 0x294   : > { %v4111_v1 = vadd.f32 %v4105_v25, %v4050_v20  ;;  %v6610_v26 = vpop.f32.mrb[113].mxu1 }
 0x295   : > { %v4108_v27 = vpop.f32.mrb[114].mxu1 }
 0x296   : > { %v4112_v28 = vadd.f32 %v8115_v16, %v4111_v1  ;;  %v6611_v29 = vpop.f32.mrb[115].mxu1  ;;  %v4185_v30 = vpop.f32.mrb[116].mxu0 }
 0x297   : > { %v6618_v32 = vpop.f32.mrb[117].mxu0 }
 0x298   : > { %v5785_v31 = vadd.f32 -0.3, %v4112_v28  ;;  %v4188_v33 = vpop.f32.mrb[118].mxu0 }
 0x299   : > { %v6619_v35 = vpop.f32.mrb[119].mxu0 }
 0x29a   : > { %v4114_v34 = vmax.f32 %v5785_v31, 0.0 }
 0x29b   : > { %v4240_v36 = vpop.f32.mrb[116].mxu1 }
 0x29c   : > { %v4115_v37 = vadd.f32 %v4114_v34, %v4112_v28  ;;  %v4241_v38 = vadd.f32 %v4240_v36, %v4185_v30  ;;  %v6626_v39 = vpop.f32.mrb[117].mxu1 }
 0x29d   : > { %v4243_v40 = vpop.f32.mrb[118].mxu1 }
 0x29e   : > { %v4116_v42 = vmax.f32 %v4115_v37, 0.0  ;;  %v6627_v43 = vpop.f32.mrb[119].mxu1  ;;  %v4302_v44 = vpop.f32.mrb[120].mxu0 }
 0x29f   : > { %v4308_v46 = vadd.f32 %v4302_v44, %v4241_v38  ;;  %v6634_v47 = vpop.f32.mrb[121].mxu0 }
 0x2a0   : > { %5786 = vst.msk [vmem:[%s8124_s20 + $0x8] sm:$0xf] %vm416_vm2, %v4116_v42  ;;  %v4119_v45 = vmul.f32 0.01, %v4116_v42  ;;  %v4305_v41 = vpop.f32.mrb[122].mxu0 }
 0x2a1   : > { %v6635_v49 = vpop.f32.mrb[123].mxu0 }
 0x2a2   : > { %v4120_v48 = vfloor.f32 %v4119_v45 }
 0x2a3   : > { %v4363_v50 = vpop.f32.mrb[120].mxu1 }
 0x2a4   : > { %v4121_v51 = vadd.f32 14.0, %v4120_v48  ;;  %v4369_v52 = vadd.f32 %v4363_v50, %v4308_v46  ;;  %v6642_v53 = vpop.f32.mrb[121].mxu1 }
 0x2a5   : > { %v4366_v24 = vpop.f32.mrb[122].mxu1 }
 0x2a6   : > { %5787 = vst.msk [vmem:[%s8128_s21 + $0x8] sm:$0xf] %vm416_vm2, %v4121_v51  ;;  %v6643_v54 = vpop.f32.mrb[123].mxu1  ;;  %v4426_v55 = vpop.f32.mrb[124].mxu0 }
 0x2a7   : > { %v4432_v56 = vadd.f32 %v4426_v55, %v4369_v52  ;;  %v6650_v57 = vpop.f32.mrb[125].mxu0 }
 0x2a8   : > { %v4429_v58 = vpop.f32.mrb[126].mxu0 }
 0x2a9   : > { %v6651_v59 = vpop.f32.mrb[127].mxu0 }
 0x2ab   : > { %v4487_v60 = vpop.f32.mrb[124].mxu1 }
 0x2ac   : > { %v4493_v61 = vadd.f32 %v4487_v60, %v4432_v56  ;;  %v6658_v62 = vpop.f32.mrb[125].mxu1 }
 0x2ad   : > { %v4490_v63 = vpop.f32.mrb[126].mxu1 }
 0x2ae   : > { %v6659_v0 = vpop.f32.mrb[127].mxu1  ;;  %v4550_v2 = vpop.f32.mrb[128].mxu0 }
 0x2af   : > { %v4556_v3 = vadd.f32 %v4550_v2, %v4493_v61  ;;  %v6666_v4 = vpop.f32.mrb[129].mxu0 }
 0x2b0   : > { %v4553_v5 = vpop.f32.mrb[130].mxu0 }
 0x2b1   : > { %v6667_v6 = vpop.f32.mrb[131].mxu0 }
 0x2b3   : > { %v4611_v7 = vpop.f32.mrb[128].mxu1 }
 0x2b4   : > { %v4617_v8 = vadd.f32 %v4611_v7, %v4556_v3  ;;  %v6674_v9 = vpop.f32.mrb[129].mxu1 }
 0x2b5   : > { %v4614_v10 = vpop.f32.mrb[130].mxu1 }
 0x2b6   : > { %v6675_v11 = vpop.f32.mrb[131].mxu1  ;;  %v4674_v12 = vpop.f32.mrb[132].mxu0 }
 0x2b7   : > { %v4680_v13 = vadd.f32 %v4674_v12, %v4617_v8  ;;  %v6682_v14 = vpop.f32.mrb[133].mxu0 }
 0x2b8   : > { %v4677_v15 = vpop.f32.mrb[134].mxu0 }
 0x2b9   : > { %v6683_v17 = vpop.f32.mrb[135].mxu0 }
 0x2bb   : > { %v4735_v18 = vpop.f32.mrb[132].mxu1 }
 0x2bc   : > { %v4741_v19 = vadd.f32 %v4735_v18, %v4680_v13  ;;  %v6690_v20 = vpop.f32.mrb[133].mxu1 }
 0x2bd   : > { %v4738_v21 = vpop.f32.mrb[134].mxu1 }
 0x2be   : > { %v6691_v22 = vpop.f32.mrb[135].mxu1  ;;  %v4798_v23 = vpop.f32.mrb[136].mxu0 }
 0x2bf   : > { %v4804_v25 = vadd.f32 %v4798_v23, %v4741_v19  ;;  %v6698_v1 = vpop.f32.mrb[137].mxu0 }
 0x2c0   : > { %v4801_v26 = vpop.f32.mrb[138].mxu0 }
 0x2c1   : > { %v6699_v27 = vpop.f32.mrb[139].mxu0 }
 0x2c3   : > { %v4859_v28 = vpop.f32.mrb[136].mxu1 }
 0x2c4   : > { %v4865_v29 = vadd.f32 %v4859_v28, %v4804_v25  ;;  %v6706_v30 = vpop.f32.mrb[137].mxu1 }
 0x2c5   : > { %v4862_v31 = vpop.f32.mrb[138].mxu1 }
 0x2c6   : > { %v6707_v32 = vpop.f32.mrb[139].mxu1  ;;  %v4922_v33 = vpop.f32.mrb[140].mxu0 }
 0x2c7   : > { %v4928_v34 = vadd.f32 %v4922_v33, %v4865_v29  ;;  %v6714_v35 = vpop.f32.mrb[141].mxu0 }
 0x2c8   : > { %v4925_v36 = vpop.f32.mrb[142].mxu0 }
 0x2c9   : > { %v6715_v37 = vpop.f32.mrb[143].mxu0 }
 0x2cb   : > { %v4983_v38 = vpop.f32.mrb[140].mxu1 }
 0x2cc   : > { %v4989_v39 = vadd.f32 %v4983_v38, %v4928_v34  ;;  %v6722_v40 = vpop.f32.mrb[141].mxu1 }
 0x2cd   : > { %v4986_v42 = vpop.f32.mrb[142].mxu1 }
 0x2ce   : > { %v6723_v43 = vpop.f32.mrb[143].mxu1  ;;  %v5046_v44 = vpop.f32.mrb[144].mxu0 }
 0x2cf   : > { %v5052_v45 = vadd.f32 %v5046_v44, %v4989_v39  ;;  %v6730_v46 = vpop.f32.mrb[145].mxu0 }
 0x2d0   : > { %v5049_v47 = vpop.f32.mrb[146].mxu0 }
 0x2d1   : > { %v6731_v41 = vpop.f32.mrb[147].mxu0 }
 0x2d3   : > { %v5107_v48 = vpop.f32.mrb[144].mxu1 }
 0x2d4   : > { %v5113_v49 = vadd.f32 %v5107_v48, %v5052_v45  ;;  %v6738_v50 = vpop.f32.mrb[145].mxu1 }
 0x2d5   : > { %v5110_v51 = vpop.f32.mrb[146].mxu1 }
 0x2d6   : > { %v6739_v52 = vpop.f32.mrb[147].mxu1  ;;  %v5170_v53 = vpop.f32.mrb[148].mxu0 }
 0x2d7   : > { %v5176_v24 = vadd.f32 %v5170_v53, %v5113_v49  ;;  %v6746_v54 = vpop.f32.mrb[149].mxu0 }
 0x2d8   : > { %v5173_v55 = vpop.f32.mrb[150].mxu0 }
 0x2d9   : > { %v6747_v56 = vpop.f32.mrb[151].mxu0 }
 0x2db   : > { %v5231_v57 = vpop.f32.mrb[148].mxu1 }
 0x2dc   : > { %v5237_v58 = vadd.f32 %v5231_v57, %v5176_v24  ;;  %v6754_v59 = vpop.f32.mrb[149].mxu1 }
 0x2dd   : > { %v5234_v60 = vpop.f32.mrb[150].mxu1 }
 0x2de   : > { %v5238_v61 = vadd.f32 %v8115_v16, %v5237_v58  ;;  %v6755_v62 = vpop.f32.mrb[151].mxu1 }
 0x2e0   : > { %v5906_v63 = vadd.f32 -0.3, %v5238_v61 }
 0x2e2   : > { %v5240_v0 = vmax.f32 %v5906_v63, 0.0 }
 0x2e4   : > { %v5241_v2 = vadd.f32 %v5240_v0, %v5238_v61 }
 0x2e6   : > { %v5242_v3 = vmax.f32 %v5241_v2, 0.0 }
 0x2e8   : > { %5907 = vst.msk [vmem:[%s8124_s20 + $0xc] sm:$0xf] %vm416_vm2, %v5242_v3  ;;  %v5245_v16 = vmul.f32 0.01, %v5242_v3 }
 0x2e9   : > { %6973 = shalt.err (!%p6970_p3)
}
 0x2ea   : > { %s6974_s20 = scalar_lea.hbm %s8150_s9, 256  ;;  %s6978_s16 = scalar_lea.hbm %s8248_s7, 512 }
 0x2eb   : > { %p6975_p4 = scmp.ne.s32.totalorder %s8150_s9, %s6974_s20  ;;  %p6979_p9 = scmp.lt.u32.totalorder %s8150_s9, %s8248_s7 }
 0x2ec   : > { %p6980_p10 = scmp.lt.u32.totalorder %s6978_s16, %s6974_s20  ;;  %p6982_p12 = scmp.lt.u32.totalorder %s6974_s20, %s8150_s9 }
 0x2ed   : > { %p6976_p7 = pnand %p6975_p4, %p7140_p5 }
 0x2ee   : > { %p6981_p11 = por %p6980_p10, %p6979_p9 }
 0x2ef   : > { %p6977_p8 = pneg %p6976_p7 }
 0x2f0   : > { %p6983_p13 = por %p6982_p12, %p6981_p11 }
 0x2f2   : > { %p6984_p0 = pnand %p6983_p13, %p6977_p8 }
 0x2f4   : > { %6987 = shalt.err (!%p6984_p0)
}
 0x2f5   : > { %s7059_s15 = smov 64   ;;  %s7060_s19 = smov 4   ;;  %v5246_v4 = vfloor.f32 %v5245_v16 }
 0x2f6   : > { %6757 = dma.vmem_to_hbm [thread:$0]  (%p7140_p5), %s8152_s23, 256, %s8150_s9, %s5256_s14, %s7059_s15, %s7059_s15, %s7060_s19  }
 0x2f7   : > { %v5247_v5 = vadd.f32 14.0, %v5246_v4  ;;  %s8189_s29 = scalar_lea.hbm %s8247_s6, %s5918_s22  ;;  %s8251_s8 = sshll.u32 %s8128_s21, 4  ;;  %s8193_s8 = int_to_ptr.vmem [resolvable:$true] %s8251_s8 }
 0x2f8   : > { %s5251_s16 = scalar_lea.sflag [#allocation5], %s8120_s18  ;;  %s6988_s17 = scalar_lea.vmem %s8193_s8, 256 }
 0x2f9   : > { %5908 = vst.msk [vmem:[%s8128_s21 + $0xc] sm:$0xf] %vm416_vm2, %v5247_v5  ;;  %p6989_p1 = scmp.ne.s32.totalorder %s8193_s8, %s6988_s17  ;;  %s7061_s28 = smov [#allocation4]  }
 0x2fa   : > { %s6992_s23 = sshll.u32 %s7061_s28, 4  ;;  %s6993_s23 = int_to_ptr.vmem [resolvable:$false] %s6992_s23 }
 0x2fb   : > { %p6990_p2 = pnand %p6989_p1, %p7140_p5  ;;  %s6994_s9 = scalar_lea.vmem %s6993_s23, 512 }
 0x2fc   : > { %p6995_p4 = scmp.lt.s32.totalorder %s8193_s8, %s6993_s23  ;;  %p6996_p7 = scmp.lt.s32.totalorder %s6994_s9, %s6988_s17 }
 0x2fd   : > { %p6991_p3 = pneg %p6990_p2 }
 0x2fe   : > { %p6997_p8 = por %p6996_p7, %p6995_p4 }
 0x300   : > { %p6998_p9 = pnand %p6997_p8, %p6991_p3 }
 0x302   : > { %7001 = shalt.err (!%p6998_p9)
}
 0x303   : > { %s7002_s21 = scalar_lea.hbm %s8189_s29, 256  ;;  %s7006_s13 = scalar_lea.hbm %s8247_s6, 512 }
 0x304   : > { %p7003_p10 = scmp.ne.s32.totalorder %s8189_s29, %s7002_s21  ;;  %p7007_p13 = scmp.lt.u32.totalorder %s8189_s29, %s8247_s6 }
 0x305   : > { %p7008_p0 = scmp.lt.u32.totalorder %s7006_s13, %s7002_s21  ;;  %p7010_p2 = scmp.lt.u32.totalorder %s7002_s21, %s8189_s29 }
 0x306   : > { %p7004_p11 = pnand %p7003_p10, %p7140_p5 }
 0x307   : > { %p7009_p1 = por %p7008_p0, %p7007_p13 }
 0x308   : > { %p7005_p12 = pneg %p7004_p11 }
 0x309   : > { %p7011_p3 = por %p7010_p2, %p7009_p1 }
 0x30b   : > { %p7012_p4 = pnand %p7011_p3, %p7005_p12 }
 0x30d   : > { %7015 = shalt.err (!%p7012_p4)
}
 0x30e   : > { %6756 = dma.vmem_to_hbm [thread:$0]  (%p7140_p5), %s8193_s8, 256, %s8189_s29, %s5251_s16, %s7059_s15, %s7059_s15, %s7060_s19  }
 0x30f PF: > { %p6767_p7 = scmp.ge.s32.totalorder %s7054_s27, 2  ;;  %s5300_s17 = sand.u32 1, %s7042_s24  }
 0x310   : > { %s5301_s23 = scalar_lea.sflag [#allocation5], %s5300_s17 }
 0x311   : > { %p6761_p8 = pnand %p6767_p7, %p7144_p6 }
 0x313   : > { %7033 = dma.done.wait (!%p6761_p8), %s5301_s23, 256  }
 0x314   : > { %7035 = vsyncadd (!%p6761_p8), %s5301_s23, 4294967040  ;;  %s5310_s11 = scalar_lea.sflag [#allocation7], %s5300_s17 }
 0x315   : > { %7037 = dma.done.wait (!%p6761_p8), %s5310_s11, 256  }
 0x316   : > { %7039 = vsyncadd (!%p6761_p8), %s5310_s11, 4294967040  ;;  %p21_p5 = scmp.ge.s32.totalorder %s7127_s30, 4   ;;  %s8252_s24 = smov %s7046_s25 }
 0x317   : > { %s8253_s25 = smov %s7050_s26  ;;  %s8254_s26 = smov %s7138_s10 }
 0x318   : > { %s8255_s27 = smov %s7127_s30  ;;  %23 = sbr.rel (!%p21_p5) target bundleno = 5 (0x5), region = 155 }
 0x31f   :  { %5315 = vsyncpa [#allocation5], 1 }
 0x320   :  { %5317 = vsyncpa [#allocation5 + $0x1], 1 }
 0x321   :  { %5318 = vsyncpa [#allocation7], 1 }
 0x322   :  { %5320 = vsyncpa [#allocation7 + $0x1], 1 }

</bundles_post_ra>
